<compile_context>
chip_gen: v6e
topology: v6e:2x2x1
jax: 0.10.0
libtpu: 0.0.40
codegen_flags: <defaults>
</compile_context>

<pallas_src>
import functools

import jax
import jax.numpy as jnp
from jax import lax
from jax.experimental import pallas as pl
from jax.experimental.pallas import tpu as pltpu

# Packed gate order: [i, f, o, g]; values are PyTorch's row-block indices
# (PyTorch stacks gates as i=0, f=1, g=2, o=3).
_GATE_ORDER = (0, 1, 3, 2)


def _round_up(x, m):
    return (x + m - 1) // m * m


def lstm_kernel(x_ref, wih_ref, b_ref, whi_ref, wlo_ref, wlin_ref, blin_ref,
                out_ref, *, seq_len, in_size, hp, out_size):
    """Full LSTM recurrence + final linear layer.

    x_ref:    (T, in_size)       raw inputs (no padding needed)
    wih_ref:  (in_size, 4*Hp)    input->gates weights, gate order [i, f, o, g]
    b_ref:    (1, 4*Hp)          combined bias (b_ih + b_hh), same gate order
    whi_ref:  (Hp, 4*Hp) bf16    high part of W_hh (same gate order)
    wlo_ref:  (Hp, 4*Hp) bf16    residual part of W_hh (W - f32(W_hi))
    wlin_ref: (out_size, Hp)     final linear weights (row per output, padded)
    blin_ref: (1, out_size)      final linear bias
    out_ref:  (1, out_size)      linear(h_T)
    """
    # Hoisted input projection on the VPU: xg[t] = sum_k x[t,k]*W_ih[k,:] + b.
    # in_size is tiny (1), so this is a broadcast outer product — no MXU pass
    # and no zero-padded K dimension to DMA.
    xg = x_ref[:, 0:1] * wih_ref[0:1, :] + b_ref[...]           # (T, 4*Hp) f32
    for k in range(1, in_size):
        xg = xg + x_ref[:, k:k + 1] * wih_ref[k:k + 1, :]

    h = jnp.zeros((1, hp), jnp.float32)
    c = jnp.zeros((1, hp), jnp.float32)

    # Fully unrolled recurrence; h/c live in vregs, all slices are static.
    for t in range(seq_len):
        # Compensated bf16 split: h_hi@W_hi + h_hi@W_lo + h_lo@W_hi == h@W to
        # ~2^-17 relative error.  Three single-pass bf16 MXU ops (K=Hp each)
        # replace the multi-pass f32 matmul; accumulation stays f32.
        h_hi = h.astype(jnp.bfloat16)
        h_lo = (h - h_hi.astype(jnp.float32)).astype(jnp.bfloat16)
        hh = (jnp.dot(h_hi, whi_ref[...], preferred_element_type=jnp.float32)
              + jnp.dot(h_hi, wlo_ref[...], preferred_element_type=jnp.float32)
              + jnp.dot(h_lo, whi_ref[...], preferred_element_type=jnp.float32))
        gates = xg[t:t + 1, :] + hh                              # (1, 4*Hp) f32

        sig = jax.nn.sigmoid(gates[:, :3 * hp])   # [i | f | o] in one EUP slab
        g = jnp.tanh(gates[:, 3 * hp:])
        i = sig[:, 0:hp]
        f = sig[:, hp:2 * hp]
        o = sig[:, 2 * hp:3 * hp]
        c = f * c + i * g
        h = o * jnp.tanh(c)

    # predictions[-1] == linear(h_T): VPU multiply + XLU lane reduction instead
    # of a zero-padded (Hp, Op) MXU matmul.
    cols = [jnp.sum(h * wlin_ref[j:j + 1, :], axis=-1, keepdims=True)
            for j in range(out_size)]
    y = cols[0] if out_size == 1 else jnp.concatenate(cols, axis=-1)
    out_ref[...] = y + blin_ref[...]


def pack_lstm_params(params, input_size, hidden_size, output_size):
    """Reorder/pad/split weights once (hoisted out of the per-call path)."""
    w_ih, w_hh, b_ih, b_hh, w_lin, b_lin = params
    H = hidden_size
    Hp = _round_up(H, 128)

    def pack_gates_T(w, rows):
        # w: (4H, D) PyTorch layout -> (rows, 4*Hp) right-multiply layout with
        # gates reordered to [i, f, o, g].
        D = w.shape[1]
        out = jnp.zeros((rows, 4 * Hp), jnp.float32)
        for s, g in enumerate(_GATE_ORDER):
            out = out.at[:D, s * Hp:s * Hp + H].set(w[g * H:(g + 1) * H, :].T)
        return out

    wih_p = pack_gates_T(w_ih.astype(jnp.float32), input_size)   # (in, 4*Hp)
    whh_p = pack_gates_T(w_hh.astype(jnp.float32), Hp)           # (Hp, 4*Hp)

    b = (b_ih + b_hh).astype(jnp.float32)
    b_p = jnp.zeros((1, 4 * Hp), jnp.float32)
    for s, g in enumerate(_GATE_ORDER):
        b_p = b_p.at[0, s * Hp:s * Hp + H].set(b[g * H:(g + 1) * H])

    # bf16 two-term split of W_hh (value + residual); total bytes == one f32 copy.
    whi = whh_p.astype(jnp.bfloat16)
    wlo = (whh_p - whi.astype(jnp.float32)).astype(jnp.bfloat16)

    wlin_p = jnp.zeros((output_size, Hp), jnp.float32).at[:, :H].set(
        w_lin.astype(jnp.float32))
    blin_p = b_lin.astype(jnp.float32).reshape(1, output_size)

    return (wih_p, b_p, whi, wlo, wlin_p, blin_p)


def lstm_forward_packed(x, wih_p, b_p, whi, wlo, wlin_p, blin_p):
    """x: (T, input_size) float32; packed weights from pack_lstm_params.

    Returns predictions[-1]: (output_size,).
    """
    T, in_size = x.shape
    hp = whi.shape[0]
    out_size = wlin_p.shape[0]

    kernel = functools.partial(lstm_kernel, seq_len=T, in_size=in_size,
                               hp=hp, out_size=out_size)
    vmem = pl.BlockSpec(memory_space=pltpu.MemorySpace.VMEM)
    out = pl.pallas_call(
        kernel,
        out_shape=jax.ShapeDtypeStruct((1, out_size), jnp.float32),
        in_specs=[vmem] * 7,
        out_specs=vmem,
    )(x.astype(jnp.float32), wih_p, b_p, whi, wlo, wlin_p, blin_p)
    return out[0]


def lstm_forward(x, params, input_size, hidden_size, output_size):
    """Convenience wrapper: packs weights then runs the kernel.

    For repeated calls, cache pack_lstm_params(...) and call
    lstm_forward_packed directly (packing costs more than the kernel).
    """
    packed = pack_lstm_params(params, input_size, hidden_size, output_size)
    return lstm_forward_packed(x, *packed)


def lstm_ref(x, params, H, output_size):
    """Pure-JAX reference matching torch.nn.LSTM + Linear semantics."""
    w_ih, w_hh, b_ih, b_hh, w_lin, b_lin = params

    def step(carry, x_t):
        h, c = carry
        gates = w_ih @ x_t + b_ih + w_hh @ h + b_hh
        i = jax.nn.sigmoid(gates[0:H])
        f = jax.nn.sigmoid(gates[H:2 * H])
        g = jnp.tanh(gates[2 * H:3 * H])
        o = jax.nn.sigmoid(gates[3 * H:4 * H])
        c = f * c + i * g
        h = o * jnp.tanh(c)
        return (h, c), h

    init = (jnp.zeros((H,), jnp.float32), jnp.zeros((H,), jnp.float32))
    _, hs = lax.scan(step, init, x)
    preds = hs @ w_lin.T + b_lin
    return preds[-1]


if __name__ == "__main__":
    T = 8
    input_size, hidden_size, output_size = 1, 100, 1

    key = jax.random.PRNGKey(0)
    keys = jax.random.split(key, 7)
    k = 1.0 / (hidden_size ** 0.5)  # PyTorch default uniform(-1/sqrt(H), 1/sqrt(H))
    w_ih = jax.random.uniform(keys[0], (4 * hidden_size, input_size), jnp.float32, -k, k)
    w_hh = jax.random.uniform(keys[1], (4 * hidden_size, hidden_size), jnp.float32, -k, k)
    b_ih = jax.random.uniform(keys[2], (4 * hidden_size,), jnp.float32, -k, k)
    b_hh = jax.random.uniform(keys[3], (4 * hidden_size,), jnp.float32, -k, k)
    w_lin = jax.random.uniform(keys[4], (output_size, hidden_size), jnp.float32, -k, k)
    b_lin = jax.random.uniform(keys[5], (output_size,), jnp.float32, -k, k)
    x = jax.random.normal(keys[6], (T, input_size), jnp.float32)

    params = (w_ih, w_hh, b_ih, b_hh, w_lin, b_lin)

    # Pack/pad/reorder/bf16-split the weights ONCE (hoisted out of the call path).
    packed = pack_lstm_params(params, input_size, hidden_size, output_size)
    packed = tuple(jax.block_until_ready(p) for p in packed)

    fwd = jax.jit(lstm_forward_packed)
    out = fwd(x, *packed)
    out = jax.block_until_ready(out)

    ref = lstm_ref(x, params, hidden_size, output_size)
    assert out.shape == (output_size,), out.shape
    assert jnp.allclose(out, ref, atol=1e-4, rtol=1e-4), (out, ref)

    print("KERNEL_OK")
</pallas_src>

<mosaic_0001>
module attributes {stable_mosaic.version = 11 : i64} {
  func.func @lstm_kernel(%arg0: memref<8x1xf32, #tpu.memory_space<vmem>>, %arg1: memref<1x512xf32, #tpu.memory_space<vmem>>, %arg2: memref<1x512xf32, #tpu.memory_space<vmem>>, %arg3: memref<128x512xbf16, #tpu.memory_space<vmem>>, %arg4: memref<128x512xbf16, #tpu.memory_space<vmem>>, %arg5: memref<1x128xf32, #tpu.memory_space<vmem>>, %arg6: memref<1x1xf32, #tpu.memory_space<vmem>>, %arg7: memref<1x1xf32, #tpu.memory_space<vmem>>) attributes {dimension_semantics = [], scalar_prefetch = 0 : i64, scratch_operands = 0 : i64, tpu.core_type = #tpu.core_type<tc>} {
    %c0 = arith.constant 0 : index
    %c0_0 = arith.constant 0 : index
    %0 = vector.load %arg0[%c0, %c0_0] : memref<8x1xf32, #tpu.memory_space<vmem>>, vector<8x1xf32>
    %c0_1 = arith.constant 0 : index
    %c0_2 = arith.constant 0 : index
    %1 = vector.load %arg1[%c0_1, %c0_2] : memref<1x512xf32, #tpu.memory_space<vmem>>, vector<1x512xf32>
    %2 = vector.broadcast %0 : vector<8x1xf32> to vector<8x512xf32>
    %3 = vector.broadcast %1 : vector<1x512xf32> to vector<8x512xf32>
    %4 = arith.mulf %2, %3 : vector<8x512xf32>
    %c0_3 = arith.constant 0 : index
    %c0_4 = arith.constant 0 : index
    %5 = vector.load %arg2[%c0_3, %c0_4] : memref<1x512xf32, #tpu.memory_space<vmem>>, vector<1x512xf32>
    %6 = vector.broadcast %5 : vector<1x512xf32> to vector<8x512xf32>
    %7 = arith.addf %4, %6 : vector<8x512xf32>
    %cst = arith.constant 0.000000e+00 : f32
    %8 = vector.broadcast %cst : f32 to vector<1x128xf32>
    %cst_5 = arith.constant 0.000000e+00 : f32
    %9 = vector.broadcast %cst_5 : f32 to vector<1x128xf32>
    %10 = arith.truncf %8 : vector<1x128xf32> to vector<1x128xbf16>
    %11 = arith.extf %10 : vector<1x128xbf16> to vector<1x128xf32>
    %12 = arith.subf %8, %11 : vector<1x128xf32>
    %13 = arith.truncf %12 : vector<1x128xf32> to vector<1x128xbf16>
    %c0_6 = arith.constant 0 : index
    %c0_7 = arith.constant 0 : index
    %14 = vector.load %arg3[%c0_6, %c0_7] : memref<128x512xbf16, #tpu.memory_space<vmem>>, vector<128x512xbf16>
    %cst_8 = arith.constant dense<0.000000e+00> : vector<1x512xf32>
    %15 = tpu.matmul %10, %14, %cst_8 {dimension_numbers = #tpu.dot_dimension_numbers<[1], [0], [0], [1], [0, 0, 1, 1], [], []>} : vector<1x128xbf16>, vector<128x512xbf16>, vector<1x512xf32> -> vector<1x512xf32>
    %c0_9 = arith.constant 0 : index
    %c0_10 = arith.constant 0 : index
    %16 = vector.load %arg4[%c0_9, %c0_10] : memref<128x512xbf16, #tpu.memory_space<vmem>>, vector<128x512xbf16>
    %cst_11 = arith.constant dense<0.000000e+00> : vector<1x512xf32>
    %17 = tpu.matmul %10, %16, %cst_11 {dimension_numbers = #tpu.dot_dimension_numbers<[1], [0], [0], [1], [0, 0, 1, 1], [], []>} : vector<1x128xbf16>, vector<128x512xbf16>, vector<1x512xf32> -> vector<1x512xf32>
    %18 = arith.addf %15, %17 : vector<1x512xf32>
    %c0_12 = arith.constant 0 : index
    %c0_13 = arith.constant 0 : index
    %19 = vector.load %arg3[%c0_12, %c0_13] : memref<128x512xbf16, #tpu.memory_space<vmem>>, vector<128x512xbf16>
    %cst_14 = arith.constant dense<0.000000e+00> : vector<1x512xf32>
    %20 = tpu.matmul %13, %19, %cst_14 {dimension_numbers = #tpu.dot_dimension_numbers<[1], [0], [0], [1], [0, 0, 1, 1], [], []>} : vector<1x128xbf16>, vector<128x512xbf16>, vector<1x512xf32> -> vector<1x512xf32>
    %21 = arith.addf %18, %20 : vector<1x512xf32>
    %22 = vector.extract_strided_slice %7 {offsets = [0, 0], sizes = [1, 512], strides = [1, 1]} : vector<8x512xf32> to vector<1x512xf32>
    %23 = arith.addf %22, %21 : vector<1x512xf32>
    %24 = vector.extract_strided_slice %23 {offsets = [0, 0], sizes = [1, 384], strides = [1, 1]} : vector<1x512xf32> to vector<1x384xf32>
    %25 = arith.negf %24 : vector<1x384xf32>
    %26 = math.exp %25 : vector<1x384xf32>
    %cst_15 = arith.constant 1.000000e+00 : f32
    %27 = vector.broadcast %cst_15 : f32 to vector<1x384xf32>
    %28 = arith.addf %27, %26 : vector<1x384xf32>
    %29 = arith.divf %27, %28 : vector<1x384xf32>
    %30 = vector.extract_strided_slice %23 {offsets = [0, 384], sizes = [1, 128], strides = [1, 1]} : vector<1x512xf32> to vector<1x128xf32>
    %31 = math.tanh %30 : vector<1x128xf32>
    %32 = vector.extract_strided_slice %29 {offsets = [0, 0], sizes = [1, 128], strides = [1, 1]} : vector<1x384xf32> to vector<1x128xf32>
    %33 = vector.extract_strided_slice %29 {offsets = [0, 128], sizes = [1, 128], strides = [1, 1]} : vector<1x384xf32> to vector<1x128xf32>
    %34 = vector.extract_strided_slice %29 {offsets = [0, 256], sizes = [1, 128], strides = [1, 1]} : vector<1x384xf32> to vector<1x128xf32>
    %35 = arith.mulf %33, %9 : vector<1x128xf32>
    %36 = arith.mulf %32, %31 : vector<1x128xf32>
    %37 = arith.addf %35, %36 : vector<1x128xf32>
    %38 = math.tanh %37 : vector<1x128xf32>
    %39 = arith.mulf %34, %38 : vector<1x128xf32>
    %40 = arith.truncf %39 : vector<1x128xf32> to vector<1x128xbf16>
    %41 = arith.extf %40 : vector<1x128xbf16> to vector<1x128xf32>
    %42 = arith.subf %39, %41 : vector<1x128xf32>
    %43 = arith.truncf %42 : vector<1x128xf32> to vector<1x128xbf16>
    %c0_16 = arith.constant 0 : index
    %c0_17 = arith.constant 0 : index
    %44 = vector.load %arg3[%c0_16, %c0_17] : memref<128x512xbf16, #tpu.memory_space<vmem>>, vector<128x512xbf16>
    %cst_18 = arith.constant dense<0.000000e+00> : vector<1x512xf32>
    %45 = tpu.matmul %40, %44, %cst_18 {dimension_numbers = #tpu.dot_dimension_numbers<[1], [0], [0], [1], [0, 0, 1, 1], [], []>} : vector<1x128xbf16>, vector<128x512xbf16>, vector<1x512xf32> -> vector<1x512xf32>
    %c0_19 = arith.constant 0 : index
    %c0_20 = arith.constant 0 : index
    %46 = vector.load %arg4[%c0_19, %c0_20] : memref<128x512xbf16, #tpu.memory_space<vmem>>, vector<128x512xbf16>
    %cst_21 = arith.constant dense<0.000000e+00> : vector<1x512xf32>
    %47 = tpu.matmul %40, %46, %cst_21 {dimension_numbers = #tpu.dot_dimension_numbers<[1], [0], [0], [1], [0, 0, 1, 1], [], []>} : vector<1x128xbf16>, vector<128x512xbf16>, vector<1x512xf32> -> vector<1x512xf32>
    %48 = arith.addf %45, %47 : vector<1x512xf32>
    %c0_22 = arith.constant 0 : index
    %c0_23 = arith.constant 0 : index
    %49 = vector.load %arg3[%c0_22, %c0_23] : memref<128x512xbf16, #tpu.memory_space<vmem>>, vector<128x512xbf16>
    %cst_24 = arith.constant dense<0.000000e+00> : vector<1x512xf32>
    %50 = tpu.matmul %43, %49, %cst_24 {dimension_numbers = #tpu.dot_dimension_numbers<[1], [0], [0], [1], [0, 0, 1, 1], [], []>} : vector<1x128xbf16>, vector<128x512xbf16>, vector<1x512xf32> -> vector<1x512xf32>
    %51 = arith.addf %48, %50 : vector<1x512xf32>
    %52 = vector.extract_strided_slice %7 {offsets = [1, 0], sizes = [1, 512], strides = [1, 1]} : vector<8x512xf32> to vector<1x512xf32>
    %53 = arith.addf %52, %51 : vector<1x512xf32>
    %54 = vector.extract_strided_slice %53 {offsets = [0, 0], sizes = [1, 384], strides = [1, 1]} : vector<1x512xf32> to vector<1x384xf32>
    %55 = arith.negf %54 : vector<1x384xf32>
    %56 = math.exp %55 : vector<1x384xf32>
    %cst_25 = arith.constant 1.000000e+00 : f32
    %57 = vector.broadcast %cst_25 : f32 to vector<1x384xf32>
    %58 = arith.addf %57, %56 : vector<1x384xf32>
    %59 = arith.divf %57, %58 : vector<1x384xf32>
    %60 = vector.extract_strided_slice %53 {offsets = [0, 384], sizes = [1, 128], strides = [1, 1]} : vector<1x512xf32> to vector<1x128xf32>
    %61 = math.tanh %60 : vector<1x128xf32>
    %62 = vector.extract_strided_slice %59 {offsets = [0, 0], sizes = [1, 128], strides = [1, 1]} : vector<1x384xf32> to vector<1x128xf32>
    %63 = vector.extract_strided_slice %59 {offsets = [0, 128], sizes = [1, 128], strides = [1, 1]} : vector<1x384xf32> to vector<1x128xf32>
    %64 = vector.extract_strided_slice %59 {offsets = [0, 256], sizes = [1, 128], strides = [1, 1]} : vector<1x384xf32> to vector<1x128xf32>
    %65 = arith.mulf %63, %37 : vector<1x128xf32>
    %66 = arith.mulf %62, %61 : vector<1x128xf32>
    %67 = arith.addf %65, %66 : vector<1x128xf32>
    %68 = math.tanh %67 : vector<1x128xf32>
    %69 = arith.mulf %64, %68 : vector<1x128xf32>
    %70 = arith.truncf %69 : vector<1x128xf32> to vector<1x128xbf16>
    %71 = arith.extf %70 : vector<1x128xbf16> to vector<1x128xf32>
    %72 = arith.subf %69, %71 : vector<1x128xf32>
    %73 = arith.truncf %72 : vector<1x128xf32> to vector<1x128xbf16>
    %c0_26 = arith.constant 0 : index
    %c0_27 = arith.constant 0 : index
    %74 = vector.load %arg3[%c0_26, %c0_27] : memref<128x512xbf16, #tpu.memory_space<vmem>>, vector<128x512xbf16>
    %cst_28 = arith.constant dense<0.000000e+00> : vector<1x512xf32>
    %75 = tpu.matmul %70, %74, %cst_28 {dimension_numbers = #tpu.dot_dimension_numbers<[1], [0], [0], [1], [0, 0, 1, 1], [], []>} : vector<1x128xbf16>, vector<128x512xbf16>, vector<1x512xf32> -> vector<1x512xf32>
    %c0_29 = arith.constant 0 : index
    %c0_30 = arith.constant 0 : index
    %76 = vector.load %arg4[%c0_29, %c0_30] : memref<128x512xbf16, #tpu.memory_space<vmem>>, vector<128x512xbf16>
    %cst_31 = arith.constant dense<0.000000e+00> : vector<1x512xf32>
    %77 = tpu.matmul %70, %76, %cst_31 {dimension_numbers = #tpu.dot_dimension_numbers<[1], [0], [0], [1], [0, 0, 1, 1], [], []>} : vector<1x128xbf16>, vector<128x512xbf16>, vector<1x512xf32> -> vector<1x512xf32>
    %78 = arith.addf %75, %77 : vector<1x512xf32>
    %c0_32 = arith.constant 0 : index
    %c0_33 = arith.constant 0 : index
    %79 = vector.load %arg3[%c0_32, %c0_33] : memref<128x512xbf16, #tpu.memory_space<vmem>>, vector<128x512xbf16>
    %cst_34 = arith.constant dense<0.000000e+00> : vector<1x512xf32>
    %80 = tpu.matmul %73, %79, %cst_34 {dimension_numbers = #tpu.dot_dimension_numbers<[1], [0], [0], [1], [0, 0, 1, 1], [], []>} : vector<1x128xbf16>, vector<128x512xbf16>, vector<1x512xf32> -> vector<1x512xf32>
    %81 = arith.addf %78, %80 : vector<1x512xf32>
    %82 = vector.extract_strided_slice %7 {offsets = [2, 0], sizes = [1, 512], strides = [1, 1]} : vector<8x512xf32> to vector<1x512xf32>
    %83 = arith.addf %82, %81 : vector<1x512xf32>
    %84 = vector.extract_strided_slice %83 {offsets = [0, 0], sizes = [1, 384], strides = [1, 1]} : vector<1x512xf32> to vector<1x384xf32>
    %85 = arith.negf %84 : vector<1x384xf32>
    %86 = math.exp %85 : vector<1x384xf32>
    %cst_35 = arith.constant 1.000000e+00 : f32
    %87 = vector.broadcast %cst_35 : f32 to vector<1x384xf32>
    %88 = arith.addf %87, %86 : vector<1x384xf32>
    %89 = arith.divf %87, %88 : vector<1x384xf32>
    %90 = vector.extract_strided_slice %83 {offsets = [0, 384], sizes = [1, 128], strides = [1, 1]} : vector<1x512xf32> to vector<1x128xf32>
    %91 = math.tanh %90 : vector<1x128xf32>
    %92 = vector.extract_strided_slice %89 {offsets = [0, 0], sizes = [1, 128], strides = [1, 1]} : vector<1x384xf32> to vector<1x128xf32>
    %93 = vector.extract_strided_slice %89 {offsets = [0, 128], sizes = [1, 128], strides = [1, 1]} : vector<1x384xf32> to vector<1x128xf32>
    %94 = vector.extract_strided_slice %89 {offsets = [0, 256], sizes = [1, 128], strides = [1, 1]} : vector<1x384xf32> to vector<1x128xf32>
    %95 = arith.mulf %93, %67 : vector<1x128xf32>
    %96 = arith.mulf %92, %91 : vector<1x128xf32>
    %97 = arith.addf %95, %96 : vector<1x128xf32>
    %98 = math.tanh %97 : vector<1x128xf32>
    %99 = arith.mulf %94, %98 : vector<1x128xf32>
    %100 = arith.truncf %99 : vector<1x128xf32> to vector<1x128xbf16>
    %101 = arith.extf %100 : vector<1x128xbf16> to vector<1x128xf32>
    %102 = arith.subf %99, %101 : vector<1x128xf32>
    %103 = arith.truncf %102 : vector<1x128xf32> to vector<1x128xbf16>
    %c0_36 = arith.constant 0 : index
    %c0_37 = arith.constant 0 : index
    %104 = vector.load %arg3[%c0_36, %c0_37] : memref<128x512xbf16, #tpu.memory_space<vmem>>, vector<128x512xbf16>
    %cst_38 = arith.constant dense<0.000000e+00> : vector<1x512xf32>
    %105 = tpu.matmul %100, %104, %cst_38 {dimension_numbers = #tpu.dot_dimension_numbers<[1], [0], [0], [1], [0, 0, 1, 1], [], []>} : vector<1x128xbf16>, vector<128x512xbf16>, vector<1x512xf32> -> vector<1x512xf32>
    %c0_39 = arith.constant 0 : index
    %c0_40 = arith.constant 0 : index
    %106 = vector.load %arg4[%c0_39, %c0_40] : memref<128x512xbf16, #tpu.memory_space<vmem>>, vector<128x512xbf16>
    %cst_41 = arith.constant dense<0.000000e+00> : vector<1x512xf32>
    %107 = tpu.matmul %100, %106, %cst_41 {dimension_numbers = #tpu.dot_dimension_numbers<[1], [0], [0], [1], [0, 0, 1, 1], [], []>} : vector<1x128xbf16>, vector<128x512xbf16>, vector<1x512xf32> -> vector<1x512xf32>
    %108 = arith.addf %105, %107 : vector<1x512xf32>
    %c0_42 = arith.constant 0 : index
    %c0_43 = arith.constant 0 : index
    %109 = vector.load %arg3[%c0_42, %c0_43] : memref<128x512xbf16, #tpu.memory_space<vmem>>, vector<128x512xbf16>
    %cst_44 = arith.constant dense<0.000000e+00> : vector<1x512xf32>
    %110 = tpu.matmul %103, %109, %cst_44 {dimension_numbers = #tpu.dot_dimension_numbers<[1], [0], [0], [1], [0, 0, 1, 1], [], []>} : vector<1x128xbf16>, vector<128x512xbf16>, vector<1x512xf32> -> vector<1x512xf32>
    %111 = arith.addf %108, %110 : vector<1x512xf32>
    %112 = vector.extract_strided_slice %7 {offsets = [3, 0], sizes = [1, 512], strides = [1, 1]} : vector<8x512xf32> to vector<1x512xf32>
    %113 = arith.addf %112, %111 : vector<1x512xf32>
    %114 = vector.extract_strided_slice %113 {offsets = [0, 0], sizes = [1, 384], strides = [1, 1]} : vector<1x512xf32> to vector<1x384xf32>
    %115 = arith.negf %114 : vector<1x384xf32>
    %116 = math.exp %115 : vector<1x384xf32>
    %cst_45 = arith.constant 1.000000e+00 : f32
    %117 = vector.broadcast %cst_45 : f32 to vector<1x384xf32>
    %118 = arith.addf %117, %116 : vector<1x384xf32>
    %119 = arith.divf %117, %118 : vector<1x384xf32>
    %120 = vector.extract_strided_slice %113 {offsets = [0, 384], sizes = [1, 128], strides = [1, 1]} : vector<1x512xf32> to vector<1x128xf32>
    %121 = math.tanh %120 : vector<1x128xf32>
    %122 = vector.extract_strided_slice %119 {offsets = [0, 0], sizes = [1, 128], strides = [1, 1]} : vector<1x384xf32> to vector<1x128xf32>
    %123 = vector.extract_strided_slice %119 {offsets = [0, 128], sizes = [1, 128], strides = [1, 1]} : vector<1x384xf32> to vector<1x128xf32>
    %124 = vector.extract_strided_slice %119 {offsets = [0, 256], sizes = [1, 128], strides = [1, 1]} : vector<1x384xf32> to vector<1x128xf32>
    %125 = arith.mulf %123, %97 : vector<1x128xf32>
    %126 = arith.mulf %122, %121 : vector<1x128xf32>
    %127 = arith.addf %125, %126 : vector<1x128xf32>
    %128 = math.tanh %127 : vector<1x128xf32>
    %129 = arith.mulf %124, %128 : vector<1x128xf32>
    %130 = arith.truncf %129 : vector<1x128xf32> to vector<1x128xbf16>
    %131 = arith.extf %130 : vector<1x128xbf16> to vector<1x128xf32>
    %132 = arith.subf %129, %131 : vector<1x128xf32>
    %133 = arith.truncf %132 : vector<1x128xf32> to vector<1x128xbf16>
    %c0_46 = arith.constant 0 : index
    %c0_47 = arith.constant 0 : index
    %134 = vector.load %arg3[%c0_46, %c0_47] : memref<128x512xbf16, #tpu.memory_space<vmem>>, vector<128x512xbf16>
    %cst_48 = arith.constant dense<0.000000e+00> : vector<1x512xf32>
    %135 = tpu.matmul %130, %134, %cst_48 {dimension_numbers = #tpu.dot_dimension_numbers<[1], [0], [0], [1], [0, 0, 1, 1], [], []>} : vector<1x128xbf16>, vector<128x512xbf16>, vector<1x512xf32> -> vector<1x512xf32>
    %c0_49 = arith.constant 0 : index
    %c0_50 = arith.constant 0 : index
    %136 = vector.load %arg4[%c0_49, %c0_50] : memref<128x512xbf16, #tpu.memory_space<vmem>>, vector<128x512xbf16>
    %cst_51 = arith.constant dense<0.000000e+00> : vector<1x512xf32>
    %137 = tpu.matmul %130, %136, %cst_51 {dimension_numbers = #tpu.dot_dimension_numbers<[1], [0], [0], [1], [0, 0, 1, 1], [], []>} : vector<1x128xbf16>, vector<128x512xbf16>, vector<1x512xf32> -> vector<1x512xf32>
    %138 = arith.addf %135, %137 : vector<1x512xf32>
    %c0_52 = arith.constant 0 : index
    %c0_53 = arith.constant 0 : index
    %139 = vector.load %arg3[%c0_52, %c0_53] : memref<128x512xbf16, #tpu.memory_space<vmem>>, vector<128x512xbf16>
    %cst_54 = arith.constant dense<0.000000e+00> : vector<1x512xf32>
    %140 = tpu.matmul %133, %139, %cst_54 {dimension_numbers = #tpu.dot_dimension_numbers<[1], [0], [0], [1], [0, 0, 1, 1], [], []>} : vector<1x128xbf16>, vector<128x512xbf16>, vector<1x512xf32> -> vector<1x512xf32>
    %141 = arith.addf %138, %140 : vector<1x512xf32>
    %142 = vector.extract_strided_slice %7 {offsets = [4, 0], sizes = [1, 512], strides = [1, 1]} : vector<8x512xf32> to vector<1x512xf32>
    %143 = arith.addf %142, %141 : vector<1x512xf32>
    %144 = vector.extract_strided_slice %143 {offsets = [0, 0], sizes = [1, 384], strides = [1, 1]} : vector<1x512xf32> to vector<1x384xf32>
    %145 = arith.negf %144 : vector<1x384xf32>
    %146 = math.exp %145 : vector<1x384xf32>
    %cst_55 = arith.constant 1.000000e+00 : f32
    %147 = vector.broadcast %cst_55 : f32 to vector<1x384xf32>
    %148 = arith.addf %147, %146 : vector<1x384xf32>
    %149 = arith.divf %147, %148 : vector<1x384xf32>
    %150 = vector.extract_strided_slice %143 {offsets = [0, 384], sizes = [1, 128], strides = [1, 1]} : vector<1x512xf32> to vector<1x128xf32>
    %151 = math.tanh %150 : vector<1x128xf32>
    %152 = vector.extract_strided_slice %149 {offsets = [0, 0], sizes = [1, 128], strides = [1, 1]} : vector<1x384xf32> to vector<1x128xf32>
    %153 = vector.extract_strided_slice %149 {offsets = [0, 128], sizes = [1, 128], strides = [1, 1]} : vector<1x384xf32> to vector<1x128xf32>
    %154 = vector.extract_strided_slice %149 {offsets = [0, 256], sizes = [1, 128], strides = [1, 1]} : vector<1x384xf32> to vector<1x128xf32>
    %155 = arith.mulf %153, %127 : vector<1x128xf32>
    %156 = arith.mulf %152, %151 : vector<1x128xf32>
    %157 = arith.addf %155, %156 : vector<1x128xf32>
    %158 = math.tanh %157 : vector<1x128xf32>
    %159 = arith.mulf %154, %158 : vector<1x128xf32>
    %160 = arith.truncf %159 : vector<1x128xf32> to vector<1x128xbf16>
    %161 = arith.extf %160 : vector<1x128xbf16> to vector<1x128xf32>
    %162 = arith.subf %159, %161 : vector<1x128xf32>
    %163 = arith.truncf %162 : vector<1x128xf32> to vector<1x128xbf16>
    %c0_56 = arith.constant 0 : index
    %c0_57 = arith.constant 0 : index
    %164 = vector.load %arg3[%c0_56, %c0_57] : memref<128x512xbf16, #tpu.memory_space<vmem>>, vector<128x512xbf16>
    %cst_58 = arith.constant dense<0.000000e+00> : vector<1x512xf32>
    %165 = tpu.matmul %160, %164, %cst_58 {dimension_numbers = #tpu.dot_dimension_numbers<[1], [0], [0], [1], [0, 0, 1, 1], [], []>} : vector<1x128xbf16>, vector<128x512xbf16>, vector<1x512xf32> -> vector<1x512xf32>
    %c0_59 = arith.constant 0 : index
    %c0_60 = arith.constant 0 : index
    %166 = vector.load %arg4[%c0_59, %c0_60] : memref<128x512xbf16, #tpu.memory_space<vmem>>, vector<128x512xbf16>
    %cst_61 = arith.constant dense<0.000000e+00> : vector<1x512xf32>
    %167 = tpu.matmul %160, %166, %cst_61 {dimension_numbers = #tpu.dot_dimension_numbers<[1], [0], [0], [1], [0, 0, 1, 1], [], []>} : vector<1x128xbf16>, vector<128x512xbf16>, vector<1x512xf32> -> vector<1x512xf32>
    %168 = arith.addf %165, %167 : vector<1x512xf32>
    %c0_62 = arith.constant 0 : index
    %c0_63 = arith.constant 0 : index
    %169 = vector.load %arg3[%c0_62, %c0_63] : memref<128x512xbf16, #tpu.memory_space<vmem>>, vector<128x512xbf16>
    %cst_64 = arith.constant dense<0.000000e+00> : vector<1x512xf32>
    %170 = tpu.matmul %163, %169, %cst_64 {dimension_numbers = #tpu.dot_dimension_numbers<[1], [0], [0], [1], [0, 0, 1, 1], [], []>} : vector<1x128xbf16>, vector<128x512xbf16>, vector<1x512xf32> -> vector<1x512xf32>
    %171 = arith.addf %168, %170 : vector<1x512xf32>
    %172 = vector.extract_strided_slice %7 {offsets = [5, 0], sizes = [1, 512], strides = [1, 1]} : vector<8x512xf32> to vector<1x512xf32>
    %173 = arith.addf %172, %171 : vector<1x512xf32>
    %174 = vector.extract_strided_slice %173 {offsets = [0, 0], sizes = [1, 384], strides = [1, 1]} : vector<1x512xf32> to vector<1x384xf32>
    %175 = arith.negf %174 : vector<1x384xf32>
    %176 = math.exp %175 : vector<1x384xf32>
    %cst_65 = arith.constant 1.000000e+00 : f32
    %177 = vector.broadcast %cst_65 : f32 to vector<1x384xf32>
    %178 = arith.addf %177, %176 : vector<1x384xf32>
    %179 = arith.divf %177, %178 : vector<1x384xf32>
    %180 = vector.extract_strided_slice %173 {offsets = [0, 384], sizes = [1, 128], strides = [1, 1]} : vector<1x512xf32> to vector<1x128xf32>
    %181 = math.tanh %180 : vector<1x128xf32>
    %182 = vector.extract_strided_slice %179 {offsets = [0, 0], sizes = [1, 128], strides = [1, 1]} : vector<1x384xf32> to vector<1x128xf32>
    %183 = vector.extract_strided_slice %179 {offsets = [0, 128], sizes = [1, 128], strides = [1, 1]} : vector<1x384xf32> to vector<1x128xf32>
    %184 = vector.extract_strided_slice %179 {offsets = [0, 256], sizes = [1, 128], strides = [1, 1]} : vector<1x384xf32> to vector<1x128xf32>
    %185 = arith.mulf %183, %157 : vector<1x128xf32>
    %186 = arith.mulf %182, %181 : vector<1x128xf32>
    %187 = arith.addf %185, %186 : vector<1x128xf32>
    %188 = math.tanh %187 : vector<1x128xf32>
    %189 = arith.mulf %184, %188 : vector<1x128xf32>
    %190 = arith.truncf %189 : vector<1x128xf32> to vector<1x128xbf16>
    %191 = arith.extf %190 : vector<1x128xbf16> to vector<1x128xf32>
    %192 = arith.subf %189, %191 : vector<1x128xf32>
    %193 = arith.truncf %192 : vector<1x128xf32> to vector<1x128xbf16>
    %c0_66 = arith.constant 0 : index
    %c0_67 = arith.constant 0 : index
    %194 = vector.load %arg3[%c0_66, %c0_67] : memref<128x512xbf16, #tpu.memory_space<vmem>>, vector<128x512xbf16>
    %cst_68 = arith.constant dense<0.000000e+00> : vector<1x512xf32>
    %195 = tpu.matmul %190, %194, %cst_68 {dimension_numbers = #tpu.dot_dimension_numbers<[1], [0], [0], [1], [0, 0, 1, 1], [], []>} : vector<1x128xbf16>, vector<128x512xbf16>, vector<1x512xf32> -> vector<1x512xf32>
    %c0_69 = arith.constant 0 : index
    %c0_70 = arith.constant 0 : index
    %196 = vector.load %arg4[%c0_69, %c0_70] : memref<128x512xbf16, #tpu.memory_space<vmem>>, vector<128x512xbf16>
    %cst_71 = arith.constant dense<0.000000e+00> : vector<1x512xf32>
    %197 = tpu.matmul %190, %196, %cst_71 {dimension_numbers = #tpu.dot_dimension_numbers<[1], [0], [0], [1], [0, 0, 1, 1], [], []>} : vector<1x128xbf16>, vector<128x512xbf16>, vector<1x512xf32> -> vector<1x512xf32>
    %198 = arith.addf %195, %197 : vector<1x512xf32>
    %c0_72 = arith.constant 0 : index
    %c0_73 = arith.constant 0 : index
    %199 = vector.load %arg3[%c0_72, %c0_73] : memref<128x512xbf16, #tpu.memory_space<vmem>>, vector<128x512xbf16>
    %cst_74 = arith.constant dense<0.000000e+00> : vector<1x512xf32>
    %200 = tpu.matmul %193, %199, %cst_74 {dimension_numbers = #tpu.dot_dimension_numbers<[1], [0], [0], [1], [0, 0, 1, 1], [], []>} : vector<1x128xbf16>, vector<128x512xbf16>, vector<1x512xf32> -> vector<1x512xf32>
    %201 = arith.addf %198, %200 : vector<1x512xf32>
    %202 = vector.extract_strided_slice %7 {offsets = [6, 0], sizes = [1, 512], strides = [1, 1]} : vector<8x512xf32> to vector<1x512xf32>
    %203 = arith.addf %202, %201 : vector<1x512xf32>
    %204 = vector.extract_strided_slice %203 {offsets = [0, 0], sizes = [1, 384], strides = [1, 1]} : vector<1x512xf32> to vector<1x384xf32>
    %205 = arith.negf %204 : vector<1x384xf32>
    %206 = math.exp %205 : vector<1x384xf32>
    %cst_75 = arith.constant 1.000000e+00 : f32
    %207 = vector.broadcast %cst_75 : f32 to vector<1x384xf32>
    %208 = arith.addf %207, %206 : vector<1x384xf32>
    %209 = arith.divf %207, %208 : vector<1x384xf32>
    %210 = vector.extract_strided_slice %203 {offsets = [0, 384], sizes = [1, 128], strides = [1, 1]} : vector<1x512xf32> to vector<1x128xf32>
    %211 = math.tanh %210 : vector<1x128xf32>
    %212 = vector.extract_strided_slice %209 {offsets = [0, 0], sizes = [1, 128], strides = [1, 1]} : vector<1x384xf32> to vector<1x128xf32>
    %213 = vector.extract_strided_slice %209 {offsets = [0, 128], sizes = [1, 128], strides = [1, 1]} : vector<1x384xf32> to vector<1x128xf32>
    %214 = vector.extract_strided_slice %209 {offsets = [0, 256], sizes = [1, 128], strides = [1, 1]} : vector<1x384xf32> to vector<1x128xf32>
    %215 = arith.mulf %213, %187 : vector<1x128xf32>
    %216 = arith.mulf %212, %211 : vector<1x128xf32>
    %217 = arith.addf %215, %216 : vector<1x128xf32>
    %218 = math.tanh %217 : vector<1x128xf32>
    %219 = arith.mulf %214, %218 : vector<1x128xf32>
    %220 = arith.truncf %219 : vector<1x128xf32> to vector<1x128xbf16>
    %221 = arith.extf %220 : vector<1x128xbf16> to vector<1x128xf32>
    %222 = arith.subf %219, %221 : vector<1x128xf32>
    %223 = arith.truncf %222 : vector<1x128xf32> to vector<1x128xbf16>
    %c0_76 = arith.constant 0 : index
    %c0_77 = arith.constant 0 : index
    %224 = vector.load %arg3[%c0_76, %c0_77] : memref<128x512xbf16, #tpu.memory_space<vmem>>, vector<128x512xbf16>
    %cst_78 = arith.constant dense<0.000000e+00> : vector<1x512xf32>
    %225 = tpu.matmul %220, %224, %cst_78 {dimension_numbers = #tpu.dot_dimension_numbers<[1], [0], [0], [1], [0, 0, 1, 1], [], []>} : vector<1x128xbf16>, vector<128x512xbf16>, vector<1x512xf32> -> vector<1x512xf32>
    %c0_79 = arith.constant 0 : index
    %c0_80 = arith.constant 0 : index
    %226 = vector.load %arg4[%c0_79, %c0_80] : memref<128x512xbf16, #tpu.memory_space<vmem>>, vector<128x512xbf16>
    %cst_81 = arith.constant dense<0.000000e+00> : vector<1x512xf32>
    %227 = tpu.matmul %220, %226, %cst_81 {dimension_numbers = #tpu.dot_dimension_numbers<[1], [0], [0], [1], [0, 0, 1, 1], [], []>} : vector<1x128xbf16>, vector<128x512xbf16>, vector<1x512xf32> -> vector<1x512xf32>
    %228 = arith.addf %225, %227 : vector<1x512xf32>
    %c0_82 = arith.constant 0 : index
    %c0_83 = arith.constant 0 : index
    %229 = vector.load %arg3[%c0_82, %c0_83] : memref<128x512xbf16, #tpu.memory_space<vmem>>, vector<128x512xbf16>
    %cst_84 = arith.constant dense<0.000000e+00> : vector<1x512xf32>
    %230 = tpu.matmul %223, %229, %cst_84 {dimension_numbers = #tpu.dot_dimension_numbers<[1], [0], [0], [1], [0, 0, 1, 1], [], []>} : vector<1x128xbf16>, vector<128x512xbf16>, vector<1x512xf32> -> vector<1x512xf32>
    %231 = arith.addf %228, %230 : vector<1x512xf32>
    %232 = vector.extract_strided_slice %7 {offsets = [7, 0], sizes = [1, 512], strides = [1, 1]} : vector<8x512xf32> to vector<1x512xf32>
    %233 = arith.addf %232, %231 : vector<1x512xf32>
    %234 = vector.extract_strided_slice %233 {offsets = [0, 0], sizes = [1, 384], strides = [1, 1]} : vector<1x512xf32> to vector<1x384xf32>
    %235 = arith.negf %234 : vector<1x384xf32>
    %236 = math.exp %235 : vector<1x384xf32>
    %cst_85 = arith.constant 1.000000e+00 : f32
    %237 = vector.broadcast %cst_85 : f32 to vector<1x384xf32>
    %238 = arith.addf %237, %236 : vector<1x384xf32>
    %239 = arith.divf %237, %238 : vector<1x384xf32>
    %240 = vector.extract_strided_slice %233 {offsets = [0, 384], sizes = [1, 128], strides = [1, 1]} : vector<1x512xf32> to vector<1x128xf32>
    %241 = math.tanh %240 : vector<1x128xf32>
    %242 = vector.extract_strided_slice %239 {offsets = [0, 0], sizes = [1, 128], strides = [1, 1]} : vector<1x384xf32> to vector<1x128xf32>
    %243 = vector.extract_strided_slice %239 {offsets = [0, 128], sizes = [1, 128], strides = [1, 1]} : vector<1x384xf32> to vector<1x128xf32>
    %244 = vector.extract_strided_slice %239 {offsets = [0, 256], sizes = [1, 128], strides = [1, 1]} : vector<1x384xf32> to vector<1x128xf32>
    %245 = arith.mulf %243, %217 : vector<1x128xf32>
    %246 = arith.mulf %242, %241 : vector<1x128xf32>
    %247 = arith.addf %245, %246 : vector<1x128xf32>
    %248 = math.tanh %247 : vector<1x128xf32>
    %249 = arith.mulf %244, %248 : vector<1x128xf32>
    %c0_86 = arith.constant 0 : index
    %c0_87 = arith.constant 0 : index
    %250 = vector.load %arg5[%c0_86, %c0_87] : memref<1x128xf32, #tpu.memory_space<vmem>>, vector<1x128xf32>
    %251 = arith.mulf %249, %250 : vector<1x128xf32>
    %cst_88 = arith.constant dense<0.000000e+00> : vector<1xf32>
    %252 = vector.multi_reduction <add>, %251, %cst_88 [1] : vector<1x128xf32> to vector<1xf32>
    %253 = vector.shape_cast %252 : vector<1xf32> to vector<1x1xf32>
    %c0_89 = arith.constant 0 : index
    %c0_90 = arith.constant 0 : index
    %254 = vector.load %arg6[%c0_89, %c0_90] : memref<1x1xf32, #tpu.memory_space<vmem>>, vector<1x1xf32>
    %255 = arith.addf %253, %254 : vector<1x1xf32>
    %c0_91 = arith.constant 0 : index
    %c0_92 = arith.constant 0 : index
    %256 = vector.load %arg7[%c0_91, %c0_92] : memref<1x1xf32, #tpu.memory_space<vmem>>, vector<1x1xf32>
    tpu.vector_store %arg7[%c0_91, %c0_92], %255 {strides = array<i32>} : memref<1x1xf32, #tpu.memory_space<vmem>>, vector<1x1xf32>,
    return
  }
}

</mosaic_0001>

<bundles_post_ra>
// kernel: lstm_forward_packed.1
= control target key start
LH: loop header
LB: loop body
LE: loop exit
PB: predicated region body
PF: predicated region fallthrough
CT: control target
= control target key end

     0   :  { %s4879_s0 = inlined_call_operand.vmem [shape: f32[8,1], index: 0, kind: input, shape index: {}]   ;;  %s4880_s1 = inlined_call_operand.vmem [shape: f32[1,512], index: 1, kind: input, shape index: {}]   ;;  %s4881_s2 = inlined_call_operand.vmem [shape: f32[1,512], index: 2, kind: input, shape index: {}]   ;;  %s4882_s3 = inlined_call_operand.hbm [shape: bf16[128,512], index: 3, kind: input, shape index: {}]   ;;  %s4883_s4 = inlined_call_operand.hbm [shape: bf16[128,512], index: 4, kind: input, shape index: {}]   ;;  %s4884_s5 = inlined_call_operand.vmem [shape: f32[1,128], index: 5, kind: input, shape index: {}]   ;;  %s4885_s6 = inlined_call_operand.<no memory space> [shape: f32[1,1], index: 6, kind: input, shape index: {}]   ;;  %s4886_s7 = inlined_call_operand.hbm [shape: f32[1,1], index: 7, kind: output, shape index: {}]  }
   0x1   :  { %v12_v0 = vstv %s4885_s6 }
   0x2   :  { %13 = vst [vmem:[#allocation2] sm:$0x1] %v12_v0 }
   0x3   :  { %14 = vsyncpa [#allocation4], 0 }
   0x4   :  { %15 = vsyncpa [#allocation7], 0 }
   0x5   :  { %16 = vsyncpa [#allocation5], 0  ;;  %s3456_s26 = smov [#allocation3]  }
   0x6   :  { %s28_s27 = sshll.u32 %s3456_s26, 4  ;;  %s29_s27 = int_to_ptr.vmem [resolvable:$true] %s28_s27 }
   0x7   :  { %s3398_s28 = scalar_lea.vmem %s29_s27, 4096  ;;  %p3403_p1 = scmp.lt.s32.totalorder %s29_s27, %s29_s27 }
   0x8   :  { %p3399_p0 = scmp.ne.s32.totalorder %s29_s27, %s3398_s28  ;;  %p3404_p2 = scmp.lt.s32.totalorder %s3398_s28, %s3398_s28 }
   0xa   :  { %p3405_p3 = por %p3404_p2, %p3403_p1 }
   0xc   :  { %p3406_p4 = pnand %p3405_p3, %p3399_p0 }
   0xe   :  { %3409 = shalt.err (!%p3406_p4)
}
   0xf   :  { %s3457_s29 = smov 256   ;;  %s3458_s30 = smov 16  }
  0x10   :  { %34 = dma.hbm_to_vmem [thread:$0]  %s4882_s3, 4096, %s29_s27, [#allocation4], %s3457_s29, %s3457_s29, %s3458_s30  }
  0x11   :  { %s3459_s6 = smov [#allocation6]  }
  0x12   :  { %s40_s10 = sshll.u32 %s3459_s6, 4  ;;  %s41_s10 = int_to_ptr.vmem [resolvable:$true] %s40_s10 }
  0x13   :  { %s3418_s11 = scalar_lea.vmem %s41_s10, 4096  ;;  %p3423_p6 = scmp.lt.s32.totalorder %s41_s10, %s41_s10 }
  0x14   :  { %p3419_p5 = scmp.ne.s32.totalorder %s41_s10, %s3418_s11  ;;  %p3424_p7 = scmp.lt.s32.totalorder %s3418_s11, %s3418_s11 }
  0x16   :  { %p3425_p8 = por %p3424_p7, %p3423_p6 }
  0x18   :  { %p3426_p9 = pnand %p3425_p8, %p3419_p5 }
  0x1a   :  { %3429 = shalt.err (!%p3426_p9)
}
  0x1b   :  { %46 = dma.hbm_to_vmem [thread:$0]  %s4883_s4, 4096, %s41_s10, [#allocation7], %s3457_s29, %s3457_s29, %s3458_s30  }
  0x1c   :  { %3450 = dma.done.wait [#allocation4], 4096  }
  0x1d   :  { %3451 = vsyncadd [#allocation4], 4294963200 }
  0x1e   :  { %3452 = dma.done.wait [#allocation7], 4096  }
  0x1f   :  { %3453 = vsyncadd [#allocation7], 4294963200  ;;  %v4887_v1 = vmov 0   ;;  %v3514_v2 = vld [vmem:[#allocation6 + $0xe4] ss:$16 sps:$4 sm:$0xff]   ;;  %vm2911_vm0 = vcmask 1047559  }
  0x20   :  { %372 = vmatprep.mubr.bf16.mxu0 %v4887_v1  ;;  %413 = vmatprep.mubr.bf16.mxu1 %v4887_v1  ;;  %4987 = vst [vmem:[#allocation12_spill] sm:$0xff] %v3514_v2  ;;  %v3516_v3 = vld [vmem:[#allocation6 + $0xec] ss:$16 sps:$4 sm:$0xff]   ;;  %v3519_v4 = vld [vmem:[#allocation6 + $0xe0] ss:$16 sps:$4 sm:$0xff]   ;;  %s3461_s17 = smov [#allocation8]  }
  0x21   :  { %3037 = vset.pattern.permute.xlu0 %v4887_v1  ;;  %4988 = vst [vmem:[#allocation13_spill] sm:$0xff] %v3516_v3  ;;  %340 = vmatprep.subr.bf16.mxu0 %v3514_v2  ;;  %4989 = vst [vmem:[#allocation14_spill] sm:$0xff] %v3519_v4  ;;  %v3521_v5 = vld [vmem:[#allocation6 + $0xe8] ss:$16 sps:$4 sm:$0xff]   ;;  %v3524_v6 = vld [vmem:[#allocation6 + $0xc4] ss:$16 sps:$4 sm:$0xff]  }
  0x22   :  { %4990 = vst [vmem:[#allocation15_spill] sm:$0xff] %v3521_v5  ;;  %381 = vmatprep.subr.bf16.mxu1 %v3516_v3  ;;  %4991 = vst [vmem:[#allocation16_spill] sm:$0xff] %v3524_v6  ;;  %341 = vmatpush1.bf16.msra.mxu0 %v3519_v4  ;;  %v3528_v7 = vld [vmem:[#allocation6 + $0xcc] ss:$16 sps:$4 sm:$0xff]   ;;  %v3530_v8 = vld [vmem:[#allocation6 + $0xc0] ss:$16 sps:$4 sm:$0xff]  }
  0x23   :  { %382 = vmatpush1.bf16.msra.mxu1 %v3521_v5  ;;  %4992 = vst [vmem:[#allocation17_spill] sm:$0xff] %v3528_v7  ;;  %4993 = vst [vmem:[#allocation18_spill] sm:$0xff] %v3530_v8  ;;  %342 = vmatprep.subr.bf16.mxu0 %v3524_v6  ;;  %v3533_v9 = vld [vmem:[#allocation6 + $0xc8] ss:$16 sps:$4 sm:$0xff]   ;;  %v3536_v10 = vld [vmem:[#allocation6 + $0xa4] ss:$16 sps:$4 sm:$0xff]  }
  0x24   :  { %4994 = vst [vmem:[#allocation19_spill] sm:$0xff] %v3533_v9  ;;  %383 = vmatprep.subr.bf16.mxu1 %v3528_v7  ;;  %4995 = vst [vmem:[#allocation20_spill] sm:$0xff] %v3536_v10  ;;  %v3538_v11 = vld [vmem:[#allocation6 + $0xac] ss:$16 sps:$4 sm:$0xff]   ;;  %v3540_v12 = vld [vmem:[#allocation6 + $0xa0] ss:$16 sps:$4 sm:$0xff]  }
  0x25   :  { %4996 = vst [vmem:[#allocation21_spill] sm:$0xff] %v3538_v11  ;;  %4997 = vst [vmem:[#allocation22_spill] sm:$0xff] %v3540_v12  ;;  %v3542_v13 = vld [vmem:[#allocation6 + $0xa8] ss:$16 sps:$4 sm:$0xff]   ;;  %v3546_v14 = vld [vmem:[#allocation6 + $0x84] ss:$16 sps:$4 sm:$0xff]  }
  0x26   :  { %4998 = vst [vmem:[#allocation23_spill] sm:$0xff] %v3542_v13  ;;  %343 = vmatpush1.bf16.msra.mxu0 %v3530_v8  ;;  %4999 = vst [vmem:[#allocation24_spill] sm:$0xff] %v3546_v14  ;;  %v3550_v15 = vld [vmem:[#allocation6 + $0x8c] ss:$16 sps:$4 sm:$0xff]   ;;  %v3552_v16 = vld [vmem:[#allocation6 + $0x80] ss:$16 sps:$4 sm:$0xff]  }
  0x27   :  { %384 = vmatpush1.bf16.msra.mxu1 %v3533_v9  ;;  %344 = vmatprep.subr.bf16.mxu0 %v3536_v10  ;;  %5000 = vst [vmem:[#allocation25_spill] sm:$0xff] %v3550_v15  ;;  %5001 = vst [vmem:[#allocation26_spill] sm:$0xff] %v3552_v16  ;;  %v3556_v17 = vld [vmem:[#allocation6 + $0x88] ss:$16 sps:$4 sm:$0xff]   ;;  %v3558_v18 = vld [vmem:[#allocation6 + $0x64] ss:$16 sps:$4 sm:$0xff]  }
  0x28   :  { %385 = vmatprep.subr.bf16.mxu1 %v3538_v11  ;;  %5002 = vst [vmem:[#allocation27_spill] sm:$0xff] %v3556_v17  ;;  %5003 = vst [vmem:[#allocation28_spill] sm:$0xff] %v3558_v18  ;;  %v3562_v19 = vld [vmem:[#allocation6 + $0x6c] ss:$16 sps:$4 sm:$0xff]   ;;  %v3564_v20 = vld [vmem:[#allocation6 + $0x60] ss:$16 sps:$4 sm:$0xff]  }
  0x29   :  { %5004 = vst [vmem:[#allocation29_spill] sm:$0xff] %v3562_v19  ;;  %5005 = vst [vmem:[#allocation30_spill] sm:$0xff] %v3564_v20  ;;  %v3566_v21 = vld [vmem:[#allocation6 + $0x68] ss:$16 sps:$4 sm:$0xff]   ;;  %v3570_v22 = vld [vmem:[#allocation6 + $0x44] ss:$16 sps:$4 sm:$0xff]  }
  0x2a   :  { %345 = vmatpush1.bf16.msra.mxu0 %v3540_v12  ;;  %5006 = vst [vmem:[#allocation31_spill] sm:$0xff] %v3566_v21  ;;  %5007 = vst [vmem:[#allocation32_spill] sm:$0xff] %v3570_v22  ;;  %v3574_v23 = vld [vmem:[#allocation6 + $0x4c] ss:$16 sps:$4 sm:$0xff]   ;;  %v3576_v24 = vld [vmem:[#allocation6 + $0x40] ss:$16 sps:$4 sm:$0xff]  }
  0x2b   :  { %386 = vmatpush1.bf16.msra.mxu1 %v3542_v13  ;;  %346 = vmatprep.subr.bf16.mxu0 %v3546_v14  ;;  %5008 = vst [vmem:[#allocation33_spill] sm:$0xff] %v3574_v23  ;;  %5009 = vst [vmem:[#allocation34_spill] sm:$0xff] %v3576_v24  ;;  %v3580_v25 = vld [vmem:[#allocation6 + $0x48] ss:$16 sps:$4 sm:$0xff]   ;;  %v3582_v26 = vld [vmem:[#allocation6 + $0x24] ss:$16 sps:$4 sm:$0xff]  }
  0x2c   :  { %387 = vmatprep.subr.bf16.mxu1 %v3550_v15  ;;  %5010 = vst [vmem:[#allocation35_spill] sm:$0xff] %v3580_v25  ;;  %5011 = vst [vmem:[#allocation36_spill] sm:$0xff] %v3582_v26  ;;  %v3586_v27 = vld [vmem:[#allocation6 + $0x2c] ss:$16 sps:$4 sm:$0xff]   ;;  %v3588_v28 = vld [vmem:[#allocation6 + $0x20] ss:$16 sps:$4 sm:$0xff]  }
  0x2d   :  { %5012 = vst [vmem:[#allocation37_spill] sm:$0xff] %v3586_v27  ;;  %5013 = vst [vmem:[#allocation38_spill] sm:$0xff] %v3588_v28  ;;  %v3590_v29 = vld [vmem:[#allocation6 + $0x28] ss:$16 sps:$4 sm:$0xff]   ;;  %v3594_v30 = vld [vmem:[#allocation6 + $0x4] ss:$16 sps:$4 sm:$0xff]  }
  0x2e   :  { %347 = vmatpush1.bf16.msra.mxu0 %v3552_v16  ;;  %5014 = vst [vmem:[#allocation39_spill] sm:$0xff] %v3590_v29  ;;  %5015 = vst [vmem:[#allocation40_spill] sm:$0xff] %v3594_v30  ;;  %v3598_v31 = vld [vmem:[#allocation6 + $0xc] ss:$16 sps:$4 sm:$0xff]   ;;  %v3600_v32 = vld [vmem:[#allocation6] ss:$16 sps:$4 sm:$0xff]  }
  0x2f   :  { %388 = vmatpush1.bf16.msra.mxu1 %v3556_v17  ;;  %348 = vmatprep.subr.bf16.mxu0 %v3558_v18  ;;  %5016 = vst [vmem:[#allocation41_spill] sm:$0xff] %v3598_v31  ;;  %5017 = vst [vmem:[#allocation42_spill] sm:$0xff] %v3600_v32  ;;  %v3604_v33 = vld [vmem:[#allocation6 + $0x8] ss:$16 sps:$4 sm:$0xff]   ;;  %v3606_v34 = vld [vmem:[#allocation3 + $0xe4] ss:$16 sps:$4 sm:$0xff]  }
  0x30   :  { %389 = vmatprep.subr.bf16.mxu1 %v3562_v19  ;;  %5018 = vst [vmem:[#allocation43_spill] sm:$0xff] %v3604_v33  ;;  %5019 = vst [vmem:[#allocation44_spill] sm:$0xff] %v3606_v34  ;;  %v3610_v35 = vld [vmem:[#allocation3 + $0xec] ss:$16 sps:$4 sm:$0xff]   ;;  %v3612_v36 = vld [vmem:[#allocation3 + $0xe0] ss:$16 sps:$4 sm:$0xff]  }
  0x31   :  { %5020 = vst [vmem:[#allocation45_spill] sm:$0xff] %v3610_v35  ;;  %v3614_v37 = vld [vmem:[#allocation3 + $0xe8] ss:$16 sps:$4 sm:$0xff]   ;;  %v3618_v38 = vld [vmem:[#allocation3 + $0xc4] ss:$16 sps:$4 sm:$0xff]   ;;  %s2931_s18 = sshll.u32 %s3461_s17, 4  ;;  %s2932_s18 = int_to_ptr.vmem [resolvable:$true] %s2931_s18 }
  0x32   :  { %349 = vmatpush1.bf16.msra.mxu0 %v3564_v20  ;;  %v3622_v39 = vld [vmem:[#allocation3 + $0xcc] ss:$16 sps:$4 sm:$0xff]   ;;  %v3626_v40 = vld [vmem:[#allocation3 + $0xc0] ss:$16 sps:$4 sm:$0xff]   ;;  %v3630_v41 = vld [vmem:[#allocation3 + $0xc8] ss:$16 sps:$4 sm:$0xff]   ;;  %p3435_p11 = scmp.lt.s32.totalorder %s2932_s18, %s2932_s18 }
  0x33   :  { %390 = vmatpush1.bf16.msra.mxu1 %v3566_v21  ;;  %350 = vmatprep.subr.bf16.mxu0 %v3570_v22  ;;  %v3632_v42 = vld [vmem:[#allocation3 + $0xa4] ss:$16 sps:$4 sm:$0xff]   ;;  %v3636_v43 = vld [vmem:[#allocation3 + $0xac] ss:$16 sps:$4 sm:$0xff]   ;;  %v3640_v44 = vld [vmem:[#allocation3 + $0xa0] ss:$16 sps:$4 sm:$0xff]  }
  0x34   :  { %391 = vmatprep.subr.bf16.mxu1 %v3574_v23  ;;  %v3642_v45 = vld [vmem:[#allocation3 + $0xa8] ss:$16 sps:$4 sm:$0xff]   ;;  %v3646_v46 = vld [vmem:[#allocation3 + $0x84] ss:$16 sps:$4 sm:$0xff]   ;;  %v3650_v47 = vld [vmem:[#allocation3 + $0x8c] ss:$16 sps:$4 sm:$0xff]  }
  0x35   :  { %v58_v48 = vld [vmem:[%s4879_s0] sm:$0xff]  ;;  %v3659_v50 = vld [vmem:[#allocation3 + $0x88] ss:$16 sps:$4 sm:$0xff]   ;;  %vm2923_vm1 = vcmask 7175   ;;  %s3430_s19 = scalar_lea.vmem %s2932_s18, 16  ;;  %s3434_s20 = scalar_lea.vmem %s2932_s18, 32 }
  0x36   :  { %351 = vmatpush1.bf16.msra.mxu0 %v3576_v24  ;;  %62 = vperm.xlu0 %3037, %v58_v48   ;;  %v3657_v49 = vld [vmem:[#allocation3 + $0x80] ss:$16 sps:$4 sm:$0xff]   ;;  %v3663_v51 = vld [vmem:[#allocation3 + $0x64] ss:$16 sps:$4 sm:$0xff]   ;;  %v3665_v52 = vld [vmem:[#allocation3 + $0x6c] ss:$16 sps:$4 sm:$0xff]   ;;  %p3431_p10 = scmp.ne.s32.totalorder %s2932_s18, %s3430_s19  ;;  %p3436_p12 = scmp.lt.s32.totalorder %s3434_s20, %s3430_s19 }
  0x37   :  { %392 = vmatpush1.bf16.msra.mxu1 %v3580_v25  ;;  %352 = vmatprep.subr.bf16.mxu0 %v3582_v26  ;;  %v3669_v53 = vld [vmem:[#allocation3 + $0x60] ss:$16 sps:$4 sm:$0xff]   ;;  %v3671_v54 = vld [vmem:[#allocation3 + $0x68] ss:$16 sps:$4 sm:$0xff]   ;;  %v3675_v55 = vld [vmem:[#allocation3 + $0x44] ss:$16 sps:$4 sm:$0xff]  }
  0x38   :  { %393 = vmatprep.subr.bf16.mxu1 %v3586_v27  ;;  %v3677_v56 = vld [vmem:[#allocation3 + $0x4c] ss:$16 sps:$4 sm:$0xff]   ;;  %v3681_v57 = vld [vmem:[#allocation3 + $0x40] ss:$16 sps:$4 sm:$0xff]   ;;  %v3683_v58 = vld [vmem:[#allocation3 + $0x48] ss:$16 sps:$4 sm:$0xff]   ;;  %p3437_p13 = por %p3436_p12, %p3435_p11 }
  0x39   :  { %v3687_v59 = vld [vmem:[#allocation3 + $0x24] ss:$16 sps:$4 sm:$0xff]   ;;  %v3689_v60 = vld [vmem:[#allocation3 + $0x2c] ss:$16 sps:$4 sm:$0xff]   ;;  %v3693_v61 = vld [vmem:[#allocation3 + $0x20] ss:$16 sps:$4 sm:$0xff]  }
  0x3a   :  { %353 = vmatpush1.bf16.msra.mxu0 %v3588_v28  ;;  %v3695_v62 = vld [vmem:[#allocation3 + $0x28] ss:$16 sps:$4 sm:$0xff]   ;;  %v3699_v63 = vld [vmem:[#allocation3 + $0x4] ss:$16 sps:$4 sm:$0xff]   ;;  %v3701_v0 = vld [vmem:[#allocation3 + $0xc] ss:$16 sps:$4 sm:$0xff]   ;;  %p3438_p0 = pnand %p3437_p13, %p3431_p10 }
  0x3b   :  { %394 = vmatpush1.bf16.msra.mxu1 %v3590_v29  ;;  %354 = vmatprep.subr.bf16.mxu0 %v3594_v30  ;;  %v3705_v48 = vld [vmem:[#allocation3] ss:$16 sps:$4 sm:$0xff]  }
  0x3c   :  { %395 = vmatprep.subr.bf16.mxu1 %v3598_v31 }
  0x3e   :  { %355 = vmatpush1.bf16.msra.mxu0 %v3600_v32 }
  0x3f   :  { %396 = vmatpush1.bf16.msra.mxu1 %v3604_v33  ;;  %582 = vmatprep.subr.bf16.mxu0 %v3606_v34  ;;  %v5022_v33 = vmov 0  }
  0x40   :  { %623 = vmatprep.subr.bf16.mxu1 %v3610_v35 }
  0x41   :  { %373 = vmatmul.mubr.bf16.vlgmr.msra.gmra.mxu0 %v4887_v1 }
  0x42   :  { %414 = vmatmul.mubr.bf16.vlgmr.msra.gmra.mxu1 %v4887_v1  ;;  %583 = vmatpush1.bf16.msra.mxu0 %v3612_v36 }
  0x43   :  { %624 = vmatpush1.bf16.msra.mxu1 %v3614_v37  ;;  %584 = vmatprep.subr.bf16.mxu0 %v3618_v38 }
  0x44   :  { %625 = vmatprep.subr.bf16.mxu1 %v3622_v39  ;;  %614 = vmatprep.mubr.bf16.mxu0 %v4887_v1 }
  0x45   :  { %655 = vmatprep.mubr.bf16.mxu1 %v4887_v1  ;;  %v3707_v1 = vld [vmem:[#allocation3 + $0x8] ss:$16 sps:$4 sm:$0xff]  }
  0x46   :  { %585 = vmatpush1.bf16.msra.mxu0 %v3626_v40  ;;  %5021 = vst [vmem:[#allocation46_spill] sm:$0xff] %v3707_v1 }
  0x47   :  { %626 = vmatpush1.bf16.msra.mxu1 %v3630_v41  ;;  %586 = vmatprep.subr.bf16.mxu0 %v3632_v42 }
  0x48   :  { %627 = vmatprep.subr.bf16.mxu1 %v3636_v43 }
  0x4a   :  { %587 = vmatpush1.bf16.msra.mxu0 %v3640_v44 }
  0x4b   :  { %628 = vmatpush1.bf16.msra.mxu1 %v3642_v45  ;;  %588 = vmatprep.subr.bf16.mxu0 %v3646_v46 }
  0x4c   :  { %629 = vmatprep.subr.bf16.mxu1 %v3650_v47 }
  0x4e   :  { %589 = vmatpush1.bf16.msra.mxu0 %v3657_v49 }
  0x4f   :  { %630 = vmatpush1.bf16.msra.mxu1 %v3659_v50  ;;  %590 = vmatprep.subr.bf16.mxu0 %v3663_v51 }
  0x50   :  { %631 = vmatprep.subr.bf16.mxu1 %v3665_v52 }
  0x52   :  { %591 = vmatpush1.bf16.msra.mxu0 %v3669_v53 }
  0x53   :  { %632 = vmatpush1.bf16.msra.mxu1 %v3671_v54  ;;  %592 = vmatprep.subr.bf16.mxu0 %v3675_v55 }
  0x54   :  { %633 = vmatprep.subr.bf16.mxu1 %v3677_v56 }
  0x56   :  { %593 = vmatpush1.bf16.msra.mxu0 %v3681_v57 }
  0x57   :  { %634 = vmatpush1.bf16.msra.mxu1 %v3683_v58  ;;  %594 = vmatprep.subr.bf16.mxu0 %v3687_v59 }
  0x58   :  { %635 = vmatprep.subr.bf16.mxu1 %v3689_v60 }
  0x5a   :  { %595 = vmatpush1.bf16.msra.mxu0 %v3693_v61 }
  0x5b   :  { %636 = vmatpush1.bf16.msra.mxu1 %v3695_v62  ;;  %596 = vmatprep.subr.bf16.mxu0 %v3699_v63 }
  0x5c   :  { %637 = vmatprep.subr.bf16.mxu1 %v3701_v0 }
  0x5e   :  { %597 = vmatpush1.bf16.msra.mxu0 %v3705_v48 }
  0x5f   :  { %638 = vmatpush1.bf16.msra.mxu1 %v3707_v1  ;;  %664 = vmatprep.subr.bf16.mxu0 %v3606_v34 }
  0x60   :  { %705 = vmatprep.subr.bf16.mxu1 %v3610_v35 }
  0x61   :  { %615 = vmatmul.mubr.bf16.vlgmr.msra.gmra.mxu0 %v5022_v33 }
  0x62   :  { %656 = vmatmul.mubr.bf16.vlgmr.msra.gmra.mxu1 %v5022_v33  ;;  %665 = vmatpush1.bf16.msra.mxu0 %v3612_v36 }
  0x63   :  { %706 = vmatpush1.bf16.msra.mxu1 %v3614_v37  ;;  %666 = vmatprep.subr.bf16.mxu0 %v3618_v38 }
  0x64   :  { %707 = vmatprep.subr.bf16.mxu1 %v3622_v39  ;;  %696 = vmatprep.mubr.bf16.mxu0 %v5022_v33 }
  0x65   :  { %737 = vmatprep.mubr.bf16.mxu1 %v5022_v33 }
  0x66   :  { %667 = vmatpush1.bf16.msra.mxu0 %v3626_v40 }
  0x67   :  { %708 = vmatpush1.bf16.msra.mxu1 %v3630_v41  ;;  %668 = vmatprep.subr.bf16.mxu0 %v3632_v42 }
  0x68   :  { %709 = vmatprep.subr.bf16.mxu1 %v3636_v43 }
  0x6a   :  { %669 = vmatpush1.bf16.msra.mxu0 %v3640_v44 }
  0x6b   :  { %710 = vmatpush1.bf16.msra.mxu1 %v3642_v45  ;;  %670 = vmatprep.subr.bf16.mxu0 %v3646_v46 }
  0x6c   :  { %711 = vmatprep.subr.bf16.mxu1 %v3650_v47 }
  0x6e   :  { %671 = vmatpush1.bf16.msra.mxu0 %v3657_v49 }
  0x6f   :  { %712 = vmatpush1.bf16.msra.mxu1 %v3659_v50  ;;  %672 = vmatprep.subr.bf16.mxu0 %v3663_v51 }
  0x70   :  { %713 = vmatprep.subr.bf16.mxu1 %v3665_v52 }
  0x72   :  { %673 = vmatpush1.bf16.msra.mxu0 %v3669_v53 }
  0x73   :  { %714 = vmatpush1.bf16.msra.mxu1 %v3671_v54  ;;  %674 = vmatprep.subr.bf16.mxu0 %v3675_v55 }
  0x74   :  { %715 = vmatprep.subr.bf16.mxu1 %v3677_v56 }
  0x76   :  { %675 = vmatpush1.bf16.msra.mxu0 %v3681_v57 }
  0x77   :  { %716 = vmatpush1.bf16.msra.mxu1 %v3683_v58  ;;  %676 = vmatprep.subr.bf16.mxu0 %v3687_v59 }
  0x78   :  { %717 = vmatprep.subr.bf16.mxu1 %v3689_v60 }
  0x7a   :  { %677 = vmatpush1.bf16.msra.mxu0 %v3693_v61 }
  0x7b   :  { %718 = vmatpush1.bf16.msra.mxu1 %v3695_v62  ;;  %678 = vmatprep.subr.bf16.mxu0 %v3699_v63 }
  0x7c   :  { %719 = vmatprep.subr.bf16.mxu1 %v3701_v0 }
  0x7e   :  { %679 = vmatpush1.bf16.msra.mxu0 %v3705_v48 }
  0x7f   :  { %720 = vmatpush1.bf16.msra.mxu1 %v3707_v1  ;;  %782 = vmatprep.subr.bf16.mxu0 %v3514_v2 }
  0x80   :  { %823 = vmatprep.subr.bf16.mxu1 %v3516_v3 }
  0x81   :  { %697 = vmatmul.mubr.bf16.vlgmr.msra.gmra.mxu0 %v5022_v33 }
  0x82   :  { %738 = vmatmul.mubr.bf16.vlgmr.msra.gmra.mxu1 %v5022_v33  ;;  %783 = vmatpush1.bf16.msra.mxu0 %v3519_v4 }
  0x83   :  { %824 = vmatpush1.bf16.msra.mxu1 %v3521_v5  ;;  %784 = vmatprep.subr.bf16.mxu0 %v3524_v6 }
  0x84   :  { %825 = vmatprep.subr.bf16.mxu1 %v3528_v7  ;;  %814 = vmatprep.mubr.bf16.mxu0 %v5022_v33 }
  0x85   :  { %855 = vmatprep.mubr.bf16.mxu1 %v5022_v33 }
  0x86   :  { %785 = vmatpush1.bf16.msra.mxu0 %v3530_v8 }
  0x87   :  { %826 = vmatpush1.bf16.msra.mxu1 %v3533_v9  ;;  %786 = vmatprep.subr.bf16.mxu0 %v3536_v10 }
  0x88   :  { %827 = vmatprep.subr.bf16.mxu1 %v3538_v11 }
  0x8a   :  { %787 = vmatpush1.bf16.msra.mxu0 %v3540_v12 }
  0x8b   :  { %828 = vmatpush1.bf16.msra.mxu1 %v3542_v13  ;;  %788 = vmatprep.subr.bf16.mxu0 %v3546_v14  ;;  %v59_v13 = vld [vmem:[%s4880_s1] sm:$0xf] }
  0x8c   :  { %829 = vmatprep.subr.bf16.mxu1 %v3550_v15 }
  0x8e   :  { %789 = vmatpush1.bf16.msra.mxu0 %v3552_v16  ;;  %v66_v16 = vlaneseq }
  0x8f   :  { %830 = vmatpush1.bf16.msra.mxu1 %v3556_v17  ;;  %790 = vmatprep.subr.bf16.mxu0 %v3558_v18 }
  0x90   :  { %831 = vmatprep.subr.bf16.mxu1 %v3562_v19  ;;  %v67_v15 = vshrl.u32 %v66_v16, 7 }
  0x92   :  { %791 = vmatpush1.bf16.msra.mxu0 %v3564_v20  ;;  %v68_v14 = vsub.s32 0, %v67_v15  ;;  %v72_v12 = vsub.s32 1, %v67_v15  ;;  %v80_v3 = vsub.s32 3, %v67_v15 }
  0x93   :  { %832 = vmatpush1.bf16.msra.mxu1 %v3566_v21  ;;  %792 = vmatprep.subr.bf16.mxu0 %v3570_v22  ;;  %v5023_v22 = vld [vmem:[#allocation43_spill] sm:$0xff] }
  0x94   :  { %833 = vmatprep.subr.bf16.mxu1 %v3574_v23 }
  0x96   :  { %793 = vmatpush1.bf16.msra.mxu0 %v3576_v24 }
  0x97   :  { %834 = vmatpush1.bf16.msra.mxu1 %v3580_v25  ;;  %794 = vmatprep.subr.bf16.mxu0 %v3582_v26 }
  0x98   :  { %835 = vmatprep.subr.bf16.mxu1 %v3586_v27 }
  0x9a   :  { %795 = vmatpush1.bf16.msra.mxu0 %v3588_v28 }
  0x9b   :  { %836 = vmatpush1.bf16.msra.mxu1 %v3590_v29  ;;  %796 = vmatprep.subr.bf16.mxu0 %v3594_v30 }
  0x9c   :  { %837 = vmatprep.subr.bf16.mxu1 %v3598_v31 }
  0x9e   :  { %797 = vmatpush1.bf16.msra.mxu0 %v3600_v32 }
  0x9f   :  { %838 = vmatpush1.bf16.msra.mxu1 %v5023_v22  ;;  %864 = vmatprep.subr.bf16.mxu0 %v3606_v34 }
  0xa0   :  { %905 = vmatprep.subr.bf16.mxu1 %v3610_v35 }
 0x101   :  { %v374_v25 = vpop.f32.mrf.mxu0 }
 0x102   :  { %v415_v26 = vpop.f32.mrf.mxu1 }
 0x103   :  { %v376_v24 = vpop.f32.mrf.mxu0 }
 0x104   :  { %v417_v27 = vpop.f32.mrf.mxu1 }
 0x105   :  { %v378_v23 = vpop.f32.mrf.mxu0 }
 0x106   :  { %v419_v28 = vpop.f32.mrf.mxu1  ;;  %v69_v23 = vrot.slane %v59_v13, %v68_v14 }
 0x107   :  { %v379_v21 = vpop.f32.mrf.mxu0  ;;  %v63_v28 = vpop.permute.xlu0 %62 }
 0x108   :  { %v420_v29 = vpop.f32.mrf.mxu1  ;;  %v90_v21 = vld [vmem:[%s4881_s2] sm:$0xf] }
 0x109   :  { %v73_v29 = vrot.slane %v59_v13, %v72_v12  ;;  %v95_v11 = vrot.slane %v90_v21, %v68_v14 }
 0x121   :  { %v616_v20 = vpop.f32.mrf.mxu0 }
 0x122   :  { %v657_v30 = vpop.f32.mrf.mxu1  ;;  %v617_v10 = vadd.f32 %v616_v20, %v374_v25  ;;  %v81_v25 = vrot.slane %v59_v13, %v80_v3 }
 0x123   :  { %v618_v19 = vpop.f32.mrf.mxu0 }
 0x124   :  { %v659_v31 = vpop.f32.mrf.mxu1  ;;  %v619_v7 = vadd.f32 %v618_v19, %v376_v24  ;;  %v658_v24 = vadd.f32 %v657_v30, %v415_v26 }
 0x125   :  { %v620_v18 = vpop.f32.mrf.mxu0 }
 0x126   :  { %v661_v32 = vpop.f32.mrf.mxu1  ;;  %v86_v18 = vmul.f32 %v69_v23, %v63_v28 }
 0x127   :  { %v621_v17 = vpop.f32.mrf.mxu0  ;;  %v76_v32 = vsub.s32 2, %v67_v15  ;;  %v107_v15 = vrot.slane %v90_v21, %v80_v3 }
 0x128   :  { %v662_v22 = vpop.f32.mrf.mxu1  ;;  %v99_v17 = vrot.slane %v90_v21, %v72_v12  ;;  %v3793_v16 = vadd.f32 %v95_v11, %v86_v18 }
 0x129   :  { %v87_v22 = vmul.f32 %v73_v29, %v63_v28  ;;  %v77_v6 = vrot.slane %v59_v13, %v76_v32  ;;  %v103_v12 = vrot.slane %v90_v21, %v76_v32 }
 0x12a   :  { %5024 = vst [vmem:[#allocation47_spill] sm:$0xff] %v3793_v16 }
 0x12b   :  { %v3795_v5 = vadd.f32 %v99_v17, %v87_v22  ;;  %v88_v29 = vmul.f32 %v77_v6, %v63_v28 }
 0x12d   :  { %5025 = vst [vmem:[#allocation48_spill] sm:$0xff] %v3795_v5 }
 0x141   :  { %v698_v9 = vpop.f32.mrf.mxu0 }
 0x142   :  { %v739_v8 = vpop.f32.mrf.mxu1  ;;  %v746_v4 = vadd.f32 %v698_v9, %v617_v10  ;;  %v3799_v9 = vadd.f32 %v103_v12, %v88_v29 }
 0x143   :  { %v700_v2 = vpop.f32.mrf.mxu0  ;;  %v748_v10 = vadd.f32 %v739_v8, %v658_v24 }
 0x144   :  { %v741_v35 = vpop.f32.mrf.mxu1  ;;  %v750_v34 = vadd.f32 %v746_v4, %v3793_v16  ;;  %v747_v14 = vadd.f32 %v700_v2, %v619_v7  ;;  %5026 = vst [vmem:[#allocation49_spill] sm:$0xff] %v3799_v9  ;;  %v89_v4 = vmul.f32 %v81_v25, %v63_v28  ;;  %v660_v2 = vadd.f32 %v659_v31, %v417_v27  ;;  %v5029_v25 = vld [vmem:[#allocation44_spill] sm:$0xff] }
 0x145   :  { %v702_v23 = vpop.f32.mrf.mxu0 }
 0x146   :  { %v743_v1 = vpop.f32.mrf.mxu1  ;;  %v3005_v20 = vmul.f32 -1.442695, %v750_v34  ;;  %v751_v11 = vadd.f32 %v747_v14, %v3795_v5  ;;  %v3802_v7 = vadd.f32 %v107_v15, %v89_v4  ;;  %v749_v6 = vadd.f32 %v741_v35, %v660_v2  ;;  %v5032_v15 = vld [vmem:[#allocation13_spill] sm:$0xff]  ;;  %v5033_v4 = vld [vmem:[#allocation14_spill] sm:$0xff]  ;;  %v5034_v2 = vld [vmem:[#allocation15_spill] sm:$0xff] }
 0x147   :  { %v703_v18 = vpop.f32.mrf.mxu0  ;;  %v752_v1 = vadd.f32 %v748_v10, %v3799_v9  ;;  %v5031_v10 = vld [vmem:[#allocation12_spill] sm:$0xff] }
 0x148   :  { %v744_v19 = vpop.f32.mrf.mxu1  ;;  %3134 = vpow2.f32 %v3005_v20  ;;  %v3006_v17 = vmul.f32 -1.442695, %v751_v11  ;;  %5027 = vst [vmem:[#allocation50_spill] sm:$0xff] %v3802_v7  ;;  %v753_v13 = vadd.f32 %v749_v6, %v3802_v7  ;;  %v5028_v11 = vld [vmem:[#allocation46_spill] sm:$0xff]  ;;  %v5030_v18 = vld [vmem:[#allocation45_spill] sm:$0xff] }
 0x149   :  { %v3007_v34 = vmul.f32 -1.442695, %v752_v1  ;;  %v5035_v1 = vld [vmem:[#allocation16_spill] sm:$0xff]  ;;  %v5036_v6 = vld [vmem:[#allocation17_spill] sm:$0xff] }
 0x14a   :  { %3136 = vpow2.f32 %v3006_v17 }
 0x14b   :  { %3138 = vpow2.f32 %v3007_v34  ;;  %v5037_v34 = vld [vmem:[#allocation18_spill] sm:$0xff] }
 0x14c   :  { %3140 = vtanh.f32 %v753_v13  ;;  %v5038_v13 = vld [vmem:[#allocation19_spill] sm:$0xff] }
 0x155   :  { %v3135_v32 = vpop.eup %3134 }
 0x156   :  { %v763_v22 = vadd.f32 1.0, %v3135_v32  ;;  %v5039_v32 = vld [vmem:[#allocation20_spill] sm:$0xff] }
 0x157   :  { %v3137_v26 = vpop.eup %3136 }
 0x158   :  { %3142 = vrcp.f32 %v763_v22  ;;  %v764_v30 = vadd.f32 1.0, %v3137_v26  ;;  %v3139_v8 = vpop.eup %3138  ;;  %v5040_v22 = vld [vmem:[#allocation21_spill] sm:$0xff]  ;;  %v5041_v26 = vld [vmem:[#allocation22_spill] sm:$0xff] }
 0x159   :  { %v3141_v3 = vpop.eup %3140  ;;  %v765_v28 = vadd.f32 1.0, %v3139_v8  ;;  %v5043_v8 = vld [vmem:[#allocation24_spill] sm:$0xff] }
 0x15a   :  { %3144 = vrcp.f32 %v764_v30  ;;  %v5042_v30 = vld [vmem:[#allocation23_spill] sm:$0xff] }
 0x15b   :  { %3146 = vrcp.f32 %v765_v28  ;;  %v5048_v28 = vld [vmem:[#allocation29_spill] sm:$0xff] }
 0x165   :  { %v3143_v21 = vpop.eup %3142 }
 0x166   :  { %v774_v27 = vmul.f32 %v3143_v21, %v3141_v3  ;;  %v5044_v3 = vld [vmem:[#allocation25_spill] sm:$0xff]  ;;  %v5045_v21 = vld [vmem:[#allocation26_spill] sm:$0xff] }
 0x167   :  { %v3145_v31 = vpop.eup %3144 }
 0x168   :  { %v773_v14 = vmul.f32 0.0, %v3145_v31  ;;  %v3147_v35 = vpop.eup %3146  ;;  %v5047_v31 = vld [vmem:[#allocation28_spill] sm:$0xff] }
 0x16a   :  { %v3805_v23 = vadd.f32 %v774_v27, %v773_v14  ;;  %v5046_v27 = vld [vmem:[#allocation27_spill] sm:$0xff]  ;;  %v5049_v14 = vld [vmem:[#allocation30_spill] sm:$0xff] }
 0x16c   :  { %3148 = vtanh.f32 %v3805_v23 }
 0x179   :  { %v3149_v12 = vpop.eup %3148 }
 0x17a   :  { %v3808_v29 = vmul.f32 %v3149_v12, %v3147_v35  ;;  %v5050_v35 = vld [vmem:[#allocation31_spill] sm:$0xff]  ;;  %v5051_v12 = vld [vmem:[#allocation32_spill] sm:$0xff] }
 0x17c   :  { %v3812_v20 = vpack.c.bf16 %v3808_v29, %v3808_v29 }
 0x17e   :  { %815 = vmatmul.mubr.bf16.vlgmr.msra.gmra.mxu0 %v3812_v20  ;;  %856 = vmatmul.mubr.bf16.vlgmr.msra.gmra.mxu1 %v3812_v20  ;;  %v779_v19 = vunpack.c.l.bf16 %v3812_v20 }
 0x17f   :  { %865 = vmatpush1.bf16.msra.mxu0 %v3612_v36  ;;  %906 = vmatpush1.bf16.msra.mxu1 %v3614_v37 }
 0x180   :  { %866 = vmatprep.subr.bf16.mxu0 %v3618_v38  ;;  %907 = vmatprep.subr.bf16.mxu1 %v3622_v39  ;;  %v780_v24 = vsub.f32 %v3808_v29, %v779_v19  ;;  %v5052_v29 = vld [vmem:[#allocation33_spill] sm:$0xff]  ;;  %v5054_v19 = vld [vmem:[#allocation35_spill] sm:$0xff] }
 0x181   :  { %896 = vmatprep.mubr.bf16.mxu0 %v5022_v33  ;;  %937 = vmatprep.mubr.bf16.mxu1 %v5022_v33 }
 0x182   :  { %v781_v17 = vpack.c.bf16 %v780_v24, %v780_v24  ;;  %v5055_v24 = vld [vmem:[#allocation36_spill] sm:$0xff] }
 0x183   :  { %867 = vmatpush1.bf16.msra.mxu0 %v3626_v40  ;;  %908 = vmatpush1.bf16.msra.mxu1 %v3630_v41 }
 0x184   :  { %868 = vmatprep.subr.bf16.mxu0 %v3632_v42  ;;  %909 = vmatprep.subr.bf16.mxu1 %v3636_v43 }
 0x187   :  { %869 = vmatpush1.bf16.msra.mxu0 %v3640_v44  ;;  %910 = vmatpush1.bf16.msra.mxu1 %v3642_v45 }
 0x188   :  { %870 = vmatprep.subr.bf16.mxu0 %v3646_v46  ;;  %911 = vmatprep.subr.bf16.mxu1 %v3650_v47 }
 0x18b   :  { %871 = vmatpush1.bf16.msra.mxu0 %v3657_v49  ;;  %912 = vmatpush1.bf16.msra.mxu1 %v3659_v50 }
 0x18c   :  { %872 = vmatprep.subr.bf16.mxu0 %v3663_v51  ;;  %913 = vmatprep.subr.bf16.mxu1 %v3665_v52 }
 0x18f   :  { %873 = vmatpush1.bf16.msra.mxu0 %v3669_v53  ;;  %914 = vmatpush1.bf16.msra.mxu1 %v3671_v54 }
 0x190   :  { %874 = vmatprep.subr.bf16.mxu0 %v3675_v55  ;;  %915 = vmatprep.subr.bf16.mxu1 %v3677_v56 }
 0x193   :  { %875 = vmatpush1.bf16.msra.mxu0 %v3681_v57  ;;  %916 = vmatpush1.bf16.msra.mxu1 %v3683_v58 }
 0x194   :  { %876 = vmatprep.subr.bf16.mxu0 %v3687_v59  ;;  %917 = vmatprep.subr.bf16.mxu1 %v3689_v60 }
 0x197   :  { %877 = vmatpush1.bf16.msra.mxu0 %v3693_v61  ;;  %918 = vmatpush1.bf16.msra.mxu1 %v3695_v62 }
 0x198   :  { %878 = vmatprep.subr.bf16.mxu0 %v3699_v63  ;;  %919 = vmatprep.subr.bf16.mxu1 %v3701_v0 }
 0x19b   :  { %879 = vmatpush1.bf16.msra.mxu0 %v3705_v48  ;;  %920 = vmatpush1.bf16.msra.mxu1 %v5028_v11 }
 0x19c   :  { %946 = vmatprep.subr.bf16.mxu0 %v5029_v25  ;;  %987 = vmatprep.subr.bf16.mxu1 %v5030_v18 }
 0x19e   :  { %897 = vmatmul.mubr.bf16.vlgmr.msra.gmra.mxu0 %v3812_v20  ;;  %938 = vmatmul.mubr.bf16.vlgmr.msra.gmra.mxu1 %v3812_v20  ;;  %v5053_v20 = vld [vmem:[#allocation34_spill] sm:$0xff] }
 0x19f   :  { %947 = vmatpush1.bf16.msra.mxu0 %v3612_v36  ;;  %988 = vmatpush1.bf16.msra.mxu1 %v3614_v37 }
 0x1a0   :  { %948 = vmatprep.subr.bf16.mxu0 %v3618_v38  ;;  %989 = vmatprep.subr.bf16.mxu1 %v3622_v39 }
 0x1a1   :  { %978 = vmatprep.mubr.bf16.mxu0 %v5022_v33  ;;  %1019 = vmatprep.mubr.bf16.mxu1 %v5022_v33 }
 0x1a3   :  { %949 = vmatpush1.bf16.msra.mxu0 %v3626_v40  ;;  %990 = vmatpush1.bf16.msra.mxu1 %v3630_v41 }
 0x1a4   :  { %950 = vmatprep.subr.bf16.mxu0 %v3632_v42  ;;  %991 = vmatprep.subr.bf16.mxu1 %v3636_v43 }
 0x1a7   :  { %951 = vmatpush1.bf16.msra.mxu0 %v3640_v44  ;;  %992 = vmatpush1.bf16.msra.mxu1 %v3642_v45 }
 0x1a8   :  { %952 = vmatprep.subr.bf16.mxu0 %v3646_v46  ;;  %993 = vmatprep.subr.bf16.mxu1 %v3650_v47 }
 0x1ab   :  { %953 = vmatpush1.bf16.msra.mxu0 %v3657_v49  ;;  %994 = vmatpush1.bf16.msra.mxu1 %v3659_v50 }
 0x1ac   :  { %954 = vmatprep.subr.bf16.mxu0 %v3663_v51  ;;  %995 = vmatprep.subr.bf16.mxu1 %v3665_v52 }
 0x1af   :  { %955 = vmatpush1.bf16.msra.mxu0 %v3669_v53  ;;  %996 = vmatpush1.bf16.msra.mxu1 %v3671_v54 }
 0x1b0   :  { %956 = vmatprep.subr.bf16.mxu0 %v3675_v55  ;;  %997 = vmatprep.subr.bf16.mxu1 %v3677_v56 }
 0x1b3   :  { %957 = vmatpush1.bf16.msra.mxu0 %v3681_v57  ;;  %998 = vmatpush1.bf16.msra.mxu1 %v3683_v58 }
 0x1b4   :  { %958 = vmatprep.subr.bf16.mxu0 %v3687_v59  ;;  %999 = vmatprep.subr.bf16.mxu1 %v3689_v60 }
 0x1b7   :  { %959 = vmatpush1.bf16.msra.mxu0 %v3693_v61  ;;  %1000 = vmatpush1.bf16.msra.mxu1 %v3695_v62 }
 0x1b8   :  { %960 = vmatprep.subr.bf16.mxu0 %v3699_v63  ;;  %1001 = vmatprep.subr.bf16.mxu1 %v3701_v0 }
 0x1bb   :  { %961 = vmatpush1.bf16.msra.mxu0 %v3705_v48  ;;  %1002 = vmatpush1.bf16.msra.mxu1 %v5028_v11 }
 0x1bc   :  { %1083 = vmatprep.subr.bf16.mxu0 %v5031_v10  ;;  %1124 = vmatprep.subr.bf16.mxu1 %v5032_v15  ;;  %v5057_v10 = vld [vmem:[#allocation38_spill] sm:$0xff]  ;;  %v5058_v15 = vld [vmem:[#allocation39_spill] sm:$0xff] }
 0x1be   :  { %979 = vmatmul.mubr.bf16.vlgmr.msra.gmra.mxu0 %v781_v17  ;;  %1020 = vmatmul.mubr.bf16.vlgmr.msra.gmra.mxu1 %v781_v17  ;;  %v5056_v17 = vld [vmem:[#allocation37_spill] sm:$0xff] }
 0x1bf   :  { %1084 = vmatpush1.bf16.msra.mxu0 %v5033_v4  ;;  %1125 = vmatpush1.bf16.msra.mxu1 %v5034_v2  ;;  %v5059_v4 = vld [vmem:[#allocation40_spill] sm:$0xff]  ;;  %v5060_v2 = vld [vmem:[#allocation41_spill] sm:$0xff] }
 0x1c0   :  { %1085 = vmatprep.subr.bf16.mxu0 %v5035_v1  ;;  %1126 = vmatprep.subr.bf16.mxu1 %v5036_v6  ;;  %v5061_v1 = vld [vmem:[#allocation42_spill] sm:$0xff]  ;;  %v5062_v6 = vld [vmem:[#allocation43_spill] sm:$0xff] }
 0x1c1   :  { %1115 = vmatprep.mubr.bf16.mxu0 %v5022_v33  ;;  %1156 = vmatprep.mubr.bf16.mxu1 %v5022_v33 }
 0x1c3   :  { %1086 = vmatpush1.bf16.msra.mxu0 %v5037_v34  ;;  %1127 = vmatpush1.bf16.msra.mxu1 %v5038_v13 }
 0x1c4   :  { %1087 = vmatprep.subr.bf16.mxu0 %v5039_v32  ;;  %1128 = vmatprep.subr.bf16.mxu1 %v5040_v22 }
 0x1c7   :  { %1088 = vmatpush1.bf16.msra.mxu0 %v5041_v26  ;;  %1129 = vmatpush1.bf16.msra.mxu1 %v5042_v30 }
 0x1c8   :  { %1089 = vmatprep.subr.bf16.mxu0 %v5043_v8  ;;  %1130 = vmatprep.subr.bf16.mxu1 %v5044_v3 }
 0x1cb   :  { %1090 = vmatpush1.bf16.msra.mxu0 %v5045_v21  ;;  %1131 = vmatpush1.bf16.msra.mxu1 %v5046_v27 }
 0x1cc   :  { %1091 = vmatprep.subr.bf16.mxu0 %v5047_v31  ;;  %1132 = vmatprep.subr.bf16.mxu1 %v5048_v28 }
 0x1cf   :  { %1092 = vmatpush1.bf16.msra.mxu0 %v5049_v14  ;;  %1133 = vmatpush1.bf16.msra.mxu1 %v5050_v35 }
 0x1d0   :  { %1093 = vmatprep.subr.bf16.mxu0 %v5051_v12  ;;  %1134 = vmatprep.subr.bf16.mxu1 %v5052_v29 }
 0x1d3   :  { %1094 = vmatpush1.bf16.msra.mxu0 %v5053_v20  ;;  %1135 = vmatpush1.bf16.msra.mxu1 %v5054_v19 }
 0x1d4   :  { %1095 = vmatprep.subr.bf16.mxu0 %v5055_v24  ;;  %1136 = vmatprep.subr.bf16.mxu1 %v5056_v17 }
 0x1d7   :  { %1096 = vmatpush1.bf16.msra.mxu0 %v5057_v10  ;;  %1137 = vmatpush1.bf16.msra.mxu1 %v5058_v15 }
 0x1d8   :  { %1097 = vmatprep.subr.bf16.mxu0 %v5059_v4  ;;  %1138 = vmatprep.subr.bf16.mxu1 %v5060_v2 }
 0x1db   :  { %1098 = vmatpush1.bf16.msra.mxu0 %v5061_v1  ;;  %1139 = vmatpush1.bf16.msra.mxu1 %v5062_v6 }
 0x1dc   :  { %1165 = vmatprep.subr.bf16.mxu0 %v5029_v25  ;;  %1206 = vmatprep.subr.bf16.mxu1 %v5030_v18 }
 0x23e   :  { %v816_v34 = vpop.f32.mrf.mxu0  ;;  %v857_v13 = vpop.f32.mrf.mxu1 }
 0x240   :  { %v818_v32 = vpop.f32.mrf.mxu0  ;;  %v859_v22 = vpop.f32.mrf.mxu1 }
 0x242   :  { %v820_v26 = vpop.f32.mrf.mxu0  ;;  %v861_v30 = vpop.f32.mrf.mxu1 }
 0x244   :  { %v821_v8 = vpop.f32.mrf.mxu0  ;;  %v862_v3 = vpop.f32.mrf.mxu1 }
 0x25e   :  { %v898_v21 = vpop.f32.mrf.mxu0  ;;  %v939_v27 = vpop.f32.mrf.mxu1 }
 0x25f   :  { %v899_v20 = vadd.f32 %v898_v21, %v816_v34  ;;  %v940_v30 = vadd.f32 %v939_v27, %v857_v13 }
 0x260   :  { %v900_v31 = vpop.f32.mrf.mxu0  ;;  %v941_v28 = vpop.f32.mrf.mxu1 }
 0x261   :  { %v901_v17 = vadd.f32 %v900_v31, %v818_v32  ;;  %v942_v32 = vadd.f32 %v941_v28, %v859_v22  ;;  %v1068_v28 = vrot.slane %v3805_v23, 7  ;;  %v5063_v23 = vld [vmem:[#allocation45_spill] sm:$0xff] }
 0x262   :  { %v902_v14 = vpop.f32.mrf.mxu0  ;;  %v943_v35 = vpop.f32.mrf.mxu1 }
 0x264   :  { %v903_v12 = vpop.f32.mrf.mxu0  ;;  %v944_v29 = vpop.f32.mrf.mxu1 }
 0x27e   :  { %v980_v19 = vpop.f32.mrf.mxu0  ;;  %v1021_v24 = vpop.f32.mrf.mxu1 }
 0x27f   :  { %v1028_v10 = vadd.f32 %v980_v19, %v899_v20  ;;  %v1030_v12 = vadd.f32 %v1021_v24, %v940_v30 }
 0x280   :  { %v982_v15 = vpop.f32.mrf.mxu0  ;;  %v1023_v4 = vpop.f32.mrf.mxu1 }
 0x281   :  { %v1036_v2 = vrot.slane %v1028_v10, 7  ;;  %v1029_v1 = vadd.f32 %v982_v15, %v901_v17  ;;  %v1038_v31 = vrot.slane %v1030_v12, 7  ;;  %v1031_v29 = vadd.f32 %v1023_v4, %v942_v32  ;;  %v4094_v32 = vld [vmem:[#allocation6 + $0xc] ss:$16 sps:$4 sm:$0xff]  }
 0x282   :  { %v984_v6 = vpop.f32.mrf.mxu0  ;;  %v1025_v26 = vpop.f32.mrf.mxu1  ;;  %5088 = vst [vmem:[#allocation34_spill] sm:$0xff] %v4094_v32 }
 0x283   :  { %v1044_v8 = vadd.f32 %v1036_v2, %v3793_v16  ;;  %v1037_v3 = vrot.slane %v1029_v1, 7  ;;  %v1046_v20 = vadd.f32 %v1038_v31, %v3799_v9  ;;  %v1039_v19 = vrot.slane %v1031_v29, 7  ;;  %v4097_v31 = vld [vmem:[#allocation6] ss:$16 sps:$4 sm:$0xff]   ;;  %v4100_v29 = vld [vmem:[#allocation6 + $0x8] ss:$16 sps:$4 sm:$0xff]  }
 0x284   :  { %v985_v18 = vpop.f32.mrf.mxu0  ;;  %v1026_v14 = vpop.f32.mrf.mxu1  ;;  %5089 = vst [vmem:[#allocation35_spill] sm:$0xff] %v4097_v31  ;;  %5090 = vst [vmem:[#allocation36_spill] sm:$0xff] %v4100_v29 }
 0x285   :  { %v3008_v35 = vmul.f32 -1.442695, %v1044_v8  ;;  %v1045_v34 = vadd.f32 %v1037_v3, %v3795_v5  ;;  %v3010_v17 = vmul.f32 -1.442695, %v1046_v20  ;;  %v1047_v13 = vadd.f32 %v1039_v19, %v3802_v7  ;;  %v4103_v20 = vld [vmem:[#allocation3 + $0xe4] ss:$16 sps:$4 sm:$0xff]  }
 0x286   :  { %v4106_v19 = vld [vmem:[#allocation3 + $0xec] ss:$16 sps:$4 sm:$0xff]  }
 0x287   :  { %3150 = vpow2.f32 %v3008_v35  ;;  %v3009_v21 = vmul.f32 -1.442695, %v1045_v34  ;;  %v4088_v34 = vld [vmem:[#allocation6 + $0x28] ss:$16 sps:$4 sm:$0xff]   ;;  %5091 = vst [vmem:[#allocation37_spill] sm:$0xff] %v4106_v19 }
 0x288   :  { %5086 = vst [vmem:[#allocation32_spill] sm:$0xff] %v4088_v34 }
 0x289   :  { %3152 = vpow2.f32 %v3009_v21  ;;  %v4091_v21 = vld [vmem:[#allocation6 + $0x4] ss:$16 sps:$4 sm:$0xff]  }
 0x28a   :  { %3154 = vpow2.f32 %v3010_v17  ;;  %5087 = vst [vmem:[#allocation33_spill] sm:$0xff] %v4091_v21 }
 0x28b   :  { %3156 = vtanh.f32 %v1047_v13 }
 0x294   :  { %v3151_v27 = vpop.eup %3150 }
 0x295   :  { %v1057_v10 = vadd.f32 1.0, %v3151_v27 }
 0x296   :  { %v3153_v18 = vpop.eup %3152 }
 0x297   :  { %3158 = vrcp.f32 %v1057_v10  ;;  %v1058_v24 = vadd.f32 1.0, %v3153_v18  ;;  %v3155_v15 = vpop.eup %3154 }
 0x298   :  { %v3157_v2 = vpop.eup %3156  ;;  %v1059_v6 = vadd.f32 1.0, %v3155_v15 }
 0x299   :  { %3160 = vrcp.f32 %v1058_v24 }
 0x29a   :  { %3162 = vrcp.f32 %v1059_v6 }
 0x2a4   :  { %v3159_v22 = vpop.eup %3158 }
 0x2a5   :  { %v1071_v4 = vmul.f32 %v3159_v22, %v3157_v2 }
 0x2a6   :  { %v3161_v1 = vpop.eup %3160 }
 0x2a7   :  { %v1070_v26 = vmul.f32 %v3161_v1, %v1068_v28  ;;  %v3163_v8 = vpop.eup %3162 }
 0x2a9   :  { %v3927_v30 = vadd.f32 %v1071_v4, %v1070_v26 }
 0x2ab   :  { %3164 = vtanh.f32 %v3927_v30 }
 0x2b8   :  { %v3165_v3 = vpop.eup %3164 }
 0x2b9   :  { %v3930_v14 = vmul.f32 %v3165_v3, %v3163_v8 }
 0x2bb   :  { %v3934_v35 = vpack.c.bf16 %v3930_v14, %v3930_v14 }
 0x2bd   :  { %v1080_v12 = vshrl.u32 %v3934_v35, 16 }
 0x2bf   :  { %1116 = vmatmul.mubr.bf16.vlgmr.msra.gmra.mxu0 %v1080_v12  ;;  %1157 = vmatmul.mubr.bf16.vlgmr.msra.gmra.mxu1 %v1080_v12 }
 0x2c0   :  { %1166 = vmatpush1.bf16.msra.mxu0 %v3612_v36  ;;  %1207 = vmatpush1.bf16.msra.mxu1 %v3614_v37 }
 0x2c1   :  { %1167 = vmatprep.subr.bf16.mxu0 %v3618_v38  ;;  %1208 = vmatprep.subr.bf16.mxu1 %v3622_v39 }
 0x2c2   :  { %1197 = vmatprep.mubr.bf16.mxu0 %v5022_v33  ;;  %1238 = vmatprep.mubr.bf16.mxu1 %v5022_v33 }
 0x2c4   :  { %1168 = vmatpush1.bf16.msra.mxu0 %v3626_v40  ;;  %1209 = vmatpush1.bf16.msra.mxu1 %v3630_v41 }
 0x2c5   :  { %1169 = vmatprep.subr.bf16.mxu0 %v3632_v42  ;;  %1210 = vmatprep.subr.bf16.mxu1 %v3636_v43 }
 0x2c8   :  { %1170 = vmatpush1.bf16.msra.mxu0 %v3640_v44  ;;  %1211 = vmatpush1.bf16.msra.mxu1 %v3642_v45 }
 0x2c9   :  { %1171 = vmatprep.subr.bf16.mxu0 %v3646_v46  ;;  %1212 = vmatprep.subr.bf16.mxu1 %v3650_v47 }
 0x2cc   :  { %1172 = vmatpush1.bf16.msra.mxu0 %v3657_v49  ;;  %1213 = vmatpush1.bf16.msra.mxu1 %v3659_v50 }
 0x2cd   :  { %1173 = vmatprep.subr.bf16.mxu0 %v3663_v51  ;;  %1214 = vmatprep.subr.bf16.mxu1 %v3665_v52 }
 0x2d0   :  { %1174 = vmatpush1.bf16.msra.mxu0 %v3669_v53  ;;  %1215 = vmatpush1.bf16.msra.mxu1 %v3671_v54 }
 0x2d1   :  { %1175 = vmatprep.subr.bf16.mxu0 %v3675_v55  ;;  %1216 = vmatprep.subr.bf16.mxu1 %v3677_v56 }
 0x2d4   :  { %1176 = vmatpush1.bf16.msra.mxu0 %v3681_v57  ;;  %1217 = vmatpush1.bf16.msra.mxu1 %v3683_v58 }
 0x2d5   :  { %1177 = vmatprep.subr.bf16.mxu0 %v3687_v59  ;;  %1218 = vmatprep.subr.bf16.mxu1 %v3689_v60 }
 0x2d8   :  { %1178 = vmatpush1.bf16.msra.mxu0 %v3693_v61  ;;  %1219 = vmatpush1.bf16.msra.mxu1 %v3695_v62 }
 0x2d9   :  { %1179 = vmatprep.subr.bf16.mxu0 %v3699_v63  ;;  %1220 = vmatprep.subr.bf16.mxu1 %v3701_v0 }
 0x2dc   :  { %1180 = vmatpush1.bf16.msra.mxu0 %v3705_v48  ;;  %1221 = vmatpush1.bf16.msra.mxu1 %v5028_v11 }
 0x2dd   :  { %1251 = vmatprep.subr.bf16.mxu0 %v5029_v25  ;;  %1292 = vmatprep.subr.bf16.mxu1 %v5063_v23  ;;  %v4085_v25 = vld [vmem:[#allocation6 + $0x20] ss:$16 sps:$4 sm:$0xff]  }
 0x2de   :  { %5085 = vst [vmem:[#allocation31_spill] sm:$0xff] %v4085_v25 }
 0x2df   :  { %1198 = vmatmul.mubr.bf16.vlgmr.msra.gmra.mxu0 %v1080_v12  ;;  %1239 = vmatmul.mubr.bf16.vlgmr.msra.gmra.mxu1 %v1080_v12 }
 0x2e0   :  { %1252 = vmatpush1.bf16.msra.mxu0 %v3612_v36  ;;  %1293 = vmatpush1.bf16.msra.mxu1 %v3614_v37  ;;  %v1076_v36 = vunpack.c.l.bf16 %v3934_v35 }
 0x2e1   :  { %1253 = vmatprep.subr.bf16.mxu0 %v3618_v38  ;;  %1294 = vmatprep.subr.bf16.mxu1 %v3622_v39 }
 0x2e2   :  { %1283 = vmatprep.mubr.bf16.mxu0 %v5022_v33  ;;  %1324 = vmatprep.mubr.bf16.mxu1 %v5022_v33  ;;  %v1077_v37 = vsub.f32 %v3930_v14, %v1076_v36 }
 0x2e4   :  { %1254 = vmatpush1.bf16.msra.mxu0 %v3626_v40  ;;  %1295 = vmatpush1.bf16.msra.mxu1 %v3630_v41  ;;  %v1078_v38 = vpack.c.bf16 %v1077_v37, %v1077_v37  ;;  %v4005_v40 = vld [vmem:[#allocation6 + $0xe4] ss:$16 sps:$4 sm:$0xff]   ;;  %v4008_v41 = vld [vmem:[#allocation6 + $0xec] ss:$16 sps:$4 sm:$0xff]  }
 0x2e5   :  { %1255 = vmatprep.subr.bf16.mxu0 %v3632_v42  ;;  %1296 = vmatprep.subr.bf16.mxu1 %v3636_v43  ;;  %v4011_v42 = vld [vmem:[#allocation6 + $0xe0] ss:$16 sps:$4 sm:$0xff]   ;;  %v4014_v43 = vld [vmem:[#allocation6 + $0xe8] ss:$16 sps:$4 sm:$0xff]  }
 0x2e6   :  { %v1248_v39 = vshrl.u32 %v1078_v38, 16 }
 0x2e8   :  { %1256 = vmatpush1.bf16.msra.mxu0 %v3640_v44  ;;  %1297 = vmatpush1.bf16.msra.mxu1 %v3642_v45  ;;  %v4017_v44 = vld [vmem:[#allocation6 + $0xc4] ss:$16 sps:$4 sm:$0xff]   ;;  %v4020_v45 = vld [vmem:[#allocation6 + $0xcc] ss:$16 sps:$4 sm:$0xff]  }
 0x2e9   :  { %1257 = vmatprep.subr.bf16.mxu0 %v3646_v46  ;;  %1298 = vmatprep.subr.bf16.mxu1 %v3650_v47  ;;  %5064 = vst [vmem:[#allocation46_spill] sm:$0xff] %v4020_v45  ;;  %v4025_v46 = vld [vmem:[#allocation6 + $0xc0] ss:$16 sps:$4 sm:$0xff]   ;;  %v4028_v47 = vld [vmem:[#allocation6 + $0xc8] ss:$16 sps:$4 sm:$0xff]  }
 0x2ea   :  { %5065 = vst [vmem:[#allocation44_spill] sm:$0xff] %v4025_v46  ;;  %5066 = vst [vmem:[#allocation12_spill] sm:$0xff] %v4028_v47 }
 0x2ec   :  { %1258 = vmatpush1.bf16.msra.mxu0 %v3657_v49  ;;  %1299 = vmatpush1.bf16.msra.mxu1 %v3659_v50  ;;  %v4031_v49 = vld [vmem:[#allocation6 + $0xa4] ss:$16 sps:$4 sm:$0xff]   ;;  %v4034_v50 = vld [vmem:[#allocation6 + $0xac] ss:$16 sps:$4 sm:$0xff]  }
 0x2ed   :  { %1259 = vmatprep.subr.bf16.mxu0 %v3663_v51  ;;  %1300 = vmatprep.subr.bf16.mxu1 %v3665_v52  ;;  %5067 = vst [vmem:[#allocation13_spill] sm:$0xff] %v4031_v49  ;;  %5068 = vst [vmem:[#allocation14_spill] sm:$0xff] %v4034_v50  ;;  %v4037_v51 = vld [vmem:[#allocation6 + $0xa0] ss:$16 sps:$4 sm:$0xff]   ;;  %v4040_v52 = vld [vmem:[#allocation6 + $0xa8] ss:$16 sps:$4 sm:$0xff]  }
 0x2ee   :  { %5069 = vst [vmem:[#allocation15_spill] sm:$0xff] %v4037_v51  ;;  %5070 = vst [vmem:[#allocation16_spill] sm:$0xff] %v4040_v52 }
 0x2f0   :  { %1260 = vmatpush1.bf16.msra.mxu0 %v3669_v53  ;;  %1301 = vmatpush1.bf16.msra.mxu1 %v3671_v54  ;;  %v4043_v53 = vld [vmem:[#allocation6 + $0x84] ss:$16 sps:$4 sm:$0xff]   ;;  %v4046_v54 = vld [vmem:[#allocation6 + $0x8c] ss:$16 sps:$4 sm:$0xff]  }
 0x2f1   :  { %1261 = vmatprep.subr.bf16.mxu0 %v3675_v55  ;;  %1302 = vmatprep.subr.bf16.mxu1 %v3677_v56  ;;  %5071 = vst [vmem:[#allocation17_spill] sm:$0xff] %v4043_v53  ;;  %5072 = vst [vmem:[#allocation18_spill] sm:$0xff] %v4046_v54  ;;  %v4049_v55 = vld [vmem:[#allocation6 + $0x80] ss:$16 sps:$4 sm:$0xff]   ;;  %v4052_v56 = vld [vmem:[#allocation6 + $0x88] ss:$16 sps:$4 sm:$0xff]  }
 0x2f2   :  { %5073 = vst [vmem:[#allocation19_spill] sm:$0xff] %v4049_v55  ;;  %5074 = vst [vmem:[#allocation20_spill] sm:$0xff] %v4052_v56 }
 0x2f4   :  { %1262 = vmatpush1.bf16.msra.mxu0 %v3681_v57  ;;  %1303 = vmatpush1.bf16.msra.mxu1 %v3683_v58  ;;  %v4055_v57 = vld [vmem:[#allocation6 + $0x64] ss:$16 sps:$4 sm:$0xff]   ;;  %v4058_v58 = vld [vmem:[#allocation6 + $0x6c] ss:$16 sps:$4 sm:$0xff]  }
 0x2f5   :  { %1263 = vmatprep.subr.bf16.mxu0 %v3687_v59  ;;  %1304 = vmatprep.subr.bf16.mxu1 %v3689_v60  ;;  %5075 = vst [vmem:[#allocation21_spill] sm:$0xff] %v4055_v57  ;;  %5076 = vst [vmem:[#allocation22_spill] sm:$0xff] %v4058_v58  ;;  %v4061_v59 = vld [vmem:[#allocation6 + $0x60] ss:$16 sps:$4 sm:$0xff]   ;;  %v4064_v60 = vld [vmem:[#allocation6 + $0x68] ss:$16 sps:$4 sm:$0xff]  }
 0x2f6   :  { %5077 = vst [vmem:[#allocation23_spill] sm:$0xff] %v4061_v59  ;;  %5078 = vst [vmem:[#allocation24_spill] sm:$0xff] %v4064_v60 }
 0x2f8   :  { %1264 = vmatpush1.bf16.msra.mxu0 %v3693_v61  ;;  %1305 = vmatpush1.bf16.msra.mxu1 %v3695_v62  ;;  %v4067_v61 = vld [vmem:[#allocation6 + $0x44] ss:$16 sps:$4 sm:$0xff]   ;;  %v4070_v62 = vld [vmem:[#allocation6 + $0x4c] ss:$16 sps:$4 sm:$0xff]  }
 0x2f9   :  { %1265 = vmatprep.subr.bf16.mxu0 %v3699_v63  ;;  %1306 = vmatprep.subr.bf16.mxu1 %v3701_v0  ;;  %5079 = vst [vmem:[#allocation25_spill] sm:$0xff] %v4067_v61  ;;  %5080 = vst [vmem:[#allocation26_spill] sm:$0xff] %v4070_v62  ;;  %v4073_v63 = vld [vmem:[#allocation6 + $0x40] ss:$16 sps:$4 sm:$0xff]   ;;  %v4076_v0 = vld [vmem:[#allocation6 + $0x48] ss:$16 sps:$4 sm:$0xff]  }
 0x2fa   :  { %5081 = vst [vmem:[#allocation27_spill] sm:$0xff] %v4073_v63  ;;  %5082 = vst [vmem:[#allocation28_spill] sm:$0xff] %v4076_v0 }
 0x2fc   :  { %1266 = vmatpush1.bf16.msra.mxu0 %v3705_v48  ;;  %1307 = vmatpush1.bf16.msra.mxu1 %v5028_v11  ;;  %v4079_v48 = vld [vmem:[#allocation6 + $0x24] ss:$16 sps:$4 sm:$0xff]   ;;  %v4082_v11 = vld [vmem:[#allocation6 + $0x2c] ss:$16 sps:$4 sm:$0xff]  }
 0x2fd   :  { %1387 = vmatprep.subr.bf16.mxu0 %v4005_v40  ;;  %1428 = vmatprep.subr.bf16.mxu1 %v4008_v41  ;;  %5083 = vst [vmem:[#allocation29_spill] sm:$0xff] %v4079_v48  ;;  %5084 = vst [vmem:[#allocation30_spill] sm:$0xff] %v4082_v11 }
 0x2ff   :  { %1284 = vmatmul.mubr.bf16.vlgmr.msra.gmra.mxu0 %v1248_v39  ;;  %1325 = vmatmul.mubr.bf16.vlgmr.msra.gmra.mxu1 %v1248_v39 }
 0x300   :  { %1388 = vmatpush1.bf16.msra.mxu0 %v4011_v42  ;;  %1429 = vmatpush1.bf16.msra.mxu1 %v4014_v43 }
 0x301   :  { %1389 = vmatprep.subr.bf16.mxu0 %v4017_v44  ;;  %1430 = vmatprep.subr.bf16.mxu1 %v4020_v45 }
 0x302   :  { %1419 = vmatprep.mubr.bf16.mxu0 %v5022_v33  ;;  %1460 = vmatprep.mubr.bf16.mxu1 %v5022_v33 }
 0x304   :  { %1390 = vmatpush1.bf16.msra.mxu0 %v4025_v46  ;;  %1431 = vmatpush1.bf16.msra.mxu1 %v4028_v47 }
 0x305   :  { %1391 = vmatprep.subr.bf16.mxu0 %v4031_v49  ;;  %1432 = vmatprep.subr.bf16.mxu1 %v4034_v50 }
 0x308   :  { %1392 = vmatpush1.bf16.msra.mxu0 %v4037_v51  ;;  %1433 = vmatpush1.bf16.msra.mxu1 %v4040_v52 }
 0x309   :  { %1393 = vmatprep.subr.bf16.mxu0 %v4043_v53  ;;  %1434 = vmatprep.subr.bf16.mxu1 %v4046_v54 }
 0x30c   :  { %1394 = vmatpush1.bf16.msra.mxu0 %v4049_v55  ;;  %1435 = vmatpush1.bf16.msra.mxu1 %v4052_v56 }
 0x30d   :  { %1395 = vmatprep.subr.bf16.mxu0 %v4055_v57  ;;  %1436 = vmatprep.subr.bf16.mxu1 %v4058_v58 }
 0x310   :  { %1396 = vmatpush1.bf16.msra.mxu0 %v4061_v59  ;;  %1437 = vmatpush1.bf16.msra.mxu1 %v4064_v60 }
 0x311   :  { %1397 = vmatprep.subr.bf16.mxu0 %v4067_v61  ;;  %1438 = vmatprep.subr.bf16.mxu1 %v4070_v62 }
 0x314   :  { %1398 = vmatpush1.bf16.msra.mxu0 %v4073_v63  ;;  %1439 = vmatpush1.bf16.msra.mxu1 %v4076_v0 }
 0x315   :  { %1399 = vmatprep.subr.bf16.mxu0 %v4079_v48  ;;  %1440 = vmatprep.subr.bf16.mxu1 %v4082_v11 }
 0x318   :  { %1400 = vmatpush1.bf16.msra.mxu0 %v4085_v25  ;;  %1441 = vmatpush1.bf16.msra.mxu1 %v4088_v34 }
 0x319   :  { %1401 = vmatprep.subr.bf16.mxu0 %v4091_v21  ;;  %1442 = vmatprep.subr.bf16.mxu1 %v4094_v32  ;;  %v4217_v21 = vld [vmem:[#allocation3 + $0x8] ss:$16 sps:$4 sm:$0xff]  }
 0x31c   :  { %1402 = vmatpush1.bf16.msra.mxu0 %v4097_v31  ;;  %1443 = vmatpush1.bf16.msra.mxu1 %v4100_v29 }
 0x31d   :  { %1469 = vmatprep.subr.bf16.mxu0 %v4103_v20  ;;  %1510 = vmatprep.subr.bf16.mxu1 %v4106_v19 }
 0x37f   :  { %v1117_v17 = vpop.f32.mrf.mxu0  ;;  %v1158_v13 = vpop.f32.mrf.mxu1 }
 0x381   :  { %v1119_v27 = vpop.f32.mrf.mxu0  ;;  %v1160_v10 = vpop.f32.mrf.mxu1 }
 0x383   :  { %v1121_v18 = vpop.f32.mrf.mxu0  ;;  %v1162_v24 = vpop.f32.mrf.mxu1 }
 0x385   :  { %v1122_v15 = vpop.f32.mrf.mxu0  ;;  %v1163_v2 = vpop.f32.mrf.mxu1 }
 0x39f   :  { %v1199_v22 = vpop.f32.mrf.mxu0  ;;  %v1240_v28 = vpop.f32.mrf.mxu1 }
 0x3a0   :  { %v1200_v14 = vadd.f32 %v1199_v22, %v1117_v17  ;;  %v1241_v2 = vadd.f32 %v1240_v28, %v1158_v13 }
 0x3a1   :  { %v1201_v4 = vpop.f32.mrf.mxu0  ;;  %v1242_v1 = vpop.f32.mrf.mxu1 }
 0x3a2   :  { %v1202_v23 = vadd.f32 %v1201_v4, %v1119_v27  ;;  %v1243_v27 = vadd.f32 %v1242_v1, %v1160_v10  ;;  %v1373_v1 = vrot.slane %v3927_v30, 7  ;;  %v4128_v30 = vld [vmem:[#allocation3 + $0xe0] ss:$16 sps:$4 sm:$0xff]  }
 0x3a3   :  { %v1203_v6 = vpop.f32.mrf.mxu0  ;;  %v1244_v26 = vpop.f32.mrf.mxu1 }
 0x3a5   :  { %v1204_v8 = vpop.f32.mrf.mxu0  ;;  %v1245_v3 = vpop.f32.mrf.mxu1 }
 0x3bf   :  { %v1285_v35 = vpop.f32.mrf.mxu0  ;;  %v1326_v12 = vpop.f32.mrf.mxu1 }
 0x3c0   :  { %v1333_v36 = vadd.f32 %v1285_v35, %v1200_v14  ;;  %v1335_v8 = vadd.f32 %v1326_v12, %v1241_v2 }
 0x3c1   :  { %v1287_v37 = vpop.f32.mrf.mxu0  ;;  %v1328_v38 = vpop.f32.mrf.mxu1 }
 0x3c2   :  { %v1341_v39 = vrot.slane %v1333_v36, 6  ;;  %v1334_v18 = vadd.f32 %v1287_v37, %v1202_v23  ;;  %v1343_v4 = vrot.slane %v1335_v8, 6  ;;  %v1336_v3 = vadd.f32 %v1328_v38, %v1243_v27  ;;  %v4137_v27 = vld [vmem:[#allocation3 + $0xcc] ss:$16 sps:$4 sm:$0xff]  }
 0x3c3   :  { %v1289_v24 = vpop.f32.mrf.mxu0  ;;  %v1330_v15 = vpop.f32.mrf.mxu1 }
 0x3c4   :  { %v1349_v29 = vadd.f32 %v1341_v39, %v3793_v16  ;;  %v1342_v31 = vrot.slane %v1334_v18, 6  ;;  %v1351_v14 = vadd.f32 %v1343_v4, %v3799_v9  ;;  %v1344_v35 = vrot.slane %v1336_v3, 6  ;;  %v4142_v4 = vld [vmem:[#allocation3 + $0xc0] ss:$16 sps:$4 sm:$0xff]   ;;  %v4145_v3 = vld [vmem:[#allocation3 + $0xc8] ss:$16 sps:$4 sm:$0xff]  }
 0x3c5   :  { %v1290_v32 = vpop.f32.mrf.mxu0  ;;  %v1331_v6 = vpop.f32.mrf.mxu1  ;;  %v4208_v9 = vld [vmem:[#allocation3 + $0x4] ss:$16 sps:$4 sm:$0xff]   ;;  %v4214_v16 = vld [vmem:[#allocation3] ss:$16 sps:$4 sm:$0xff]  }
 0x3c6   :  { %v3011_v26 = vmul.f32 -1.442695, %v1349_v29  ;;  %v1350_v17 = vadd.f32 %v1342_v31, %v3795_v5  ;;  %v3013_v23 = vmul.f32 -1.442695, %v1351_v14  ;;  %v1352_v13 = vadd.f32 %v1344_v35, %v3802_v7  ;;  %v4148_v14 = vld [vmem:[#allocation3 + $0xa4] ss:$16 sps:$4 sm:$0xff]  }
 0x3c7   :  { %v4151_v35 = vld [vmem:[#allocation3 + $0xac] ss:$16 sps:$4 sm:$0xff]   ;;  %v4205_v7 = vld [vmem:[#allocation3 + $0x28] ss:$16 sps:$4 sm:$0xff]  }
 0x3c8   :  { %3166 = vpow2.f32 %v3011_v26  ;;  %v3012_v22 = vmul.f32 -1.442695, %v1350_v17  ;;  %v4131_v17 = vld [vmem:[#allocation3 + $0xe8] ss:$16 sps:$4 sm:$0xff]   ;;  %v4211_v5 = vld [vmem:[#allocation3 + $0xc] ss:$16 sps:$4 sm:$0xff]  }
 0x3ca   :  { %3168 = vpow2.f32 %v3012_v22  ;;  %v4134_v22 = vld [vmem:[#allocation3 + $0xc4] ss:$16 sps:$4 sm:$0xff]  }
 0x3cb   :  { %3170 = vpow2.f32 %v3013_v23  ;;  %v4154_v23 = vld [vmem:[#allocation3 + $0xa0] ss:$16 sps:$4 sm:$0xff]  }
 0x3cc   :  { %3172 = vtanh.f32 %v1352_v13  ;;  %v4157_v13 = vld [vmem:[#allocation3 + $0xa8] ss:$16 sps:$4 sm:$0xff]  }
 0x3d5   :  { %v3167_v28 = vpop.eup %3166 }
 0x3d6   :  { %v1362_v36 = vadd.f32 1.0, %v3167_v28  ;;  %v4160_v28 = vld [vmem:[#allocation3 + $0x84] ss:$16 sps:$4 sm:$0xff]  }
 0x3d7   :  { %v3169_v32 = vpop.eup %3168 }
 0x3d8   :  { %3174 = vrcp.f32 %v1362_v36  ;;  %v1363_v29 = vadd.f32 1.0, %v3169_v32  ;;  %v3171_v31 = vpop.eup %3170  ;;  %v4163_v36 = vld [vmem:[#allocation3 + $0x8c] ss:$16 sps:$4 sm:$0xff]   ;;  %v4166_v32 = vld [vmem:[#allocation3 + $0x80] ss:$16 sps:$4 sm:$0xff]  }
 0x3d9   :  { %v3173_v12 = vpop.eup %3172  ;;  %v1364_v39 = vadd.f32 1.0, %v3171_v31  ;;  %v4172_v31 = vld [vmem:[#allocation3 + $0x64] ss:$16 sps:$4 sm:$0xff]  }
 0x3da   :  { %3176 = vrcp.f32 %v1363_v29  ;;  %v4169_v29 = vld [vmem:[#allocation3 + $0x88] ss:$16 sps:$4 sm:$0xff]  }
 0x3db   :  { %3178 = vrcp.f32 %v1364_v39  ;;  %v4190_v39 = vld [vmem:[#allocation3 + $0x40] ss:$16 sps:$4 sm:$0xff]  }
 0x3e5   :  { %v3175_v10 = vpop.eup %3174 }
 0x3e6   :  { %v1376_v37 = vmul.f32 %v3175_v10, %v3173_v12  ;;  %v4175_v12 = vld [vmem:[#allocation3 + $0x6c] ss:$16 sps:$4 sm:$0xff]   ;;  %v4178_v10 = vld [vmem:[#allocation3 + $0x60] ss:$16 sps:$4 sm:$0xff]  }
 0x3e7   :  { %v3177_v38 = vpop.eup %3176  ;;  %5093 = vst [vmem:[#allocation39_spill] sm:$0xff] %v4175_v12 }
 0x3e8   :  { %v1375_v18 = vmul.f32 %v3177_v38, %v1373_v1  ;;  %v3179_v15 = vpop.eup %3178  ;;  %v4181_v1 = vld [vmem:[#allocation3 + $0x68] ss:$16 sps:$4 sm:$0xff]   ;;  %v4187_v38 = vld [vmem:[#allocation3 + $0x4c] ss:$16 sps:$4 sm:$0xff]  }
 0x3e9   :  { %5094 = vst [vmem:[#allocation40_spill] sm:$0xff] %v4187_v38 }
 0x3ea   :  { %v4114_v24 = vadd.f32 %v1376_v37, %v1375_v18  ;;  %v4184_v37 = vld [vmem:[#allocation3 + $0x44] ss:$16 sps:$4 sm:$0xff]   ;;  %v4193_v18 = vld [vmem:[#allocation3 + $0x48] ss:$16 sps:$4 sm:$0xff]  }
 0x3ec   :  { %5092 = vst [vmem:[#allocation38_spill] sm:$0xff] %v4114_v24  ;;  %3180 = vtanh.f32 %v4114_v24  ;;  %v4202_v24 = vld [vmem:[#allocation3 + $0x20] ss:$16 sps:$4 sm:$0xff]  }
 0x3f9   :  { %v3181_v2 = vpop.eup %3180 }
 0x3fa   :  { %v4117_v6 = vmul.f32 %v3181_v2, %v3179_v15  ;;  %v4196_v15 = vld [vmem:[#allocation3 + $0x24] ss:$16 sps:$4 sm:$0xff]   ;;  %v4199_v2 = vld [vmem:[#allocation3 + $0x2c] ss:$16 sps:$4 sm:$0xff]  }
 0x3fc   :  { %v4121_v26 = vpack.c.bf16 %v4117_v6, %v4117_v6 }
 0x3fe   :  { %v4124_v8 = vrot.slane %v4121_v26, 1 }
 0x400   :  { %1420 = vmatmul.mubr.bf16.vlgmr.msra.gmra.mxu0 %v4124_v8  ;;  %1461 = vmatmul.mubr.bf16.vlgmr.msra.gmra.mxu1 %v4124_v8 }
 0x401   :  { %1470 = vmatpush1.bf16.msra.mxu0 %v4128_v30  ;;  %1511 = vmatpush1.bf16.msra.mxu1 %v4131_v17 }
 0x402   :  { %1471 = vmatprep.subr.bf16.mxu0 %v4134_v22  ;;  %1512 = vmatprep.subr.bf16.mxu1 %v4137_v27 }
 0x403   :  { %1501 = vmatprep.mubr.bf16.mxu0 %v5022_v33  ;;  %1542 = vmatprep.mubr.bf16.mxu1 %v5022_v33 }
 0x405   :  { %1472 = vmatpush1.bf16.msra.mxu0 %v4142_v4  ;;  %1513 = vmatpush1.bf16.msra.mxu1 %v4145_v3 }
 0x406   :  { %1473 = vmatprep.subr.bf16.mxu0 %v4148_v14  ;;  %1514 = vmatprep.subr.bf16.mxu1 %v4151_v35 }
 0x409   :  { %1474 = vmatpush1.bf16.msra.mxu0 %v4154_v23  ;;  %1515 = vmatpush1.bf16.msra.mxu1 %v4157_v13 }
 0x40a   :  { %1475 = vmatprep.subr.bf16.mxu0 %v4160_v28  ;;  %1516 = vmatprep.subr.bf16.mxu1 %v4163_v36 }
 0x40d   :  { %1476 = vmatpush1.bf16.msra.mxu0 %v4166_v32  ;;  %1517 = vmatpush1.bf16.msra.mxu1 %v4169_v29 }
 0x40e   :  { %1477 = vmatprep.subr.bf16.mxu0 %v4172_v31  ;;  %1518 = vmatprep.subr.bf16.mxu1 %v4175_v12 }
 0x411   :  { %1478 = vmatpush1.bf16.msra.mxu0 %v4178_v10  ;;  %1519 = vmatpush1.bf16.msra.mxu1 %v4181_v1 }
 0x412   :  { %1479 = vmatprep.subr.bf16.mxu0 %v4184_v37  ;;  %1520 = vmatprep.subr.bf16.mxu1 %v4187_v38 }
 0x415   :  { %1480 = vmatpush1.bf16.msra.mxu0 %v4190_v39  ;;  %1521 = vmatpush1.bf16.msra.mxu1 %v4193_v18 }
 0x416   :  { %1481 = vmatprep.subr.bf16.mxu0 %v4196_v15  ;;  %1522 = vmatprep.subr.bf16.mxu1 %v4199_v2 }
 0x419   :  { %1482 = vmatpush1.bf16.msra.mxu0 %v4202_v24  ;;  %1523 = vmatpush1.bf16.msra.mxu1 %v4205_v7 }
 0x41a   :  { %1483 = vmatprep.subr.bf16.mxu0 %v4208_v9  ;;  %1524 = vmatprep.subr.bf16.mxu1 %v4211_v5 }
 0x41d   :  { %1484 = vmatpush1.bf16.msra.mxu0 %v4214_v16  ;;  %1525 = vmatpush1.bf16.msra.mxu1 %v4217_v21 }
 0x41e   :  { %1554 = vmatprep.subr.bf16.mxu0 %v4103_v20  ;;  %1595 = vmatprep.subr.bf16.mxu1 %v4106_v19 }
 0x420   :  { %1502 = vmatmul.mubr.bf16.vlgmr.msra.gmra.mxu0 %v4124_v8  ;;  %1543 = vmatmul.mubr.bf16.vlgmr.msra.gmra.mxu1 %v4124_v8  ;;  %v1381_v8 = vunpack.c.l.bf16 %v4121_v26 }
 0x421   :  { %1555 = vmatpush1.bf16.msra.mxu0 %v4128_v30  ;;  %1596 = vmatpush1.bf16.msra.mxu1 %v4131_v17 }
 0x422   :  { %1556 = vmatprep.subr.bf16.mxu0 %v4134_v22  ;;  %1597 = vmatprep.subr.bf16.mxu1 %v4137_v27 }
 0x423   :  { %1586 = vmatprep.mubr.bf16.mxu0 %v5022_v33  ;;  %1627 = vmatprep.mubr.bf16.mxu1 %v5022_v33 }
 0x425   :  { %1557 = vmatpush1.bf16.msra.mxu0 %v4142_v4  ;;  %1598 = vmatpush1.bf16.msra.mxu1 %v4145_v3 }
 0x426   :  { %1558 = vmatprep.subr.bf16.mxu0 %v4148_v14  ;;  %1599 = vmatprep.subr.bf16.mxu1 %v4151_v35 }
 0x429   :  { %1559 = vmatpush1.bf16.msra.mxu0 %v4154_v23  ;;  %1600 = vmatpush1.bf16.msra.mxu1 %v4157_v13 }
 0x42a   :  { %1560 = vmatprep.subr.bf16.mxu0 %v4160_v28  ;;  %1601 = vmatprep.subr.bf16.mxu1 %v4163_v36 }
 0x42d   :  { %1561 = vmatpush1.bf16.msra.mxu0 %v4166_v32  ;;  %1602 = vmatpush1.bf16.msra.mxu1 %v4169_v29 }
 0x42e   :  { %1562 = vmatprep.subr.bf16.mxu0 %v4172_v31  ;;  %1603 = vmatprep.subr.bf16.mxu1 %v4175_v12  ;;  %v1382_v12 = vsub.f32 %v4117_v6, %v1381_v8  ;;  %v5095_v6 = vld [vmem:[#allocation33_spill] sm:$0xff]  ;;  %v5098_v8 = vld [vmem:[#allocation36_spill] sm:$0xff] }
 0x431   :  { %1563 = vmatpush1.bf16.msra.mxu0 %v4178_v10  ;;  %1604 = vmatpush1.bf16.msra.mxu1 %v4181_v1 }
 0x432   :  { %1564 = vmatprep.subr.bf16.mxu0 %v4184_v37  ;;  %1605 = vmatprep.subr.bf16.mxu1 %v4187_v38  ;;  %v1383_v38 = vpack.c.bf16 %v1382_v12, %v1382_v12  ;;  %v5096_v12 = vld [vmem:[#allocation34_spill] sm:$0xff] }
 0x434   :  { %v1552_v26 = vrot.slane %v1383_v38, 1  ;;  %v5097_v38 = vld [vmem:[#allocation35_spill] sm:$0xff] }
 0x435   :  { %1565 = vmatpush1.bf16.msra.mxu0 %v4190_v39  ;;  %1606 = vmatpush1.bf16.msra.mxu1 %v4193_v18 }
 0x436   :  { %1566 = vmatprep.subr.bf16.mxu0 %v4196_v15  ;;  %1607 = vmatprep.subr.bf16.mxu1 %v4199_v2 }
 0x439   :  { %1567 = vmatpush1.bf16.msra.mxu0 %v4202_v24  ;;  %1608 = vmatpush1.bf16.msra.mxu1 %v4205_v7 }
 0x43a   :  { %1568 = vmatprep.subr.bf16.mxu0 %v4208_v9  ;;  %1609 = vmatprep.subr.bf16.mxu1 %v4211_v5 }
 0x43d   :  { %1569 = vmatpush1.bf16.msra.mxu0 %v4214_v16  ;;  %1610 = vmatpush1.bf16.msra.mxu1 %v4217_v21 }
 0x43e   :  { %1692 = vmatprep.subr.bf16.mxu0 %v4005_v40  ;;  %1733 = vmatprep.subr.bf16.mxu1 %v4008_v41 }
 0x440   :  { %1587 = vmatmul.mubr.bf16.vlgmr.msra.gmra.mxu0 %v1552_v26  ;;  %1628 = vmatmul.mubr.bf16.vlgmr.msra.gmra.mxu1 %v1552_v26 }
 0x441   :  { %1693 = vmatpush1.bf16.msra.mxu0 %v4011_v42  ;;  %1734 = vmatpush1.bf16.msra.mxu1 %v4014_v43 }
 0x442   :  { %1694 = vmatprep.subr.bf16.mxu0 %v4017_v44  ;;  %1735 = vmatprep.subr.bf16.mxu1 %v4020_v45 }
 0x443   :  { %1724 = vmatprep.mubr.bf16.mxu0 %v5022_v33  ;;  %1765 = vmatprep.mubr.bf16.mxu1 %v5022_v33 }
 0x445   :  { %1695 = vmatpush1.bf16.msra.mxu0 %v4025_v46  ;;  %1736 = vmatpush1.bf16.msra.mxu1 %v4028_v47 }
 0x446   :  { %1696 = vmatprep.subr.bf16.mxu0 %v4031_v49  ;;  %1737 = vmatprep.subr.bf16.mxu1 %v4034_v50  ;;  %v5099_v49 = vld [vmem:[#allocation47_spill] sm:$0xff] }
 0x449   :  { %1697 = vmatpush1.bf16.msra.mxu0 %v4037_v51  ;;  %1738 = vmatpush1.bf16.msra.mxu1 %v4040_v52 }
 0x44a   :  { %1698 = vmatprep.subr.bf16.mxu0 %v4043_v53  ;;  %1739 = vmatprep.subr.bf16.mxu1 %v4046_v54 }
 0x44d   :  { %1699 = vmatpush1.bf16.msra.mxu0 %v4049_v55  ;;  %1740 = vmatpush1.bf16.msra.mxu1 %v4052_v56 }
 0x44e   :  { %1700 = vmatprep.subr.bf16.mxu0 %v4055_v57  ;;  %1741 = vmatprep.subr.bf16.mxu1 %v4058_v58 }
 0x451   :  { %1701 = vmatpush1.bf16.msra.mxu0 %v4061_v59  ;;  %1742 = vmatpush1.bf16.msra.mxu1 %v4064_v60 }
 0x452   :  { %1702 = vmatprep.subr.bf16.mxu0 %v4067_v61  ;;  %1743 = vmatprep.subr.bf16.mxu1 %v4070_v62 }
 0x455   :  { %1703 = vmatpush1.bf16.msra.mxu0 %v4073_v63  ;;  %1744 = vmatpush1.bf16.msra.mxu1 %v4076_v0 }
 0x456   :  { %1704 = vmatprep.subr.bf16.mxu0 %v4079_v48  ;;  %1745 = vmatprep.subr.bf16.mxu1 %v4082_v11 }
 0x459   :  { %1705 = vmatpush1.bf16.msra.mxu0 %v4085_v25  ;;  %1746 = vmatpush1.bf16.msra.mxu1 %v4088_v34 }
 0x45a   :  { %1706 = vmatprep.subr.bf16.mxu0 %v5095_v6  ;;  %1747 = vmatprep.subr.bf16.mxu1 %v5096_v12 }
 0x45d   :  { %1707 = vmatpush1.bf16.msra.mxu0 %v5097_v38  ;;  %1748 = vmatpush1.bf16.msra.mxu1 %v5098_v8 }
 0x45e   :  { %1774 = vmatprep.subr.bf16.mxu0 %v4103_v20  ;;  %1815 = vmatprep.subr.bf16.mxu1 %v4106_v19 }
 0x4c0   :  { %v1421_v26 = vpop.f32.mrf.mxu0  ;;  %v1462_v48 = vpop.f32.mrf.mxu1 }
 0x4c2   :  { %v1423_v0 = vpop.f32.mrf.mxu0  ;;  %v1464_v11 = vpop.f32.mrf.mxu1 }
 0x4c4   :  { %v1425_v63 = vpop.f32.mrf.mxu0  ;;  %v1466_v25 = vpop.f32.mrf.mxu1 }
 0x4c6   :  { %v1426_v62 = vpop.f32.mrf.mxu0  ;;  %v1467_v34 = vpop.f32.mrf.mxu1 }
 0x4e0   :  { %v1503_v61 = vpop.f32.mrf.mxu0  ;;  %v1544_v6 = vpop.f32.mrf.mxu1 }
 0x4e1   :  { %v1504_v57 = vadd.f32 %v1503_v61, %v1421_v26  ;;  %v1545_v34 = vadd.f32 %v1544_v6, %v1462_v48  ;;  %v5102_v48 = vld [vmem:[#allocation50_spill] sm:$0xff] }
 0x4e2   :  { %v1505_v60 = vpop.f32.mrf.mxu0  ;;  %v1546_v12 = vpop.f32.mrf.mxu1 }
 0x4e3   :  { %v1506_v54 = vadd.f32 %v1505_v60, %v1423_v0  ;;  %v1547_v60 = vadd.f32 %v1546_v12, %v1464_v11  ;;  %v5103_v12 = vld [vmem:[#allocation38_spill] sm:$0xff] }
 0x4e4   :  { %v1507_v59 = vpop.f32.mrf.mxu0  ;;  %v1548_v38 = vpop.f32.mrf.mxu1 }
 0x4e6   :  { %v1508_v58 = vpop.f32.mrf.mxu0  ;;  %v1549_v8 = vpop.f32.mrf.mxu1 }
 0x4e7   :  { %v5100_v8 = vld [vmem:[#allocation48_spill] sm:$0xff] }
 0x500   :  { %v1588_v56 = vpop.f32.mrf.mxu0  ;;  %v1629_v55 = vpop.f32.mrf.mxu1 }
 0x501   :  { %v1636_v53 = vadd.f32 %v1588_v56, %v1504_v57  ;;  %v1638_v58 = vadd.f32 %v1629_v55, %v1545_v34 }
 0x502   :  { %v1590_v52 = vpop.f32.mrf.mxu0  ;;  %v1631_v51 = vpop.f32.mrf.mxu1 }
 0x503   :  { %v1644_v50 = vrot.slane %v1636_v53, 5  ;;  %v1637_v63 = vadd.f32 %v1590_v52, %v1506_v54  ;;  %v1646_v56 = vrot.slane %v1638_v58, 5  ;;  %v1639_v57 = vadd.f32 %v1631_v51, %v1547_v60  ;;  %v5101_v53 = vld [vmem:[#allocation49_spill] sm:$0xff] }
 0x504   :  { %v1592_v25 = vpop.f32.mrf.mxu0  ;;  %v1633_v62 = vpop.f32.mrf.mxu1 }
 0x505   :  { %v1652_v47 = vadd.f32 %v1644_v50, %v5099_v49  ;;  %v1645_v46 = vrot.slane %v1637_v63, 5  ;;  %v1654_v52 = vadd.f32 %v1646_v56, %v5101_v53  ;;  %v1647_v54 = vrot.slane %v1639_v57, 5 }
 0x506   :  { %v1593_v45 = vpop.f32.mrf.mxu0  ;;  %v1634_v59 = vpop.f32.mrf.mxu1  ;;  %v1676_v25 = vrot.slane %v5103_v12, 7  ;;  %v5115_v12 = vld [vmem:[#allocation19_spill] sm:$0xff] }
 0x507   :  { %v3014_v38 = vmul.f32 -1.442695, %v1652_v47  ;;  %v1653_v61 = vadd.f32 %v1645_v46, %v5100_v8  ;;  %v3016_v0 = vmul.f32 -1.442695, %v1654_v52  ;;  %v1655_v6 = vadd.f32 %v1647_v54, %v5102_v48  ;;  %v5104_v52 = vld [vmem:[#allocation39_spill] sm:$0xff]  ;;  %v5105_v54 = vld [vmem:[#allocation40_spill] sm:$0xff] }
 0x509   :  { %3182 = vpow2.f32 %v3014_v38  ;;  %v3015_v26 = vmul.f32 -1.442695, %v1653_v61 }
 0x50b   :  { %3184 = vpow2.f32 %v3015_v26 }
 0x50c   :  { %3186 = vpow2.f32 %v3016_v0 }
 0x50d   :  { %3188 = vtanh.f32 %v1655_v6 }
 0x516   :  { %v3183_v50 = vpop.eup %3182 }
 0x517   :  { %v1665_v63 = vadd.f32 1.0, %v3183_v50 }
 0x518   :  { %v3185_v45 = vpop.eup %3184 }
 0x519   :  { %3190 = vrcp.f32 %v1665_v63  ;;  %v1666_v47 = vadd.f32 1.0, %v3185_v45  ;;  %v3187_v46 = vpop.eup %3186 }
 0x51a   :  { %v3189_v55 = vpop.eup %3188  ;;  %v1667_v34 = vadd.f32 1.0, %v3187_v46  ;;  %v5107_v46 = vld [vmem:[#allocation44_spill] sm:$0xff] }
 0x51b   :  { %3192 = vrcp.f32 %v1666_v47  ;;  %v5106_v47 = vld [vmem:[#allocation46_spill] sm:$0xff] }
 0x51c   :  { %3194 = vrcp.f32 %v1667_v34  ;;  %v5119_v34 = vld [vmem:[#allocation23_spill] sm:$0xff] }
 0x526   :  { %v3191_v11 = vpop.eup %3190 }
 0x527   :  { %v1679_v51 = vmul.f32 %v3191_v11, %v3189_v55  ;;  %v5108_v55 = vld [vmem:[#allocation12_spill] sm:$0xff]  ;;  %v5111_v11 = vld [vmem:[#allocation15_spill] sm:$0xff] }
 0x528   :  { %v3193_v62 = vpop.eup %3192 }
 0x529   :  { %v1678_v59 = vmul.f32 %v3193_v62, %v1676_v25  ;;  %v3195_v58 = vpop.eup %3194  ;;  %v5116_v25 = vld [vmem:[#allocation20_spill] sm:$0xff]  ;;  %v5118_v62 = vld [vmem:[#allocation22_spill] sm:$0xff] }
 0x52b   :  { %v4299_v38 = vadd.f32 %v1679_v51, %v1678_v59  ;;  %v5117_v51 = vld [vmem:[#allocation21_spill] sm:$0xff]  ;;  %v5120_v59 = vld [vmem:[#allocation24_spill] sm:$0xff] }
 0x52d   :  { %3196 = vtanh.f32 %v4299_v38 }
 0x53a   :  { %v3197_v61 = vpop.eup %3196 }
 0x53b   :  { %v4302_v26 = vmul.f32 %v3197_v61, %v3195_v58  ;;  %v5121_v58 = vld [vmem:[#allocation25_spill] sm:$0xff]  ;;  %v5122_v61 = vld [vmem:[#allocation26_spill] sm:$0xff] }
 0x53d   :  { %v4306_v60 = vpack.c.bf16 %v4302_v26, %v4302_v26 }
 0x53f   :  { %v1688_v56 = vshrl.u32 %v4306_v60, 16  ;;  %v1684_v0 = vunpack.c.l.bf16 %v4306_v60  ;;  %v5124_v60 = vld [vmem:[#allocation28_spill] sm:$0xff] }
 0x541   :  { %v1690_v57 = vrot.slane %v1688_v56, 1  ;;  %v1685_v6 = vsub.f32 %v4302_v26, %v1684_v0  ;;  %v5123_v26 = vld [vmem:[#allocation27_spill] sm:$0xff]  ;;  %v5125_v56 = vld [vmem:[#allocation29_spill] sm:$0xff] }
 0x542   :  { %v5127_v0 = vld [vmem:[#allocation31_spill] sm:$0xff] }
 0x543   :  { %1725 = vmatmul.mubr.bf16.vlgmr.msra.gmra.mxu0 %v1690_v57  ;;  %1766 = vmatmul.mubr.bf16.vlgmr.msra.gmra.mxu1 %v1690_v57  ;;  %v1686_v50 = vpack.c.bf16 %v1685_v6, %v1685_v6  ;;  %v5128_v6 = vld [vmem:[#allocation32_spill] sm:$0xff] }
 0x544   :  { %1775 = vmatpush1.bf16.msra.mxu0 %v4128_v30  ;;  %1816 = vmatpush1.bf16.msra.mxu1 %v4131_v17 }
 0x545   :  { %1776 = vmatprep.subr.bf16.mxu0 %v4134_v22  ;;  %1817 = vmatprep.subr.bf16.mxu1 %v4137_v27  ;;  %v1857_v63 = vshrl.u32 %v1686_v50, 16  ;;  %v5129_v50 = vld [vmem:[#allocation33_spill] sm:$0xff] }
 0x546   :  { %1806 = vmatprep.mubr.bf16.mxu0 %v5022_v33  ;;  %1847 = vmatprep.mubr.bf16.mxu1 %v5022_v33 }
 0x547   :  { %v1859_v45 = vrot.slane %v1857_v63, 1  ;;  %v5130_v63 = vld [vmem:[#allocation34_spill] sm:$0xff] }
 0x548   :  { %1777 = vmatpush1.bf16.msra.mxu0 %v4142_v4  ;;  %1818 = vmatpush1.bf16.msra.mxu1 %v4145_v3 }
 0x549   :  { %1778 = vmatprep.subr.bf16.mxu0 %v4148_v14  ;;  %1819 = vmatprep.subr.bf16.mxu1 %v4151_v35 }
 0x54c   :  { %1779 = vmatpush1.bf16.msra.mxu0 %v4154_v23  ;;  %1820 = vmatpush1.bf16.msra.mxu1 %v4157_v13 }
 0x54d   :  { %1780 = vmatprep.subr.bf16.mxu0 %v4160_v28  ;;  %1821 = vmatprep.subr.bf16.mxu1 %v4163_v36 }
 0x550   :  { %1781 = vmatpush1.bf16.msra.mxu0 %v4166_v32  ;;  %1822 = vmatpush1.bf16.msra.mxu1 %v4169_v29 }
 0x551   :  { %1782 = vmatprep.subr.bf16.mxu0 %v4172_v31  ;;  %1823 = vmatprep.subr.bf16.mxu1 %v5104_v52 }
 0x554   :  { %1783 = vmatpush1.bf16.msra.mxu0 %v4178_v10  ;;  %1824 = vmatpush1.bf16.msra.mxu1 %v4181_v1 }
 0x555   :  { %1784 = vmatprep.subr.bf16.mxu0 %v4184_v37  ;;  %1825 = vmatprep.subr.bf16.mxu1 %v5105_v54 }
 0x558   :  { %1785 = vmatpush1.bf16.msra.mxu0 %v4190_v39  ;;  %1826 = vmatpush1.bf16.msra.mxu1 %v4193_v18 }
 0x559   :  { %1786 = vmatprep.subr.bf16.mxu0 %v4196_v15  ;;  %1827 = vmatprep.subr.bf16.mxu1 %v4199_v2 }
 0x55c   :  { %1787 = vmatpush1.bf16.msra.mxu0 %v4202_v24  ;;  %1828 = vmatpush1.bf16.msra.mxu1 %v4205_v7 }
 0x55d   :  { %1788 = vmatprep.subr.bf16.mxu0 %v4208_v9  ;;  %1829 = vmatprep.subr.bf16.mxu1 %v4211_v5 }
 0x560   :  { %1789 = vmatpush1.bf16.msra.mxu0 %v4214_v16  ;;  %1830 = vmatpush1.bf16.msra.mxu1 %v4217_v21 }
 0x561   :  { %1861 = vmatprep.subr.bf16.mxu0 %v4103_v20  ;;  %1902 = vmatprep.subr.bf16.mxu1 %v4106_v19 }
 0x563   :  { %1807 = vmatmul.mubr.bf16.vlgmr.msra.gmra.mxu0 %v1690_v57  ;;  %1848 = vmatmul.mubr.bf16.vlgmr.msra.gmra.mxu1 %v1690_v57  ;;  %v5126_v57 = vld [vmem:[#allocation30_spill] sm:$0xff] }
 0x564   :  { %1862 = vmatpush1.bf16.msra.mxu0 %v4128_v30  ;;  %1903 = vmatpush1.bf16.msra.mxu1 %v4131_v17 }
 0x565   :  { %1863 = vmatprep.subr.bf16.mxu0 %v4134_v22  ;;  %1904 = vmatprep.subr.bf16.mxu1 %v4137_v27 }
 0x566   :  { %1893 = vmatprep.mubr.bf16.mxu0 %v5022_v33  ;;  %1934 = vmatprep.mubr.bf16.mxu1 %v5022_v33 }
 0x568   :  { %1864 = vmatpush1.bf16.msra.mxu0 %v4142_v4  ;;  %1905 = vmatpush1.bf16.msra.mxu1 %v4145_v3 }
 0x569   :  { %1865 = vmatprep.subr.bf16.mxu0 %v4148_v14  ;;  %1906 = vmatprep.subr.bf16.mxu1 %v4151_v35 }
 0x56c   :  { %1866 = vmatpush1.bf16.msra.mxu0 %v4154_v23  ;;  %1907 = vmatpush1.bf16.msra.mxu1 %v4157_v13 }
 0x56d   :  { %1867 = vmatprep.subr.bf16.mxu0 %v4160_v28  ;;  %1908 = vmatprep.subr.bf16.mxu1 %v4163_v36 }
 0x570   :  { %1868 = vmatpush1.bf16.msra.mxu0 %v4166_v32  ;;  %1909 = vmatpush1.bf16.msra.mxu1 %v4169_v29 }
 0x571   :  { %1869 = vmatprep.subr.bf16.mxu0 %v4172_v31  ;;  %1910 = vmatprep.subr.bf16.mxu1 %v5104_v52 }
 0x574   :  { %1870 = vmatpush1.bf16.msra.mxu0 %v4178_v10  ;;  %1911 = vmatpush1.bf16.msra.mxu1 %v4181_v1 }
 0x575   :  { %1871 = vmatprep.subr.bf16.mxu0 %v4184_v37  ;;  %1912 = vmatprep.subr.bf16.mxu1 %v5105_v54 }
 0x578   :  { %1872 = vmatpush1.bf16.msra.mxu0 %v4190_v39  ;;  %1913 = vmatpush1.bf16.msra.mxu1 %v4193_v18 }
 0x579   :  { %1873 = vmatprep.subr.bf16.mxu0 %v4196_v15  ;;  %1914 = vmatprep.subr.bf16.mxu1 %v4199_v2 }
 0x57c   :  { %1874 = vmatpush1.bf16.msra.mxu0 %v4202_v24  ;;  %1915 = vmatpush1.bf16.msra.mxu1 %v4205_v7 }
 0x57d   :  { %1875 = vmatprep.subr.bf16.mxu0 %v4208_v9  ;;  %1916 = vmatprep.subr.bf16.mxu1 %v4211_v5 }
 0x580   :  { %1876 = vmatpush1.bf16.msra.mxu0 %v4214_v16  ;;  %1917 = vmatpush1.bf16.msra.mxu1 %v4217_v21 }
 0x581   :  { %1997 = vmatprep.subr.bf16.mxu0 %v4005_v40  ;;  %2038 = vmatprep.subr.bf16.mxu1 %v4008_v41  ;;  %v5109_v40 = vld [vmem:[#allocation13_spill] sm:$0xff]  ;;  %v5110_v41 = vld [vmem:[#allocation14_spill] sm:$0xff] }
 0x583   :  { %1894 = vmatmul.mubr.bf16.vlgmr.msra.gmra.mxu0 %v1859_v45  ;;  %1935 = vmatmul.mubr.bf16.vlgmr.msra.gmra.mxu1 %v1859_v45  ;;  %v5131_v45 = vld [vmem:[#allocation35_spill] sm:$0xff] }
 0x584   :  { %1998 = vmatpush1.bf16.msra.mxu0 %v4011_v42  ;;  %2039 = vmatpush1.bf16.msra.mxu1 %v4014_v43  ;;  %v5112_v42 = vld [vmem:[#allocation16_spill] sm:$0xff]  ;;  %v5113_v43 = vld [vmem:[#allocation17_spill] sm:$0xff] }
 0x585   :  { %1999 = vmatprep.subr.bf16.mxu0 %v4017_v44  ;;  %2040 = vmatprep.subr.bf16.mxu1 %v5106_v47  ;;  %v5114_v44 = vld [vmem:[#allocation18_spill] sm:$0xff]  ;;  %v5132_v47 = vld [vmem:[#allocation36_spill] sm:$0xff] }
 0x586   :  { %2029 = vmatprep.mubr.bf16.mxu0 %v5022_v33  ;;  %2070 = vmatprep.mubr.bf16.mxu1 %v5022_v33 }
 0x588   :  { %2000 = vmatpush1.bf16.msra.mxu0 %v5107_v46  ;;  %2041 = vmatpush1.bf16.msra.mxu1 %v5108_v55 }
 0x589   :  { %2001 = vmatprep.subr.bf16.mxu0 %v5109_v40  ;;  %2042 = vmatprep.subr.bf16.mxu1 %v5110_v41 }
 0x58c   :  { %2002 = vmatpush1.bf16.msra.mxu0 %v5111_v11  ;;  %2043 = vmatpush1.bf16.msra.mxu1 %v5112_v42 }
 0x58d   :  { %2003 = vmatprep.subr.bf16.mxu0 %v5113_v43  ;;  %2044 = vmatprep.subr.bf16.mxu1 %v5114_v44 }
 0x590   :  { %2004 = vmatpush1.bf16.msra.mxu0 %v5115_v12  ;;  %2045 = vmatpush1.bf16.msra.mxu1 %v5116_v25 }
 0x591   :  { %2005 = vmatprep.subr.bf16.mxu0 %v5117_v51  ;;  %2046 = vmatprep.subr.bf16.mxu1 %v5118_v62 }
 0x594   :  { %2006 = vmatpush1.bf16.msra.mxu0 %v5119_v34  ;;  %2047 = vmatpush1.bf16.msra.mxu1 %v5120_v59 }
 0x595   :  { %2007 = vmatprep.subr.bf16.mxu0 %v5121_v58  ;;  %2048 = vmatprep.subr.bf16.mxu1 %v5122_v61 }
 0x598   :  { %2008 = vmatpush1.bf16.msra.mxu0 %v5123_v26  ;;  %2049 = vmatpush1.bf16.msra.mxu1 %v5124_v60 }
 0x599   :  { %2009 = vmatprep.subr.bf16.mxu0 %v5125_v56  ;;  %2050 = vmatprep.subr.bf16.mxu1 %v5126_v57 }
 0x59c   :  { %2010 = vmatpush1.bf16.msra.mxu0 %v5127_v0  ;;  %2051 = vmatpush1.bf16.msra.mxu1 %v5128_v6 }
 0x59d   :  { %2011 = vmatprep.subr.bf16.mxu0 %v5129_v50  ;;  %2052 = vmatprep.subr.bf16.mxu1 %v5130_v63 }
 0x5a0   :  { %2012 = vmatpush1.bf16.msra.mxu0 %v5131_v45  ;;  %2053 = vmatpush1.bf16.msra.mxu1 %v5132_v47 }
 0x5a1   :  { %2079 = vmatprep.subr.bf16.mxu0 %v4103_v20  ;;  %2120 = vmatprep.subr.bf16.mxu1 %v4106_v19 }
 0x603   :  { %v1726_v46 = vpop.f32.mrf.mxu0  ;;  %v1767_v55 = vpop.f32.mrf.mxu1 }
 0x605   :  { %v1728_v40 = vpop.f32.mrf.mxu0  ;;  %v1769_v41 = vpop.f32.mrf.mxu1 }
 0x607   :  { %v1730_v11 = vpop.f32.mrf.mxu0  ;;  %v1771_v42 = vpop.f32.mrf.mxu1 }
 0x609   :  { %v1731_v43 = vpop.f32.mrf.mxu0  ;;  %v1772_v44 = vpop.f32.mrf.mxu1 }
 0x623   :  { %v1808_v12 = vpop.f32.mrf.mxu0  ;;  %v1849_v25 = vpop.f32.mrf.mxu1 }
 0x624   :  { %v1809_v26 = vadd.f32 %v1808_v12, %v1726_v46  ;;  %v1850_v42 = vadd.f32 %v1849_v25, %v1767_v55 }
 0x625   :  { %v1810_v51 = vpop.f32.mrf.mxu0  ;;  %v1851_v62 = vpop.f32.mrf.mxu1 }
 0x626   :  { %v1811_v57 = vadd.f32 %v1810_v51, %v1728_v40  ;;  %v1852_v40 = vadd.f32 %v1851_v62, %v1769_v41  ;;  %v1983_v62 = vrot.slane %v4299_v38, 7  ;;  %v5133_v38 = vld [vmem:[#allocation37_spill] sm:$0xff] }
 0x627   :  { %v1812_v34 = vpop.f32.mrf.mxu0  ;;  %v1853_v59 = vpop.f32.mrf.mxu1 }
 0x629   :  { %v1813_v58 = vpop.f32.mrf.mxu0  ;;  %v1854_v61 = vpop.f32.mrf.mxu1 }
 0x643   :  { %v1895_v60 = vpop.f32.mrf.mxu0  ;;  %v1936_v56 = vpop.f32.mrf.mxu1 }
 0x644   :  { %v1943_v0 = vadd.f32 %v1895_v60, %v1809_v26  ;;  %v1945_v58 = vadd.f32 %v1936_v56, %v1850_v42 }
 0x645   :  { %v1897_v6 = vpop.f32.mrf.mxu0  ;;  %v1938_v50 = vpop.f32.mrf.mxu1 }
 0x646   :  { %v1951_v63 = vrot.slane %v1943_v0, 4  ;;  %v1944_v45 = vadd.f32 %v1897_v6, %v1811_v57  ;;  %v1953_v51 = vrot.slane %v1945_v58, 4  ;;  %v1946_v61 = vadd.f32 %v1938_v50, %v1852_v40  ;;  %v4585_v40 = vld [vmem:[#allocation6 + $0xc] ss:$16 sps:$4 sm:$0xff]  }
 0x647   :  { %v1899_v47 = vpop.f32.mrf.mxu0  ;;  %v1940_v11 = vpop.f32.mrf.mxu1  ;;  %5135 = vst [vmem:[#allocation42_spill] sm:$0xff] %v4585_v40 }
 0x648   :  { %v1959_v43 = vadd.f32 %v1951_v63, %v5099_v49  ;;  %v1952_v44 = vrot.slane %v1944_v45, 4  ;;  %v1961_v26 = vadd.f32 %v1953_v51, %v5101_v53  ;;  %v1954_v60 = vrot.slane %v1946_v61, 4  ;;  %v4588_v51 = vld [vmem:[#allocation6] ss:$16 sps:$4 sm:$0xff]   ;;  %v4591_v61 = vld [vmem:[#allocation6 + $0x8] ss:$16 sps:$4 sm:$0xff]  }
 0x649   :  { %v1900_v19 = vpop.f32.mrf.mxu0  ;;  %v1941_v34 = vpop.f32.mrf.mxu1  ;;  %5136 = vst [vmem:[#allocation43_spill] sm:$0xff] %v4588_v51  ;;  %5137 = vst [vmem:[#allocation45_spill] sm:$0xff] %v4591_v61 }
 0x64a   :  { %v3017_v59 = vmul.f32 -1.442695, %v1959_v43  ;;  %v1960_v46 = vadd.f32 %v1952_v44, %v5100_v8  ;;  %v3019_v57 = vmul.f32 -1.442695, %v1961_v26  ;;  %v1962_v55 = vadd.f32 %v1954_v60, %v5102_v48  ;;  %v4594_v26 = vld [vmem:[#allocation3 + $0xe4] ss:$16 sps:$4 sm:$0xff]  }
 0x64b   :  { %v4597_v60 = vld [vmem:[#allocation3 + $0xec] ss:$16 sps:$4 sm:$0xff]  }
 0x64c   :  { %3198 = vpow2.f32 %v3017_v59  ;;  %v3018_v12 = vmul.f32 -1.442695, %v1960_v46  ;;  %v4579_v46 = vld [vmem:[#allocation6 + $0x28] ss:$16 sps:$4 sm:$0xff]  }
 0x64e   :  { %3200 = vpow2.f32 %v3018_v12  ;;  %v4582_v12 = vld [vmem:[#allocation6 + $0x4] ss:$16 sps:$4 sm:$0xff]  }
 0x64f   :  { %3202 = vpow2.f32 %v3019_v57  ;;  %5134 = vst [vmem:[#allocation41_spill] sm:$0xff] %v4582_v12 }
 0x650   :  { %3204 = vtanh.f32 %v1962_v55 }
 0x659   :  { %v3199_v25 = vpop.eup %3198 }
 0x65a   :  { %v1972_v0 = vadd.f32 1.0, %v3199_v25 }
 0x65b   :  { %v3201_v19 = vpop.eup %3200 }
 0x65c   :  { %3206 = vrcp.f32 %v1972_v0  ;;  %v1973_v56 = vadd.f32 1.0, %v3201_v19  ;;  %v3203_v6 = vpop.eup %3202 }
 0x65d   :  { %v3205_v63 = vpop.eup %3204  ;;  %v1974_v47 = vadd.f32 1.0, %v3203_v6 }
 0x65e   :  { %3208 = vrcp.f32 %v1973_v56 }
 0x65f   :  { %3210 = vrcp.f32 %v1974_v47 }
 0x669   :  { %v3207_v41 = vpop.eup %3206 }
 0x66a   :  { %v1986_v50 = vmul.f32 %v3207_v41, %v3205_v63 }
 0x66b   :  { %v3209_v45 = vpop.eup %3208 }
 0x66c   :  { %v1985_v11 = vmul.f32 %v3209_v45, %v1983_v62  ;;  %v3211_v43 = vpop.eup %3210 }
 0x66e   :  { %v4418_v42 = vadd.f32 %v1986_v50, %v1985_v11 }
 0x670   :  { %3212 = vtanh.f32 %v4418_v42 }
 0x67d   :  { %v3213_v44 = vpop.eup %3212 }
 0x67e   :  { %v4421_v34 = vmul.f32 %v3213_v44, %v3211_v43 }
 0x680   :  { %v4425_v59 = vpack.c.bf16 %v4421_v34, %v4421_v34 }
 0x682   :  { %v1995_v58 = vrot.slane %v4425_v59, 2 }
 0x684   :  { %2030 = vmatmul.mubr.bf16.vlgmr.msra.gmra.mxu0 %v1995_v58  ;;  %2071 = vmatmul.mubr.bf16.vlgmr.msra.gmra.mxu1 %v1995_v58 }
 0x685   :  { %2080 = vmatpush1.bf16.msra.mxu0 %v4128_v30  ;;  %2121 = vmatpush1.bf16.msra.mxu1 %v4131_v17 }
 0x686   :  { %2081 = vmatprep.subr.bf16.mxu0 %v4134_v22  ;;  %2122 = vmatprep.subr.bf16.mxu1 %v4137_v27 }
 0x687   :  { %2111 = vmatprep.mubr.bf16.mxu0 %v5022_v33  ;;  %2152 = vmatprep.mubr.bf16.mxu1 %v5022_v33 }
 0x689   :  { %2082 = vmatpush1.bf16.msra.mxu0 %v4142_v4  ;;  %2123 = vmatpush1.bf16.msra.mxu1 %v4145_v3 }
 0x68a   :  { %2083 = vmatprep.subr.bf16.mxu0 %v4148_v14  ;;  %2124 = vmatprep.subr.bf16.mxu1 %v4151_v35 }
 0x68d   :  { %2084 = vmatpush1.bf16.msra.mxu0 %v4154_v23  ;;  %2125 = vmatpush1.bf16.msra.mxu1 %v4157_v13 }
 0x68e   :  { %2085 = vmatprep.subr.bf16.mxu0 %v4160_v28  ;;  %2126 = vmatprep.subr.bf16.mxu1 %v4163_v36 }
 0x691   :  { %2086 = vmatpush1.bf16.msra.mxu0 %v4166_v32  ;;  %2127 = vmatpush1.bf16.msra.mxu1 %v4169_v29 }
 0x692   :  { %2087 = vmatprep.subr.bf16.mxu0 %v4172_v31  ;;  %2128 = vmatprep.subr.bf16.mxu1 %v5104_v52 }
 0x695   :  { %2088 = vmatpush1.bf16.msra.mxu0 %v4178_v10  ;;  %2129 = vmatpush1.bf16.msra.mxu1 %v4181_v1 }
 0x696   :  { %2089 = vmatprep.subr.bf16.mxu0 %v4184_v37  ;;  %2130 = vmatprep.subr.bf16.mxu1 %v5105_v54 }
 0x699   :  { %2090 = vmatpush1.bf16.msra.mxu0 %v4190_v39  ;;  %2131 = vmatpush1.bf16.msra.mxu1 %v4193_v18 }
 0x69a   :  { %2091 = vmatprep.subr.bf16.mxu0 %v4196_v15  ;;  %2132 = vmatprep.subr.bf16.mxu1 %v4199_v2 }
 0x69d   :  { %2092 = vmatpush1.bf16.msra.mxu0 %v4202_v24  ;;  %2133 = vmatpush1.bf16.msra.mxu1 %v4205_v7 }
 0x69e   :  { %2093 = vmatprep.subr.bf16.mxu0 %v4208_v9  ;;  %2134 = vmatprep.subr.bf16.mxu1 %v4211_v5 }
 0x6a1   :  { %2094 = vmatpush1.bf16.msra.mxu0 %v4214_v16  ;;  %2135 = vmatpush1.bf16.msra.mxu1 %v4217_v21 }
 0x6a2   :  { %2164 = vmatprep.subr.bf16.mxu0 %v4103_v20  ;;  %2205 = vmatprep.subr.bf16.mxu1 %v5133_v38  ;;  %v1991_v20 = vunpack.c.l.bf16 %v4425_v59 }
 0x6a4   :  { %2112 = vmatmul.mubr.bf16.vlgmr.msra.gmra.mxu0 %v1995_v58  ;;  %2153 = vmatmul.mubr.bf16.vlgmr.msra.gmra.mxu1 %v1995_v58 }
 0x6a5   :  { %2165 = vmatpush1.bf16.msra.mxu0 %v4128_v30  ;;  %2206 = vmatpush1.bf16.msra.mxu1 %v4131_v17  ;;  %v1992_v30 = vsub.f32 %v4421_v34, %v1991_v20 }
 0x6a6   :  { %2166 = vmatprep.subr.bf16.mxu0 %v4134_v22  ;;  %2207 = vmatprep.subr.bf16.mxu1 %v4137_v27  ;;  %v4496_v27 = vld [vmem:[#allocation6 + $0xe4] ss:$16 sps:$4 sm:$0xff]  }
 0x6a7   :  { %2196 = vmatprep.mubr.bf16.mxu0 %v5022_v33  ;;  %2237 = vmatprep.mubr.bf16.mxu1 %v5022_v33  ;;  %v1993_v17 = vpack.c.bf16 %v1992_v30, %v1992_v30 }
 0x6a9   :  { %2167 = vmatpush1.bf16.msra.mxu0 %v4142_v4  ;;  %2208 = vmatpush1.bf16.msra.mxu1 %v4145_v3  ;;  %v2162_v22 = vrot.slane %v1993_v17, 2  ;;  %v4499_v4 = vld [vmem:[#allocation6 + $0xec] ss:$16 sps:$4 sm:$0xff]   ;;  %v4522_v3 = vld [vmem:[#allocation6 + $0xa4] ss:$16 sps:$4 sm:$0xff]  }
 0x6aa   :  { %2168 = vmatprep.subr.bf16.mxu0 %v4148_v14  ;;  %2209 = vmatprep.subr.bf16.mxu1 %v4151_v35  ;;  %v4525_v14 = vld [vmem:[#allocation6 + $0xac] ss:$16 sps:$4 sm:$0xff]   ;;  %v4528_v35 = vld [vmem:[#allocation6 + $0xa0] ss:$16 sps:$4 sm:$0xff]  }
 0x6ad   :  { %2169 = vmatpush1.bf16.msra.mxu0 %v4154_v23  ;;  %2210 = vmatpush1.bf16.msra.mxu1 %v4157_v13  ;;  %v4531_v23 = vld [vmem:[#allocation6 + $0xa8] ss:$16 sps:$4 sm:$0xff]   ;;  %v4534_v13 = vld [vmem:[#allocation6 + $0x84] ss:$16 sps:$4 sm:$0xff]  }
 0x6ae   :  { %2170 = vmatprep.subr.bf16.mxu0 %v4160_v28  ;;  %2211 = vmatprep.subr.bf16.mxu1 %v4163_v36  ;;  %v4537_v28 = vld [vmem:[#allocation6 + $0x8c] ss:$16 sps:$4 sm:$0xff]   ;;  %v4540_v36 = vld [vmem:[#allocation6 + $0x80] ss:$16 sps:$4 sm:$0xff]  }
 0x6b1   :  { %2171 = vmatpush1.bf16.msra.mxu0 %v4166_v32  ;;  %2212 = vmatpush1.bf16.msra.mxu1 %v4169_v29  ;;  %v4543_v32 = vld [vmem:[#allocation6 + $0x88] ss:$16 sps:$4 sm:$0xff]   ;;  %v4546_v29 = vld [vmem:[#allocation6 + $0x64] ss:$16 sps:$4 sm:$0xff]  }
 0x6b2   :  { %2172 = vmatprep.subr.bf16.mxu0 %v4172_v31  ;;  %2213 = vmatprep.subr.bf16.mxu1 %v5104_v52  ;;  %v4549_v31 = vld [vmem:[#allocation6 + $0x6c] ss:$16 sps:$4 sm:$0xff]  }
 0x6b3   :  { %v4573_v52 = vld [vmem:[#allocation6 + $0x2c] ss:$16 sps:$4 sm:$0xff]  }
 0x6b5   :  { %2173 = vmatpush1.bf16.msra.mxu0 %v4178_v10  ;;  %2214 = vmatpush1.bf16.msra.mxu1 %v4181_v1  ;;  %v4552_v10 = vld [vmem:[#allocation6 + $0x60] ss:$16 sps:$4 sm:$0xff]   ;;  %v4555_v1 = vld [vmem:[#allocation6 + $0x68] ss:$16 sps:$4 sm:$0xff]  }
 0x6b6   :  { %2174 = vmatprep.subr.bf16.mxu0 %v4184_v37  ;;  %2215 = vmatprep.subr.bf16.mxu1 %v5105_v54  ;;  %v4558_v37 = vld [vmem:[#allocation6 + $0x44] ss:$16 sps:$4 sm:$0xff]   ;;  %v4576_v54 = vld [vmem:[#allocation6 + $0x20] ss:$16 sps:$4 sm:$0xff]  }
 0x6b9   :  { %2175 = vmatpush1.bf16.msra.mxu0 %v4190_v39  ;;  %2216 = vmatpush1.bf16.msra.mxu1 %v4193_v18  ;;  %v4561_v39 = vld [vmem:[#allocation6 + $0x4c] ss:$16 sps:$4 sm:$0xff]   ;;  %v4564_v18 = vld [vmem:[#allocation6 + $0x40] ss:$16 sps:$4 sm:$0xff]  }
 0x6ba   :  { %2176 = vmatprep.subr.bf16.mxu0 %v4196_v15  ;;  %2217 = vmatprep.subr.bf16.mxu1 %v4199_v2  ;;  %v4567_v15 = vld [vmem:[#allocation6 + $0x48] ss:$16 sps:$4 sm:$0xff]   ;;  %v4570_v2 = vld [vmem:[#allocation6 + $0x24] ss:$16 sps:$4 sm:$0xff]  }
 0x6bd   :  { %2177 = vmatpush1.bf16.msra.mxu0 %v4202_v24  ;;  %2218 = vmatpush1.bf16.msra.mxu1 %v4205_v7  ;;  %v4502_v7 = vld [vmem:[#allocation6 + $0xe0] ss:$16 sps:$4 sm:$0xff]   ;;  %v4519_v24 = vld [vmem:[#allocation6 + $0xc8] ss:$16 sps:$4 sm:$0xff]  }
 0x6be   :  { %2178 = vmatprep.subr.bf16.mxu0 %v4208_v9  ;;  %2219 = vmatprep.subr.bf16.mxu1 %v4211_v5  ;;  %v4505_v5 = vld [vmem:[#allocation6 + $0xe8] ss:$16 sps:$4 sm:$0xff]   ;;  %v4511_v9 = vld [vmem:[#allocation6 + $0xcc] ss:$16 sps:$4 sm:$0xff]  }
 0x6c1   :  { %2179 = vmatpush1.bf16.msra.mxu0 %v4214_v16  ;;  %2220 = vmatpush1.bf16.msra.mxu1 %v4217_v21  ;;  %v4508_v16 = vld [vmem:[#allocation6 + $0xc4] ss:$16 sps:$4 sm:$0xff]   ;;  %v4516_v21 = vld [vmem:[#allocation6 + $0xc0] ss:$16 sps:$4 sm:$0xff]  }
 0x6c2   :  { %2302 = vmatprep.subr.bf16.mxu0 %v4496_v27  ;;  %2343 = vmatprep.subr.bf16.mxu1 %v4499_v4 }
 0x6c4   :  { %2197 = vmatmul.mubr.bf16.vlgmr.msra.gmra.mxu0 %v2162_v22  ;;  %2238 = vmatmul.mubr.bf16.vlgmr.msra.gmra.mxu1 %v2162_v22 }
 0x6c5   :  { %2303 = vmatpush1.bf16.msra.mxu0 %v4502_v7  ;;  %2344 = vmatpush1.bf16.msra.mxu1 %v4505_v5 }
 0x6c6   :  { %2304 = vmatprep.subr.bf16.mxu0 %v4508_v16  ;;  %2345 = vmatprep.subr.bf16.mxu1 %v4511_v9 }
 0x6c7   :  { %2334 = vmatprep.mubr.bf16.mxu0 %v5022_v33  ;;  %2375 = vmatprep.mubr.bf16.mxu1 %v5022_v33 }
 0x6c9   :  { %2305 = vmatpush1.bf16.msra.mxu0 %v4516_v21  ;;  %2346 = vmatpush1.bf16.msra.mxu1 %v4519_v24 }
 0x6ca   :  { %2306 = vmatprep.subr.bf16.mxu0 %v4522_v3  ;;  %2347 = vmatprep.subr.bf16.mxu1 %v4525_v14 }
 0x6cd   :  { %2307 = vmatpush1.bf16.msra.mxu0 %v4528_v35  ;;  %2348 = vmatpush1.bf16.msra.mxu1 %v4531_v23 }
 0x6ce   :  { %2308 = vmatprep.subr.bf16.mxu0 %v4534_v13  ;;  %2349 = vmatprep.subr.bf16.mxu1 %v4537_v28 }
 0x6d1   :  { %2309 = vmatpush1.bf16.msra.mxu0 %v4540_v36  ;;  %2350 = vmatpush1.bf16.msra.mxu1 %v4543_v32 }
 0x6d2   :  { %2310 = vmatprep.subr.bf16.mxu0 %v4546_v29  ;;  %2351 = vmatprep.subr.bf16.mxu1 %v4549_v31 }
 0x6d5   :  { %2311 = vmatpush1.bf16.msra.mxu0 %v4552_v10  ;;  %2352 = vmatpush1.bf16.msra.mxu1 %v4555_v1 }
 0x6d6   :  { %2312 = vmatprep.subr.bf16.mxu0 %v4558_v37  ;;  %2353 = vmatprep.subr.bf16.mxu1 %v4561_v39 }
 0x6d9   :  { %2313 = vmatpush1.bf16.msra.mxu0 %v4564_v18  ;;  %2354 = vmatpush1.bf16.msra.mxu1 %v4567_v15 }
 0x6da   :  { %2314 = vmatprep.subr.bf16.mxu0 %v4570_v2  ;;  %2355 = vmatprep.subr.bf16.mxu1 %v4573_v52 }
 0x6dd   :  { %2315 = vmatpush1.bf16.msra.mxu0 %v4576_v54  ;;  %2356 = vmatpush1.bf16.msra.mxu1 %v4579_v46 }
 0x6de   :  { %2316 = vmatprep.subr.bf16.mxu0 %v4582_v12  ;;  %2357 = vmatprep.subr.bf16.mxu1 %v4585_v40  ;;  %v4708_v12 = vld [vmem:[#allocation3 + $0x8] ss:$16 sps:$4 sm:$0xff]  }
 0x6e1   :  { %2317 = vmatpush1.bf16.msra.mxu0 %v4588_v51  ;;  %2358 = vmatpush1.bf16.msra.mxu1 %v4591_v61 }
 0x6e2   :  { %2384 = vmatprep.subr.bf16.mxu0 %v4594_v26  ;;  %2425 = vmatprep.subr.bf16.mxu1 %v4597_v60 }
 0x744   :  { %v2031_v57 = vpop.f32.mrf.mxu0  ;;  %v2072_v55 = vpop.f32.mrf.mxu1 }
 0x746   :  { %v2033_v25 = vpop.f32.mrf.mxu0  ;;  %v2074_v0 = vpop.f32.mrf.mxu1 }
 0x748   :  { %v2035_v19 = vpop.f32.mrf.mxu0  ;;  %v2076_v56 = vpop.f32.mrf.mxu1 }
 0x74a   :  { %v2036_v6 = vpop.f32.mrf.mxu0  ;;  %v2077_v63 = vpop.f32.mrf.mxu1 }
 0x764   :  { %v2113_v41 = vpop.f32.mrf.mxu0  ;;  %v2154_v62 = vpop.f32.mrf.mxu1 }
 0x765   :  { %v2114_v34 = vadd.f32 %v2113_v41, %v2031_v57  ;;  %v2155_v63 = vadd.f32 %v2154_v62, %v2072_v55 }
 0x766   :  { %v2115_v50 = vpop.f32.mrf.mxu0  ;;  %v2156_v45 = vpop.f32.mrf.mxu1 }
 0x767   :  { %v2116_v38 = vadd.f32 %v2115_v50, %v2033_v25  ;;  %v2157_v25 = vadd.f32 %v2156_v45, %v2074_v0  ;;  %v2286_v45 = vrot.slane %v4418_v42, 7 }
 0x768   :  { %v2117_v47 = vpop.f32.mrf.mxu0  ;;  %v2158_v11 = vpop.f32.mrf.mxu1 }
 0x76a   :  { %v2118_v43 = vpop.f32.mrf.mxu0  ;;  %v2159_v44 = vpop.f32.mrf.mxu1 }
 0x784   :  { %v2198_v59 = vpop.f32.mrf.mxu0  ;;  %v2239_v58 = vpop.f32.mrf.mxu1 }
 0x785   :  { %v2246_v20 = vadd.f32 %v2198_v59, %v2114_v34  ;;  %v2248_v43 = vadd.f32 %v2239_v58, %v2155_v63 }
 0x786   :  { %v2200_v30 = vpop.f32.mrf.mxu0  ;;  %v2241_v17 = vpop.f32.mrf.mxu1 }
 0x787   :  { %v2254_v22 = vrot.slane %v2246_v20, 3  ;;  %v2247_v19 = vadd.f32 %v2200_v30, %v2116_v38  ;;  %v2256_v50 = vrot.slane %v2248_v43, 3  ;;  %v2249_v44 = vadd.f32 %v2241_v17, %v2157_v25  ;;  %v4625_v25 = vld [vmem:[#allocation3 + $0xc4] ss:$16 sps:$4 sm:$0xff]  }
 0x788   :  { %v2202_v56 = vpop.f32.mrf.mxu0  ;;  %v2243_v6 = vpop.f32.mrf.mxu1 }
 0x789   :  { %v2262_v61 = vadd.f32 %v2254_v22, %v5099_v49  ;;  %v2255_v51 = vrot.slane %v2247_v19, 3  ;;  %v2264_v34 = vadd.f32 %v2256_v50, %v5101_v53  ;;  %v2257_v59 = vrot.slane %v2249_v44, 3  ;;  %v4628_v50 = vld [vmem:[#allocation3 + $0xcc] ss:$16 sps:$4 sm:$0xff]   ;;  %v4633_v44 = vld [vmem:[#allocation3 + $0xc0] ss:$16 sps:$4 sm:$0xff]  }
 0x78a   :  { %v2203_v40 = vpop.f32.mrf.mxu0  ;;  %v2244_v47 = vpop.f32.mrf.mxu1  ;;  %v4699_v53 = vld [vmem:[#allocation3 + $0x4] ss:$16 sps:$4 sm:$0xff]   ;;  %v4705_v49 = vld [vmem:[#allocation3] ss:$16 sps:$4 sm:$0xff]  }
 0x78b   :  { %v3020_v11 = vmul.f32 -1.442695, %v2262_v61  ;;  %v2263_v57 = vadd.f32 %v2255_v51, %v5100_v8  ;;  %v3022_v38 = vmul.f32 -1.442695, %v2264_v34  ;;  %v2265_v55 = vadd.f32 %v2257_v59, %v5102_v48  ;;  %v4636_v34 = vld [vmem:[#allocation3 + $0xc8] ss:$16 sps:$4 sm:$0xff]  }
 0x78c   :  { %v4639_v59 = vld [vmem:[#allocation3 + $0xa4] ss:$16 sps:$4 sm:$0xff]   ;;  %v4696_v48 = vld [vmem:[#allocation3 + $0x28] ss:$16 sps:$4 sm:$0xff]   ;;  %v4702_v8 = vld [vmem:[#allocation3 + $0xc] ss:$16 sps:$4 sm:$0xff]  }
 0x78d   :  { %3214 = vpow2.f32 %v3020_v11  ;;  %v3021_v41 = vmul.f32 -1.442695, %v2263_v57  ;;  %v4619_v57 = vld [vmem:[#allocation3 + $0xe0] ss:$16 sps:$4 sm:$0xff]  }
 0x78f   :  { %3216 = vpow2.f32 %v3021_v41  ;;  %v4622_v41 = vld [vmem:[#allocation3 + $0xe8] ss:$16 sps:$4 sm:$0xff]  }
 0x790   :  { %3218 = vpow2.f32 %v3022_v38  ;;  %v4642_v38 = vld [vmem:[#allocation3 + $0xac] ss:$16 sps:$4 sm:$0xff]  }
 0x791   :  { %3220 = vtanh.f32 %v2265_v55  ;;  %v4645_v55 = vld [vmem:[#allocation3 + $0xa0] ss:$16 sps:$4 sm:$0xff]  }
 0x79a   :  { %v3215_v62 = vpop.eup %3214 }
 0x79b   :  { %v2275_v20 = vadd.f32 1.0, %v3215_v62  ;;  %v4648_v62 = vld [vmem:[#allocation3 + $0xa8] ss:$16 sps:$4 sm:$0xff]  }
 0x79c   :  { %v3217_v40 = vpop.eup %3216 }
 0x79d   :  { %3222 = vrcp.f32 %v2275_v20  ;;  %v2276_v61 = vadd.f32 1.0, %v3217_v40  ;;  %v3219_v51 = vpop.eup %3218  ;;  %v4651_v20 = vld [vmem:[#allocation3 + $0x84] ss:$16 sps:$4 sm:$0xff]   ;;  %v4654_v40 = vld [vmem:[#allocation3 + $0x8c] ss:$16 sps:$4 sm:$0xff]  }
 0x79e   :  { %v3221_v58 = vpop.eup %3220  ;;  %v2277_v22 = vadd.f32 1.0, %v3219_v51  ;;  %5139 = vst [vmem:[#allocation39_spill] sm:$0xff] %v4654_v40  ;;  %v4660_v51 = vld [vmem:[#allocation3 + $0x88] ss:$16 sps:$4 sm:$0xff]  }
 0x79f   :  { %3224 = vrcp.f32 %v2276_v61  ;;  %v4657_v61 = vld [vmem:[#allocation3 + $0x80] ss:$16 sps:$4 sm:$0xff]  }
 0x7a0   :  { %3226 = vrcp.f32 %v2277_v22  ;;  %v4678_v22 = vld [vmem:[#allocation3 + $0x4c] ss:$16 sps:$4 sm:$0xff]  }
 0x7aa   :  { %v3223_v0 = vpop.eup %3222 }
 0x7ab   :  { %v2289_v30 = vmul.f32 %v3223_v0, %v3221_v58  ;;  %v4663_v58 = vld [vmem:[#allocation3 + $0x64] ss:$16 sps:$4 sm:$0xff]   ;;  %v4666_v0 = vld [vmem:[#allocation3 + $0x6c] ss:$16 sps:$4 sm:$0xff]  }
 0x7ac   :  { %v3225_v17 = vpop.eup %3224  ;;  %5140 = vst [vmem:[#allocation40_spill] sm:$0xff] %v4666_v0 }
 0x7ad   :  { %v2288_v19 = vmul.f32 %v3225_v17, %v2286_v45  ;;  %v3227_v6 = vpop.eup %3226  ;;  %v4669_v45 = vld [vmem:[#allocation3 + $0x60] ss:$16 sps:$4 sm:$0xff]   ;;  %v4675_v17 = vld [vmem:[#allocation3 + $0x44] ss:$16 sps:$4 sm:$0xff]  }
 0x7af   :  { %v4605_v56 = vadd.f32 %v2289_v30, %v2288_v19  ;;  %v4672_v30 = vld [vmem:[#allocation3 + $0x68] ss:$16 sps:$4 sm:$0xff]   ;;  %v4681_v19 = vld [vmem:[#allocation3 + $0x40] ss:$16 sps:$4 sm:$0xff]  }
 0x7b1   :  { %5138 = vst [vmem:[#allocation38_spill] sm:$0xff] %v4605_v56  ;;  %3228 = vtanh.f32 %v4605_v56  ;;  %v4693_v56 = vld [vmem:[#allocation3 + $0x20] ss:$16 sps:$4 sm:$0xff]  }
 0x7be   :  { %v3229_v63 = vpop.eup %3228 }
 0x7bf   :  { %v4608_v47 = vmul.f32 %v3229_v63, %v3227_v6  ;;  %v4684_v6 = vld [vmem:[#allocation3 + $0x48] ss:$16 sps:$4 sm:$0xff]   ;;  %v4687_v63 = vld [vmem:[#allocation3 + $0x24] ss:$16 sps:$4 sm:$0xff]  }
 0x7c1   :  { %v4612_v11 = vpack.c.bf16 %v4608_v47, %v4608_v47 }
 0x7c3   :  { %v2298_v43 = vshrl.u32 %v4612_v11, 16 }
 0x7c5   :  { %v4615_v42 = vrot.slane %v2298_v43, 2  ;;  %v4690_v43 = vld [vmem:[#allocation3 + $0x2c] ss:$16 sps:$4 sm:$0xff]  }
 0x7c7   :  { %2335 = vmatmul.mubr.bf16.vlgmr.msra.gmra.mxu0 %v4615_v42  ;;  %2376 = vmatmul.mubr.bf16.vlgmr.msra.gmra.mxu1 %v4615_v42 }
 0x7c8   :  { %2385 = vmatpush1.bf16.msra.mxu0 %v4619_v57  ;;  %2426 = vmatpush1.bf16.msra.mxu1 %v4622_v41 }
 0x7c9   :  { %2386 = vmatprep.subr.bf16.mxu0 %v4625_v25  ;;  %2427 = vmatprep.subr.bf16.mxu1 %v4628_v50 }
 0x7ca   :  { %2416 = vmatprep.mubr.bf16.mxu0 %v5022_v33  ;;  %2457 = vmatprep.mubr.bf16.mxu1 %v5022_v33 }
 0x7cc   :  { %2387 = vmatpush1.bf16.msra.mxu0 %v4633_v44  ;;  %2428 = vmatpush1.bf16.msra.mxu1 %v4636_v34 }
 0x7cd   :  { %2388 = vmatprep.subr.bf16.mxu0 %v4639_v59  ;;  %2429 = vmatprep.subr.bf16.mxu1 %v4642_v38 }
 0x7d0   :  { %2389 = vmatpush1.bf16.msra.mxu0 %v4645_v55  ;;  %2430 = vmatpush1.bf16.msra.mxu1 %v4648_v62 }
 0x7d1   :  { %2390 = vmatprep.subr.bf16.mxu0 %v4651_v20  ;;  %2431 = vmatprep.subr.bf16.mxu1 %v4654_v40 }
 0x7d4   :  { %2391 = vmatpush1.bf16.msra.mxu0 %v4657_v61  ;;  %2432 = vmatpush1.bf16.msra.mxu1 %v4660_v51 }
 0x7d5   :  { %2392 = vmatprep.subr.bf16.mxu0 %v4663_v58  ;;  %2433 = vmatprep.subr.bf16.mxu1 %v4666_v0 }
 0x7d8   :  { %2393 = vmatpush1.bf16.msra.mxu0 %v4669_v45  ;;  %2434 = vmatpush1.bf16.msra.mxu1 %v4672_v30 }
 0x7d9   :  { %2394 = vmatprep.subr.bf16.mxu0 %v4675_v17  ;;  %2435 = vmatprep.subr.bf16.mxu1 %v4678_v22 }
 0x7dc   :  { %2395 = vmatpush1.bf16.msra.mxu0 %v4681_v19  ;;  %2436 = vmatpush1.bf16.msra.mxu1 %v4684_v6 }
 0x7dd   :  { %2396 = vmatprep.subr.bf16.mxu0 %v4687_v63  ;;  %2437 = vmatprep.subr.bf16.mxu1 %v4690_v43 }
 0x7e0   :  { %2397 = vmatpush1.bf16.msra.mxu0 %v4693_v56  ;;  %2438 = vmatpush1.bf16.msra.mxu1 %v4696_v48 }
 0x7e1   :  { %2398 = vmatprep.subr.bf16.mxu0 %v4699_v53  ;;  %2439 = vmatprep.subr.bf16.mxu1 %v4702_v8 }
 0x7e4   :  { %2399 = vmatpush1.bf16.msra.mxu0 %v4705_v49  ;;  %2440 = vmatpush1.bf16.msra.mxu1 %v4708_v12 }
 0x7e5   :  { %2471 = vmatprep.subr.bf16.mxu0 %v4594_v26  ;;  %2512 = vmatprep.subr.bf16.mxu1 %v4597_v60 }
 0x7e7   :  { %2417 = vmatmul.mubr.bf16.vlgmr.msra.gmra.mxu0 %v4615_v42  ;;  %2458 = vmatmul.mubr.bf16.vlgmr.msra.gmra.mxu1 %v4615_v42  ;;  %v2294_v42 = vunpack.c.l.bf16 %v4612_v11 }
 0x7e8   :  { %2472 = vmatpush1.bf16.msra.mxu0 %v4619_v57  ;;  %2513 = vmatpush1.bf16.msra.mxu1 %v4622_v41 }
 0x7e9   :  { %2473 = vmatprep.subr.bf16.mxu0 %v4625_v25  ;;  %2514 = vmatprep.subr.bf16.mxu1 %v4628_v50 }
 0x7ea   :  { %2503 = vmatprep.mubr.bf16.mxu0 %v5022_v33  ;;  %2544 = vmatprep.mubr.bf16.mxu1 %v5022_v33 }
 0x7ec   :  { %2474 = vmatpush1.bf16.msra.mxu0 %v4633_v44  ;;  %2515 = vmatpush1.bf16.msra.mxu1 %v4636_v34 }
 0x7ed   :  { %2475 = vmatprep.subr.bf16.mxu0 %v4639_v59  ;;  %2516 = vmatprep.subr.bf16.mxu1 %v4642_v38 }
 0x7f0   :  { %2476 = vmatpush1.bf16.msra.mxu0 %v4645_v55  ;;  %2517 = vmatpush1.bf16.msra.mxu1 %v4648_v62 }
 0x7f1   :  { %2477 = vmatprep.subr.bf16.mxu0 %v4651_v20  ;;  %2518 = vmatprep.subr.bf16.mxu1 %v4654_v40  ;;  %v2295_v40 = vsub.f32 %v4608_v47, %v2294_v42 }
 0x7f4   :  { %2478 = vmatpush1.bf16.msra.mxu0 %v4657_v61  ;;  %2519 = vmatpush1.bf16.msra.mxu1 %v4660_v51 }
 0x7f5   :  { %2479 = vmatprep.subr.bf16.mxu0 %v4663_v58  ;;  %2520 = vmatprep.subr.bf16.mxu1 %v4666_v0  ;;  %v2296_v0 = vpack.c.bf16 %v2295_v40, %v2295_v40 }
 0x7f7   :  { %v2467_v11 = vshrl.u32 %v2296_v0, 16 }
 0x7f8   :  { %2480 = vmatpush1.bf16.msra.mxu0 %v4669_v45  ;;  %2521 = vmatpush1.bf16.msra.mxu1 %v4672_v30 }
 0x7f9   :  { %2481 = vmatprep.subr.bf16.mxu0 %v4675_v17  ;;  %2522 = vmatprep.subr.bf16.mxu1 %v4678_v22  ;;  %v2469_v47 = vrot.slane %v2467_v11, 2 }
 0x7fc   :  { %2482 = vmatpush1.bf16.msra.mxu0 %v4681_v19  ;;  %2523 = vmatpush1.bf16.msra.mxu1 %v4684_v6 }
 0x7fd   :  { %2483 = vmatprep.subr.bf16.mxu0 %v4687_v63  ;;  %2524 = vmatprep.subr.bf16.mxu1 %v4690_v43 }
 0x800   :  { %2484 = vmatpush1.bf16.msra.mxu0 %v4693_v56  ;;  %2525 = vmatpush1.bf16.msra.mxu1 %v4696_v48 }
 0x801   :  { %2485 = vmatprep.subr.bf16.mxu0 %v4699_v53  ;;  %2526 = vmatprep.subr.bf16.mxu1 %v4702_v8 }
 0x804   :  { %2486 = vmatpush1.bf16.msra.mxu0 %v4705_v49  ;;  %2527 = vmatpush1.bf16.msra.mxu1 %v4708_v12 }
 0x805   :  { %2607 = vmatprep.subr.bf16.mxu0 %v4496_v27  ;;  %2648 = vmatprep.subr.bf16.mxu1 %v4499_v4  ;;  %v5141_v27 = vld [vmem:[#allocation41_spill] sm:$0xff]  ;;  %v5142_v4 = vld [vmem:[#allocation42_spill] sm:$0xff] }
 0x807   :  { %2504 = vmatmul.mubr.bf16.vlgmr.msra.gmra.mxu0 %v2469_v47  ;;  %2545 = vmatmul.mubr.bf16.vlgmr.msra.gmra.mxu1 %v2469_v47  ;;  %v5145_v47 = vld [vmem:[#allocation47_spill] sm:$0xff] }
 0x808   :  { %2608 = vmatpush1.bf16.msra.mxu0 %v4502_v7  ;;  %2649 = vmatpush1.bf16.msra.mxu1 %v4505_v5  ;;  %v5143_v7 = vld [vmem:[#allocation43_spill] sm:$0xff]  ;;  %v5144_v5 = vld [vmem:[#allocation45_spill] sm:$0xff] }
 0x809   :  { %2609 = vmatprep.subr.bf16.mxu0 %v4508_v16  ;;  %2650 = vmatprep.subr.bf16.mxu1 %v4511_v9 }
 0x80a   :  { %2639 = vmatprep.mubr.bf16.mxu0 %v5022_v33  ;;  %2680 = vmatprep.mubr.bf16.mxu1 %v5022_v33 }
 0x80c   :  { %2610 = vmatpush1.bf16.msra.mxu0 %v4516_v21  ;;  %2651 = vmatpush1.bf16.msra.mxu1 %v4519_v24 }
 0x80d   :  { %2611 = vmatprep.subr.bf16.mxu0 %v4522_v3  ;;  %2652 = vmatprep.subr.bf16.mxu1 %v4525_v14 }
 0x810   :  { %2612 = vmatpush1.bf16.msra.mxu0 %v4528_v35  ;;  %2653 = vmatpush1.bf16.msra.mxu1 %v4531_v23 }
 0x811   :  { %2613 = vmatprep.subr.bf16.mxu0 %v4534_v13  ;;  %2654 = vmatprep.subr.bf16.mxu1 %v4537_v28 }
 0x814   :  { %2614 = vmatpush1.bf16.msra.mxu0 %v4540_v36  ;;  %2655 = vmatpush1.bf16.msra.mxu1 %v4543_v32 }
 0x815   :  { %2615 = vmatprep.subr.bf16.mxu0 %v4546_v29  ;;  %2656 = vmatprep.subr.bf16.mxu1 %v4549_v31 }
 0x818   :  { %2616 = vmatpush1.bf16.msra.mxu0 %v4552_v10  ;;  %2657 = vmatpush1.bf16.msra.mxu1 %v4555_v1 }
 0x819   :  { %2617 = vmatprep.subr.bf16.mxu0 %v4558_v37  ;;  %2658 = vmatprep.subr.bf16.mxu1 %v4561_v39 }
 0x81c   :  { %2618 = vmatpush1.bf16.msra.mxu0 %v4564_v18  ;;  %2659 = vmatpush1.bf16.msra.mxu1 %v4567_v15 }
 0x81d   :  { %2619 = vmatprep.subr.bf16.mxu0 %v4570_v2  ;;  %2660 = vmatprep.subr.bf16.mxu1 %v4573_v52 }
 0x820   :  { %2620 = vmatpush1.bf16.msra.mxu0 %v4576_v54  ;;  %2661 = vmatpush1.bf16.msra.mxu1 %v4579_v46 }
 0x821   :  { %2621 = vmatprep.subr.bf16.mxu0 %v5141_v27  ;;  %2662 = vmatprep.subr.bf16.mxu1 %v5142_v4 }
 0x824   :  { %2622 = vmatpush1.bf16.msra.mxu0 %v5143_v7  ;;  %2663 = vmatpush1.bf16.msra.mxu1 %v5144_v5 }
 0x825   :  { %2689 = vmatprep.subr.bf16.mxu0 %v4594_v26  ;;  %2730 = vmatprep.subr.bf16.mxu1 %v4597_v60 }
 0x887   :  { %v2336_v16 = vpop.f32.mrf.mxu0  ;;  %v2377_v9 = vpop.f32.mrf.mxu1 }
 0x889   :  { %v2338_v21 = vpop.f32.mrf.mxu0  ;;  %v2379_v24 = vpop.f32.mrf.mxu1 }
 0x88b   :  { %v2340_v3 = vpop.f32.mrf.mxu0  ;;  %v2381_v14 = vpop.f32.mrf.mxu1 }
 0x88d   :  { %v2341_v35 = vpop.f32.mrf.mxu0  ;;  %v2382_v23 = vpop.f32.mrf.mxu1 }
 0x88e   :  { %v5146_v35 = vld [vmem:[#allocation48_spill] sm:$0xff] }
 0x8a7   :  { %v2418_v13 = vpop.f32.mrf.mxu0  ;;  %v2459_v28 = vpop.f32.mrf.mxu1 }
 0x8a8   :  { %v2419_v37 = vadd.f32 %v2418_v13, %v2336_v16  ;;  %v2460_v11 = vadd.f32 %v2459_v28, %v2377_v9  ;;  %v5148_v9 = vld [vmem:[#allocation50_spill] sm:$0xff] }
 0x8a9   :  { %v2420_v36 = vpop.f32.mrf.mxu0  ;;  %v2461_v32 = vpop.f32.mrf.mxu1 }
 0x8aa   :  { %v2421_v15 = vadd.f32 %v2420_v36, %v2338_v21  ;;  %v2462_v21 = vadd.f32 %v2461_v32, %v2379_v24  ;;  %v5149_v32 = vld [vmem:[#allocation38_spill] sm:$0xff] }
 0x8ab   :  { %v2422_v29 = vpop.f32.mrf.mxu0  ;;  %v2463_v31 = vpop.f32.mrf.mxu1 }
 0x8ac   :  { %v5147_v29 = vld [vmem:[#allocation49_spill] sm:$0xff] }
 0x8ad   :  { %v2423_v10 = vpop.f32.mrf.mxu0  ;;  %v2464_v1 = vpop.f32.mrf.mxu1 }
 0x8c7   :  { %v2505_v39 = vpop.f32.mrf.mxu0  ;;  %v2546_v18 = vpop.f32.mrf.mxu1 }
 0x8c8   :  { %v2553_v2 = vadd.f32 %v2505_v39, %v2419_v37  ;;  %v2555_v14 = vadd.f32 %v2546_v18, %v2460_v11 }
 0x8c9   :  { %v2507_v52 = vpop.f32.mrf.mxu0  ;;  %v2548_v54 = vpop.f32.mrf.mxu1 }
 0x8ca   :  { %v2561_v46 = vrot.slane %v2553_v2, 2  ;;  %v2554_v40 = vadd.f32 %v2507_v52, %v2421_v15  ;;  %v2563_v13 = vrot.slane %v2555_v14, 2  ;;  %v2556_v36 = vadd.f32 %v2548_v54, %v2462_v21  ;;  %v5150_v14 = vld [vmem:[#allocation39_spill] sm:$0xff] }
 0x8cb   :  { %v2509_v0 = vpop.f32.mrf.mxu0  ;;  %v2550_v42 = vpop.f32.mrf.mxu1 }
 0x8cc   :  { %v2569_v27 = vadd.f32 %v2561_v46, %v5145_v47  ;;  %v2562_v4 = vrot.slane %v2554_v40, 2  ;;  %v2571_v31 = vadd.f32 %v2563_v13, %v5147_v29  ;;  %v2564_v10 = vrot.slane %v2556_v36, 2 }
 0x8cd   :  { %v2510_v7 = vpop.f32.mrf.mxu0  ;;  %v2551_v5 = vpop.f32.mrf.mxu1  ;;  %v2593_v46 = vrot.slane %v5149_v32, 7 }
 0x8ce   :  { %v3023_v3 = vmul.f32 -1.442695, %v2569_v27  ;;  %v2570_v16 = vadd.f32 %v2562_v4, %v5146_v35  ;;  %v3025_v1 = vmul.f32 -1.442695, %v2571_v31  ;;  %v2572_v28 = vadd.f32 %v2564_v10, %v5148_v9 }
 0x8d0   :  { %3230 = vpow2.f32 %v3023_v3  ;;  %v3024_v23 = vmul.f32 -1.442695, %v2570_v16  ;;  %v5151_v16 = vld [vmem:[#allocation40_spill] sm:$0xff] }
 0x8d2   :  { %3232 = vpow2.f32 %v3024_v23 }
 0x8d3   :  { %3234 = vpow2.f32 %v3025_v1 }
 0x8d4   :  { %3236 = vtanh.f32 %v2572_v28 }
 0x8dd   :  { %v3231_v37 = vpop.eup %3230 }
 0x8de   :  { %v2582_v39 = vadd.f32 1.0, %v3231_v37 }
 0x8df   :  { %v3233_v15 = vpop.eup %3232 }
 0x8e0   :  { %3238 = vrcp.f32 %v2582_v39  ;;  %v2583_v18 = vadd.f32 1.0, %v3233_v15  ;;  %v3235_v2 = vpop.eup %3234 }
 0x8e1   :  { %v3237_v52 = vpop.eup %3236  ;;  %v2584_v0 = vadd.f32 1.0, %v3235_v2 }
 0x8e2   :  { %3240 = vrcp.f32 %v2583_v18 }
 0x8e3   :  { %3242 = vrcp.f32 %v2584_v0 }
 0x8ed   :  { %v3239_v24 = vpop.eup %3238 }
 0x8ee   :  { %v2596_v54 = vmul.f32 %v3239_v24, %v3237_v52 }
 0x8ef   :  { %v3241_v40 = vpop.eup %3240 }
 0x8f0   :  { %v2595_v42 = vmul.f32 %v3241_v40, %v2593_v46  ;;  %v3243_v27 = vpop.eup %3242 }
 0x8f2   :  { %v4790_v11 = vadd.f32 %v2596_v54, %v2595_v42 }
 0x8f4   :  { %3244 = vtanh.f32 %v4790_v11 }
 0x901   :  { %v3245_v4 = vpop.eup %3244 }
 0x902   :  { %v4793_v7 = vmul.f32 %v3245_v4, %v3243_v27  ;;  %v2896_v27 = vrot.slane %v4790_v11, 7 }
 0x904   :  { %v4797_v5 = vpack.c.bf16 %v4793_v7, %v4793_v7 }
 0x906   :  { %v2605_v3 = vrot.slane %v4797_v5, 3 }
 0x908   :  { %2640 = vmatmul.mubr.bf16.vlgmr.msra.gmra.mxu0 %v2605_v3  ;;  %2681 = vmatmul.mubr.bf16.vlgmr.msra.gmra.mxu1 %v2605_v3 }
 0x909   :  { %2690 = vmatpush1.bf16.msra.mxu0 %v4619_v57  ;;  %2731 = vmatpush1.bf16.msra.mxu1 %v4622_v41 }
 0x90a   :  { %2691 = vmatprep.subr.bf16.mxu0 %v4625_v25  ;;  %2732 = vmatprep.subr.bf16.mxu1 %v4628_v50 }
 0x90b   :  { %2721 = vmatprep.mubr.bf16.mxu0 %v5022_v33  ;;  %2762 = vmatprep.mubr.bf16.mxu1 %v5022_v33 }
 0x90d   :  { %2692 = vmatpush1.bf16.msra.mxu0 %v4633_v44  ;;  %2733 = vmatpush1.bf16.msra.mxu1 %v4636_v34 }
 0x90e   :  { %2693 = vmatprep.subr.bf16.mxu0 %v4639_v59  ;;  %2734 = vmatprep.subr.bf16.mxu1 %v4642_v38 }
 0x911   :  { %2694 = vmatpush1.bf16.msra.mxu0 %v4645_v55  ;;  %2735 = vmatpush1.bf16.msra.mxu1 %v4648_v62 }
 0x912   :  { %2695 = vmatprep.subr.bf16.mxu0 %v4651_v20  ;;  %2736 = vmatprep.subr.bf16.mxu1 %v5150_v14 }
 0x915   :  { %2696 = vmatpush1.bf16.msra.mxu0 %v4657_v61  ;;  %2737 = vmatpush1.bf16.msra.mxu1 %v4660_v51 }
 0x916   :  { %2697 = vmatprep.subr.bf16.mxu0 %v4663_v58  ;;  %2738 = vmatprep.subr.bf16.mxu1 %v5151_v16 }
 0x919   :  { %2698 = vmatpush1.bf16.msra.mxu0 %v4669_v45  ;;  %2739 = vmatpush1.bf16.msra.mxu1 %v4672_v30 }
 0x91a   :  { %2699 = vmatprep.subr.bf16.mxu0 %v4675_v17  ;;  %2740 = vmatprep.subr.bf16.mxu1 %v4678_v22 }
 0x91d   :  { %2700 = vmatpush1.bf16.msra.mxu0 %v4681_v19  ;;  %2741 = vmatpush1.bf16.msra.mxu1 %v4684_v6 }
 0x91e   :  { %2701 = vmatprep.subr.bf16.mxu0 %v4687_v63  ;;  %2742 = vmatprep.subr.bf16.mxu1 %v4690_v43 }
 0x921   :  { %2702 = vmatpush1.bf16.msra.mxu0 %v4693_v56  ;;  %2743 = vmatpush1.bf16.msra.mxu1 %v4696_v48 }
 0x922   :  { %2703 = vmatprep.subr.bf16.mxu0 %v4699_v53  ;;  %2744 = vmatprep.subr.bf16.mxu1 %v4702_v8 }
 0x925   :  { %2704 = vmatpush1.bf16.msra.mxu0 %v4705_v49  ;;  %2745 = vmatpush1.bf16.msra.mxu1 %v4708_v12 }
 0x926   :  { %2774 = vmatprep.subr.bf16.mxu0 %v4594_v26  ;;  %2815 = vmatprep.subr.bf16.mxu1 %v4597_v60 }
 0x928   :  { %2722 = vmatmul.mubr.bf16.vlgmr.msra.gmra.mxu0 %v2605_v3  ;;  %2763 = vmatmul.mubr.bf16.vlgmr.msra.gmra.mxu1 %v2605_v3 }
 0x929   :  { %2775 = vmatpush1.bf16.msra.mxu0 %v4619_v57  ;;  %2816 = vmatpush1.bf16.msra.mxu1 %v4622_v41 }
 0x92a   :  { %2776 = vmatprep.subr.bf16.mxu0 %v4625_v25  ;;  %2817 = vmatprep.subr.bf16.mxu1 %v4628_v50 }
 0x92b   :  { %2806 = vmatprep.mubr.bf16.mxu0 %v5022_v33  ;;  %2847 = vmatprep.mubr.bf16.mxu1 %v5022_v33  ;;  %v2601_v33 = vunpack.c.l.bf16 %v4797_v5 }
 0x92d   :  { %2777 = vmatpush1.bf16.msra.mxu0 %v4633_v44  ;;  %2818 = vmatpush1.bf16.msra.mxu1 %v4636_v34  ;;  %v2602_v26 = vsub.f32 %v4793_v7, %v2601_v33 }
 0x92e   :  { %2778 = vmatprep.subr.bf16.mxu0 %v4639_v59  ;;  %2819 = vmatprep.subr.bf16.mxu1 %v4642_v38 }
 0x92f   :  { %v2603_v60 = vpack.c.bf16 %v2602_v26, %v2602_v26 }
 0x931   :  { %2779 = vmatpush1.bf16.msra.mxu0 %v4645_v55  ;;  %2820 = vmatpush1.bf16.msra.mxu1 %v4648_v62  ;;  %v2772_v57 = vrot.slane %v2603_v60, 3 }
 0x932   :  { %2780 = vmatprep.subr.bf16.mxu0 %v4651_v20  ;;  %2821 = vmatprep.subr.bf16.mxu1 %v5150_v14 }
 0x935   :  { %2781 = vmatpush1.bf16.msra.mxu0 %v4657_v61  ;;  %2822 = vmatpush1.bf16.msra.mxu1 %v4660_v51 }
 0x936   :  { %2782 = vmatprep.subr.bf16.mxu0 %v4663_v58  ;;  %2823 = vmatprep.subr.bf16.mxu1 %v5151_v16  ;;  %v3029_v16 = vld [vmem:[%s4884_s5] ss:$0 sm:$0xff] }
 0x939   :  { %2783 = vmatpush1.bf16.msra.mxu0 %v4669_v45  ;;  %2824 = vmatpush1.bf16.msra.mxu1 %v4672_v30 }
 0x93a   :  { %2784 = vmatprep.subr.bf16.mxu0 %v4675_v17  ;;  %2825 = vmatprep.subr.bf16.mxu1 %v4678_v22 }
 0x93d   :  { %2785 = vmatpush1.bf16.msra.mxu0 %v4681_v19  ;;  %2826 = vmatpush1.bf16.msra.mxu1 %v4684_v6 }
 0x93e   :  { %2786 = vmatprep.subr.bf16.mxu0 %v4687_v63  ;;  %2827 = vmatprep.subr.bf16.mxu1 %v4690_v43 }
 0x941   :  { %2787 = vmatpush1.bf16.msra.mxu0 %v4693_v56  ;;  %2828 = vmatpush1.bf16.msra.mxu1 %v4696_v48 }
 0x942   :  { %2788 = vmatprep.subr.bf16.mxu0 %v4699_v53  ;;  %2829 = vmatprep.subr.bf16.mxu1 %v4702_v8 }
 0x945   :  { %2789 = vmatpush1.bf16.msra.mxu0 %v4705_v49  ;;  %2830 = vmatpush1.bf16.msra.mxu1 %v4708_v12 }
 0x948   :  { %2807 = vmatmul.mubr.bf16.vlgmr.msra.gmra.mxu0 %v2772_v57  ;;  %2848 = vmatmul.mubr.bf16.vlgmr.msra.gmra.mxu1 %v2772_v57  ;;  %v3030_v57 = vld [vmem:[#allocation2] ss:$0 sm:$0xff] }
 0x9c8   :  { %v2641_v41 = vpop.f32.mrf.mxu0  ;;  %v2682_v25 = vpop.f32.mrf.mxu1 }
 0x9ca   :  { %v2643_v50 = vpop.f32.mrf.mxu0  ;;  %v2684_v44 = vpop.f32.mrf.mxu1 }
 0x9cc   :  { %v2645_v34 = vpop.f32.mrf.mxu0  ;;  %v2686_v56 = vpop.f32.mrf.mxu1 }
 0x9ce   :  { %v2646_v59 = vpop.f32.mrf.mxu0  ;;  %v2687_v48 = vpop.f32.mrf.mxu1 }
 0x9e8   :  { %v2723_v38 = vpop.f32.mrf.mxu0  ;;  %v2764_v53 = vpop.f32.mrf.mxu1 }
 0x9e9   :  { %v2724_v12 = vadd.f32 %v2723_v38, %v2641_v41  ;;  %v2765_v23 = vadd.f32 %v2764_v53, %v2682_v25 }
 0x9ea   :  { %v2725_v55 = vpop.f32.mrf.mxu0  ;;  %v2766_v8 = vpop.f32.mrf.mxu1 }
 0x9eb   :  { %v2726_v45 = vadd.f32 %v2725_v55, %v2643_v50  ;;  %v2767_v39 = vadd.f32 %v2766_v8, %v2684_v44 }
 0x9ec   :  { %v2727_v62 = vpop.f32.mrf.mxu0  ;;  %v2768_v20 = vpop.f32.mrf.mxu1 }
 0x9ee   :  { %v2728_v49 = vpop.f32.mrf.mxu0  ;;  %v2769_v61 = vpop.f32.mrf.mxu1 }
 0xa08   :  { %v2808_v51 = vpop.f32.mrf.mxu0  ;;  %v2849_v58 = vpop.f32.mrf.mxu1 }
 0xa09   :  { %v2856_v30 = vadd.f32 %v2808_v51, %v2724_v12  ;;  %v2858_v1 = vadd.f32 %v2849_v58, %v2765_v23 }
 0xa0a   :  { %v2810_v17 = vpop.f32.mrf.mxu0  ;;  %v2851_v22 = vpop.f32.mrf.mxu1 }
 0xa0b   :  { %v2864_v19 = vrot.slane %v2856_v30, 1  ;;  %v2857_v6 = vadd.f32 %v2810_v17, %v2726_v45  ;;  %v2866_v15 = vrot.slane %v2858_v1, 1  ;;  %v2859_v18 = vadd.f32 %v2851_v22, %v2767_v39 }
 0xa0c   :  { %v2812_v63 = vpop.f32.mrf.mxu0  ;;  %v2853_v43 = vpop.f32.mrf.mxu1 }
 0xa0d   :  { %v2872_v21 = vadd.f32 %v2864_v19, %v5145_v47  ;;  %v2865_v13 = vrot.slane %v2857_v6, 1  ;;  %v2874_v2 = vadd.f32 %v2866_v15, %v5147_v29  ;;  %v2867_v52 = vrot.slane %v2859_v18, 1 }
 0xa0e   :  { %v2813_v36 = vpop.f32.mrf.mxu0  ;;  %v2854_v31 = vpop.f32.mrf.mxu1 }
 0xa0f   :  { %v3026_v10 = vmul.f32 -1.442695, %v2872_v21  ;;  %v2873_v28 = vadd.f32 %v2865_v13, %v5146_v35  ;;  %v3028_v24 = vmul.f32 -1.442695, %v2874_v2  ;;  %v2875_v32 = vadd.f32 %v2867_v52, %v5148_v9 }
 0xa11   :  { %3246 = vpow2.f32 %v3026_v10  ;;  %v3027_v37 = vmul.f32 -1.442695, %v2873_v28 }
 0xa13   :  { %3248 = vpow2.f32 %v3027_v37 }
 0xa14   :  { %3250 = vpow2.f32 %v3028_v24 }
 0xa15   :  { %3252 = vtanh.f32 %v2875_v32 }
 0xa1e   :  { %v3247_v47 = vpop.eup %3246 }
 0xa1f   :  { %v2885_v46 = vadd.f32 1.0, %v3247_v47 }
 0xa20   :  { %v3249_v54 = vpop.eup %3248 }
 0xa21   :  { %3254 = vrcp.f32 %v2885_v46  ;;  %v2886_v40 = vadd.f32 1.0, %v3249_v54  ;;  %v3251_v35 = vpop.eup %3250 }
 0xa22   :  { %v3253_v0 = vpop.eup %3252  ;;  %v2887_v29 = vadd.f32 1.0, %v3251_v35 }
 0xa23   :  { %3256 = vrcp.f32 %v2886_v40 }
 0xa24   :  { %3258 = vrcp.f32 %v2887_v29 }
 0xa2e   :  { %v3255_v42 = vpop.eup %3254 }
 0xa2f   :  { %v2899_v4 = vmul.f32 %v3255_v42, %v3253_v0 }
 0xa30   :  { %v3257_v7 = vpop.eup %3256 }
 0xa31   :  { %v2898_v5 = vmul.f32 %v3257_v7, %v2896_v27  ;;  %v3259_v9 = vpop.eup %3258 }
 0xa33   :  { %v2900_v3 = vadd.f32 %v2899_v4, %v2898_v5 }
 0xa35   :  { %3260 = vtanh.f32 %v2900_v3 }
 0xa42   :  { %v3261_v14 = vpop.eup %3260 }
 0xa43   :  { %v2902_v33 = vmul.f32 %v3261_v14, %v3259_v9 }
 0xa45   :  { %v2910_v26 = vmul.f32 %v3029_v16, %v2902_v33 }
 0xa47   :  { %v2912_v60 = vsel %vm2911_vm0, %v2910_v26, 0.0 }
 0xa48   :  { %2913 = vadd.xlane.f32.xlu0 %v2912_v60 }
 0xad1   :  { %v2914_v11 = vpop.xlane.xlu0 %2913 }
 0xad2   :  { %v2922_v41 = vadd.f32 %v3030_v57, %v2914_v11 }
 0xad4   :  { %2924 = vst.msk [vmem:[#allocation8 - $0x7] sm:$0x80] %vm2923_vm1, %v2922_v41 }
 0xad5   :  { %3441 = shalt.err (!%p3438_p0)
}
 0xad6   :  { %2934 = dma.vmem_to_hbm [thread:$0]  %s2932_s18, 16, %s4886_s7, [#allocation5]  }
 0xad7   :  { %3454 = dma.done.wait [#allocation5], 16  }
 0xad8   :  { %3455 = vsyncadd [#allocation5], 4294967280 }
 0xad9   :  { %2938 = vsyncpa [#allocation4], 1 }
 0xada   :  { %2939 = vsyncpa [#allocation7], 1 }
 0xadb   :  { %2940 = vsyncpa [#allocation5], 1 }

</bundles_post_ra>
